<compile_context>
chip_gen: v6e
topology: v6e:2x2x1
jax: 0.10.0
libtpu: 0.0.40
codegen_flags: <defaults>
</compile_context>

<pallas_src>
import functools

import numpy as np
import jax
import jax.numpy as jnp
from jax import lax
from jax.experimental import pallas as pl
from jax.experimental.pallas import tpu as pltpu

SELU_ALPHA = 1.6732632423543772848170429916717
SELU_SCALE = 1.0507009873554804934193349852946
BN_EPS = 1e-5
DROP_P = 0.2
KEEP_P = np.float32(1.0 - DROP_P)
INV_KEEP = np.float32(1.0 / (1.0 - DROP_P))


def _round_up(a, b):
    return -(-a // b) * b


def _conv_channels(x_ref, w_ref, *, c_in, c_out, ksize, pad, l_in, l_out):
    """Conv1d (no bias) of one flattened batch tile.

    x_ref: VMEM (tile_n, c_in*l_in), unpadded, lane-dense.
    w_ref: SMEM flat (c_out*c_in*ksize,) f32 scalars.
    Returns a list of c_out arrays of shape (tile_n, l_out), f32.

    Channel counts are tiny (c_in*ksize = 12, c_out = 8) so this is done as
    VPU scalar-broadcast FMAs over a lane-dense L axis instead of a >90%-padded
    MXU matmul.  The K shifted windows per input channel are built once and
    shared by every output channel; the padding halo is materialized in-kernel.
    """
    tile_n = x_ref.shape[0]
    zcol = jnp.zeros((tile_n, pad), jnp.float32) if pad > 0 else None
    windows = []
    for ci in range(c_in):
        xi = x_ref[:, ci * l_in:(ci + 1) * l_in]
        if pad > 0:
            xi = jnp.concatenate([zcol, xi, zcol], axis=1)   # (tile_n, l_in+2p)
        windows.append([xi[:, k:k + l_out] for k in range(ksize)])
    outs = []
    for co in range(c_out):
        acc = None
        for ci in range(c_in):
            for k in range(ksize):
                term = w_ref[(co * c_in + ci) * ksize + k] * windows[ci][k]
                acc = term if acc is None else acc + term
        outs.append(acc)
    return outs


def _stats_kernel(x_ref, w_ref, psum_ref, psumsq_ref, *,
                  c_in, c_out, ksize, pad, l_in, l_out):
    """Pass 1: accumulate per-channel sum / sum-of-squares of the conv output.

    Accumulators are resident VMEM outputs, one slot per leading ("parallel")
    grid slice; init happens at the first step of the inner ("arbitrary") axis.
    """
    @pl.when(pl.program_id(1) == 0)
    def _init():
        psum_ref[...] = jnp.zeros_like(psum_ref)
        psumsq_ref[...] = jnp.zeros_like(psumsq_ref)

    outs = _conv_channels(x_ref, w_ref, c_in=c_in, c_out=c_out, ksize=ksize,
                          pad=pad, l_in=l_in, l_out=l_out)
    slab = jnp.concatenate(outs, axis=1)                 # (tile_n, c_out*l_out)
    psum_ref[...] += jnp.sum(slab, axis=0, keepdims=True).reshape(psum_ref.shape)
    psumsq_ref[...] += jnp.sum(slab * slab, axis=0,
                               keepdims=True).reshape(psumsq_ref.shape)


def _apply_kernel(x_ref, w_ref, scale_ref, shift_ref, u_ref, out_ref, *,
                  c_in, c_out, ksize, pad, l_in, l_out):
    """Pass 2: conv -> folded BN affine -> dropout(0.2) -> SELU, one 128-lane slab."""
    outs = _conv_channels(x_ref, w_ref, c_in=c_in, c_out=c_out, ksize=ksize,
                          pad=pad, l_in=l_in, l_out=l_out)
    # BatchNorm (training batch stats) folded to per-channel scale/shift (SMEM).
    ys = [outs[co] * scale_ref[co] + shift_ref[co] for co in range(c_out)]
    y = jnp.concatenate(ys, axis=1)                      # (tile_n, c_out*l_out)
    # Dropout p=0.2 with inverted scaling; uniforms precomputed in the wrapper.
    y = jnp.where(u_ref[...] < KEEP_P, y * INV_KEEP, 0.0)
    # SELU (exp goes to the EUP slot).
    out_ref[...] = SELU_SCALE * jnp.where(
        y > 0.0, y, SELU_ALPHA * (jnp.exp(y) - 1.0))


@functools.partial(jax.jit, static_argnames=("kernel_size", "padding", "tile_n"))
def conv_dropout_selu(x, weight, bias, gamma, beta, seed, *,
                      kernel_size, padding, tile_n=None):
    """x: (N, C_in, L) f32 (PyTorch NCL).  Returns (N, C_out, L_out) f32, NCL."""
    del bias  # Exactly cancelled by training-mode BN mean subtraction.
    N, C_in, L = x.shape
    C_out = weight.shape[0]
    K = kernel_size
    L_out = L + 2 * padding - K + 1

    # ---- batch tile size (accounts for (8,128) vreg-tile padding of blocks) --
    x_row_bytes = 4 * _round_up(C_in * L, 128)
    o_row_bytes = 4 * _round_up(C_out * L_out, 128)
    per_n_bytes = 2 * (x_row_bytes + 2 * o_row_bytes)   # double-buffered x, u, out
    budget = 16 * 1024 * 1024
    if tile_n is None:
        tile_n = int(max(8, min(budget // max(per_n_bytes, 1), 1024)))
    if tile_n >= N:
        tile_n = N
    else:
        tile_n = min(max(8, (tile_n // 8) * 8), N)
    N_pad = _round_up(N, tile_n)

    # ---- lane-dense flattened layouts (free row-major reshapes) --------------
    x2 = x.reshape(N, C_in * L).astype(jnp.float32)
    if N_pad != N:
        # Zero rows give exactly-zero conv output (no bias), so batch stats
        # (divided by the true count N*L_out) are unaffected.
        x2 = jnp.pad(x2, ((0, N_pad - N), (0, 0)))
    w_flat = weight.reshape(C_out * C_in * K).astype(jnp.float32)

    grid_tiles = N_pad // tile_n
    n_slices = 2 if (grid_tiles % 2 == 0 and grid_tiles >= 2) else 1
    tiles_per_slice = grid_tiles // n_slices

    smem = pl.BlockSpec(memory_space=pltpu.MemorySpace.SMEM)
    conv_flops = 2 * N_pad * L_out * C_out * C_in * K

    # ---------------- pass 1: global per-channel conv statistics -------------
    stats_kernel = functools.partial(_stats_kernel, c_in=C_in, c_out=C_out,
                                     ksize=K, pad=padding, l_in=L, l_out=L_out)
    acc_spec = pl.BlockSpec((1, 1, C_out * L_out), lambda s, i: (s, 0, 0))
    psum, psumsq = pl.pallas_call(
        stats_kernel,
        grid=(n_slices, tiles_per_slice),
        in_specs=[pl.BlockSpec((tile_n, C_in * L),
                               lambda s, i: (s * tiles_per_slice + i, 0)),
                  smem],
        out_specs=[acc_spec, acc_spec],
        out_shape=[jax.ShapeDtypeStruct((n_slices, 1, C_out * L_out),
                                        jnp.float32)] * 2,
        compiler_params=pltpu.CompilerParams(
            dimension_semantics=("parallel", "arbitrary")),
        cost_estimate=pl.CostEstimate(
            flops=conv_flops + 3 * N_pad * C_out * L_out,
            transcendentals=0,
            bytes_accessed=4 * (N_pad * C_in * L + w_flat.size
                                + 2 * n_slices * C_out * L_out)),
    )(x2, w_flat)

    # Fold BN (biased variance, training mode) into per-channel scale/shift.
    count = N * L_out
    ch_sum = psum.reshape(n_slices, C_out, L_out).sum(axis=(0, 2))
    ch_sumsq = psumsq.reshape(n_slices, C_out, L_out).sum(axis=(0, 2))
    mean = ch_sum / count
    var = jnp.maximum(ch_sumsq / count - mean * mean, 0.0)
    inv_std = lax.rsqrt(var + BN_EPS)
    scale = gamma.astype(jnp.float32) * inv_std
    shift = beta.astype(jnp.float32) - mean * scale

    # Dropout uniforms, lane-dense, one row per (possibly padded) batch element.
    key = jax.random.PRNGKey(seed)
    u = jax.random.uniform(key, (N_pad, C_out * L_out), jnp.float32)

    # ---------------- pass 2: conv -> BN -> dropout -> SELU ------------------
    apply_kernel = functools.partial(_apply_kernel, c_in=C_in, c_out=C_out,
                                     ksize=K, pad=padding, l_in=L, l_out=L_out)
    o_spec = pl.BlockSpec((tile_n, C_out * L_out), lambda i: (i, 0))
    out = pl.pallas_call(
        apply_kernel,
        grid=(grid_tiles,),
        in_specs=[pl.BlockSpec((tile_n, C_in * L), lambda i: (i, 0)),
                  smem, smem, smem, o_spec],
        out_specs=o_spec,
        out_shape=jax.ShapeDtypeStruct((N_pad, C_out * L_out), jnp.float32),
        compiler_params=pltpu.CompilerParams(
            dimension_semantics=("parallel",)),
        cost_estimate=pl.CostEstimate(
            flops=conv_flops + 10 * N_pad * C_out * L_out,
            transcendentals=N_pad * C_out * L_out,
            bytes_accessed=4 * (N_pad * C_in * L + 2 * N_pad * C_out * L_out
                                + w_flat.size + 2 * C_out)),
    )(x2, w_flat, scale, shift, u)

    return out[:N].reshape(N, C_out, L_out)


if __name__ == "__main__":
    N, C_in, C_out, L = 2, 4, 8, 16
    K, P = 3, 1

    key = jax.random.PRNGKey(0)
    kx, kw, kb = jax.random.split(key, 3)

    x = jax.random.normal(kx, (N, C_in, L), dtype=jnp.float32)
    fan_in = C_in * K
    bound = 1.0 / (fan_in ** 0.5)
    weight = jax.random.uniform(kw, (C_out, C_in, K), jnp.float32, -bound, bound)
    bias = jax.random.uniform(kb, (C_out,), jnp.float32, -bound, bound)
    gamma = jnp.ones((C_out,), jnp.float32)   # BatchNorm1d weight
    beta = jnp.zeros((C_out,), jnp.float32)   # BatchNorm1d bias

    y = conv_dropout_selu(x, weight, bias, gamma, beta, 1234,
                          kernel_size=K, padding=P)
    y = jax.block_until_ready(y)
    L_out = L + 2 * P - K + 1
    assert y.shape == (N, C_out, L_out)

    # Pure-JAX reference for everything except the dropout mask: every output
    # element must equal either 0 (dropped) or SELU(BN(conv)/keep_p) (kept).
    ref = lax.conv_general_dilated(x, weight, window_strides=(1,),
                                   padding=[(P, P)],
                                   dimension_numbers=("NCH", "OIH", "NCH"))
    ref = ref + bias[None, :, None]
    m = ref.mean(axis=(0, 2), keepdims=True)
    v = ((ref - m) ** 2).mean(axis=(0, 2), keepdims=True)        # biased var
    refn = ((ref - m) * lax.rsqrt(v + BN_EPS) * gamma[None, :, None]
            + beta[None, :, None])
    kept = refn / (1.0 - DROP_P)
    ref_kept = SELU_SCALE * jnp.where(kept > 0, kept, SELU_ALPHA * jnp.expm1(kept))

    y_np = np.asarray(y)
    r_np = np.asarray(ref_kept)
    tol = 1e-4 + 1e-4 * np.abs(r_np)
    ok = np.minimum(np.abs(y_np), np.abs(y_np - r_np)) <= tol
    assert bool(ok.all()), "kernel output mismatch vs reference"
    drop_frac = float((np.abs(y_np) <= 1e-7).mean())
    assert 0.02 <= drop_frac <= 0.45, f"implausible dropout fraction {drop_frac}"
    print("KERNEL_OK")
</pallas_src>

<mosaic_0001>
module attributes {stable_mosaic.version = 11 : i64} {
  func.func @_apply_kernel(%arg0: i32, %arg1: memref<2x64xf32, #tpu.memory_space<vmem>>, %arg2: memref<96xf32, #tpu.memory_space<smem>>, %arg3: memref<8xf32, #tpu.memory_space<smem>>, %arg4: memref<8xf32, #tpu.memory_space<smem>>, %arg5: memref<2x128xf32, #tpu.memory_space<vmem>>, %arg6: memref<2x128xf32, #tpu.memory_space<vmem>>) attributes {dimension_semantics = [#tpu.dimension_semantics<parallel>], iteration_bounds = array<i64: 1>, scalar_prefetch = 0 : i64, scratch_operands = 0 : i64, tpu.core_type = #tpu.core_type<tc>, window_params = [{transform_indices = @transform_0, window_bounds = array<i64: 2, 64>}, {transform_indices = @transform_1, window_bounds = array<i64: 96>}, {transform_indices = @transform_2, window_bounds = array<i64: 8>}, {transform_indices = @transform_3, window_bounds = array<i64: 8>}, {transform_indices = @transform_4, window_bounds = array<i64: 2, 128>}, {transform_indices = @transform_5, window_bounds = array<i64: 2, 128>}]} {
    %cst = arith.constant 0.000000e+00 : f32
    %0 = vector.broadcast %cst : f32 to vector<2x1xf32>
    %c0 = arith.constant 0 : index
    %c0_0 = arith.constant 0 : index
    %1 = vector.load %arg1[%c0, %c0_0] : memref<2x64xf32, #tpu.memory_space<vmem>>, vector<2x16xf32>
    %2 = tpu.concatenate %0, %1, %0 in 1 : vector<2x1xf32>, vector<2x16xf32>, vector<2x1xf32> -> vector<2x18xf32>
    %3 = vector.extract_strided_slice %2 {offsets = [0, 0], sizes = [2, 16], strides = [1, 1]} : vector<2x18xf32> to vector<2x16xf32>
    %4 = vector.extract_strided_slice %2 {offsets = [0, 1], sizes = [2, 16], strides = [1, 1]} : vector<2x18xf32> to vector<2x16xf32>
    %5 = vector.extract_strided_slice %2 {offsets = [0, 2], sizes = [2, 16], strides = [1, 1]} : vector<2x18xf32> to vector<2x16xf32>
    %c0_1 = arith.constant 0 : index
    %c16 = arith.constant 16 : index
    %6 = vector.load %arg1[%c0_1, %c16] : memref<2x64xf32, #tpu.memory_space<vmem>>, vector<2x16xf32>
    %7 = tpu.concatenate %0, %6, %0 in 1 : vector<2x1xf32>, vector<2x16xf32>, vector<2x1xf32> -> vector<2x18xf32>
    %8 = vector.extract_strided_slice %7 {offsets = [0, 0], sizes = [2, 16], strides = [1, 1]} : vector<2x18xf32> to vector<2x16xf32>
    %9 = vector.extract_strided_slice %7 {offsets = [0, 1], sizes = [2, 16], strides = [1, 1]} : vector<2x18xf32> to vector<2x16xf32>
    %10 = vector.extract_strided_slice %7 {offsets = [0, 2], sizes = [2, 16], strides = [1, 1]} : vector<2x18xf32> to vector<2x16xf32>
    %c0_2 = arith.constant 0 : index
    %c32 = arith.constant 32 : index
    %11 = vector.load %arg1[%c0_2, %c32] : memref<2x64xf32, #tpu.memory_space<vmem>>, vector<2x16xf32>
    %12 = tpu.concatenate %0, %11, %0 in 1 : vector<2x1xf32>, vector<2x16xf32>, vector<2x1xf32> -> vector<2x18xf32>
    %13 = vector.extract_strided_slice %12 {offsets = [0, 0], sizes = [2, 16], strides = [1, 1]} : vector<2x18xf32> to vector<2x16xf32>
    %14 = vector.extract_strided_slice %12 {offsets = [0, 1], sizes = [2, 16], strides = [1, 1]} : vector<2x18xf32> to vector<2x16xf32>
    %15 = vector.extract_strided_slice %12 {offsets = [0, 2], sizes = [2, 16], strides = [1, 1]} : vector<2x18xf32> to vector<2x16xf32>
    %c0_3 = arith.constant 0 : index
    %c48 = arith.constant 48 : index
    %16 = vector.load %arg1[%c0_3, %c48] : memref<2x64xf32, #tpu.memory_space<vmem>>, vector<2x16xf32>
    %17 = tpu.concatenate %0, %16, %0 in 1 : vector<2x1xf32>, vector<2x16xf32>, vector<2x1xf32> -> vector<2x18xf32>
    %18 = vector.extract_strided_slice %17 {offsets = [0, 0], sizes = [2, 16], strides = [1, 1]} : vector<2x18xf32> to vector<2x16xf32>
    %19 = vector.extract_strided_slice %17 {offsets = [0, 1], sizes = [2, 16], strides = [1, 1]} : vector<2x18xf32> to vector<2x16xf32>
    %20 = vector.extract_strided_slice %17 {offsets = [0, 2], sizes = [2, 16], strides = [1, 1]} : vector<2x18xf32> to vector<2x16xf32>
    %c0_4 = arith.constant 0 : index
    %21 = memref.load %arg2[%c0_4] : memref<96xf32, #tpu.memory_space<smem>>
    %22 = vector.broadcast %21 : f32 to vector<2x16xf32>
    %23 = arith.mulf %22, %3 : vector<2x16xf32>
    %c1 = arith.constant 1 : index
    %24 = memref.load %arg2[%c1] : memref<96xf32, #tpu.memory_space<smem>>
    %25 = vector.broadcast %24 : f32 to vector<2x16xf32>
    %26 = arith.mulf %25, %4 : vector<2x16xf32>
    %27 = arith.addf %23, %26 : vector<2x16xf32>
    %c2 = arith.constant 2 : index
    %28 = memref.load %arg2[%c2] : memref<96xf32, #tpu.memory_space<smem>>
    %29 = vector.broadcast %28 : f32 to vector<2x16xf32>
    %30 = arith.mulf %29, %5 : vector<2x16xf32>
    %31 = arith.addf %27, %30 : vector<2x16xf32>
    %c3 = arith.constant 3 : index
    %32 = memref.load %arg2[%c3] : memref<96xf32, #tpu.memory_space<smem>>
    %33 = vector.broadcast %32 : f32 to vector<2x16xf32>
    %34 = arith.mulf %33, %8 : vector<2x16xf32>
    %35 = arith.addf %31, %34 : vector<2x16xf32>
    %c4 = arith.constant 4 : index
    %36 = memref.load %arg2[%c4] : memref<96xf32, #tpu.memory_space<smem>>
    %37 = vector.broadcast %36 : f32 to vector<2x16xf32>
    %38 = arith.mulf %37, %9 : vector<2x16xf32>
    %39 = arith.addf %35, %38 : vector<2x16xf32>
    %c5 = arith.constant 5 : index
    %40 = memref.load %arg2[%c5] : memref<96xf32, #tpu.memory_space<smem>>
    %41 = vector.broadcast %40 : f32 to vector<2x16xf32>
    %42 = arith.mulf %41, %10 : vector<2x16xf32>
    %43 = arith.addf %39, %42 : vector<2x16xf32>
    %c6 = arith.constant 6 : index
    %44 = memref.load %arg2[%c6] : memref<96xf32, #tpu.memory_space<smem>>
    %45 = vector.broadcast %44 : f32 to vector<2x16xf32>
    %46 = arith.mulf %45, %13 : vector<2x16xf32>
    %47 = arith.addf %43, %46 : vector<2x16xf32>
    %c7 = arith.constant 7 : index
    %48 = memref.load %arg2[%c7] : memref<96xf32, #tpu.memory_space<smem>>
    %49 = vector.broadcast %48 : f32 to vector<2x16xf32>
    %50 = arith.mulf %49, %14 : vector<2x16xf32>
    %51 = arith.addf %47, %50 : vector<2x16xf32>
    %c8 = arith.constant 8 : index
    %52 = memref.load %arg2[%c8] : memref<96xf32, #tpu.memory_space<smem>>
    %53 = vector.broadcast %52 : f32 to vector<2x16xf32>
    %54 = arith.mulf %53, %15 : vector<2x16xf32>
    %55 = arith.addf %51, %54 : vector<2x16xf32>
    %c9 = arith.constant 9 : index
    %56 = memref.load %arg2[%c9] : memref<96xf32, #tpu.memory_space<smem>>
    %57 = vector.broadcast %56 : f32 to vector<2x16xf32>
    %58 = arith.mulf %57, %18 : vector<2x16xf32>
    %59 = arith.addf %55, %58 : vector<2x16xf32>
    %c10 = arith.constant 10 : index
    %60 = memref.load %arg2[%c10] : memref<96xf32, #tpu.memory_space<smem>>
    %61 = vector.broadcast %60 : f32 to vector<2x16xf32>
    %62 = arith.mulf %61, %19 : vector<2x16xf32>
    %63 = arith.addf %59, %62 : vector<2x16xf32>
    %c11 = arith.constant 11 : index
    %64 = memref.load %arg2[%c11] : memref<96xf32, #tpu.memory_space<smem>>
    %65 = vector.broadcast %64 : f32 to vector<2x16xf32>
    %66 = arith.mulf %65, %20 : vector<2x16xf32>
    %67 = arith.addf %63, %66 : vector<2x16xf32>
    %c12 = arith.constant 12 : index
    %68 = memref.load %arg2[%c12] : memref<96xf32, #tpu.memory_space<smem>>
    %69 = vector.broadcast %68 : f32 to vector<2x16xf32>
    %70 = arith.mulf %69, %3 : vector<2x16xf32>
    %c13 = arith.constant 13 : index
    %71 = memref.load %arg2[%c13] : memref<96xf32, #tpu.memory_space<smem>>
    %72 = vector.broadcast %71 : f32 to vector<2x16xf32>
    %73 = arith.mulf %72, %4 : vector<2x16xf32>
    %74 = arith.addf %70, %73 : vector<2x16xf32>
    %c14 = arith.constant 14 : index
    %75 = memref.load %arg2[%c14] : memref<96xf32, #tpu.memory_space<smem>>
    %76 = vector.broadcast %75 : f32 to vector<2x16xf32>
    %77 = arith.mulf %76, %5 : vector<2x16xf32>
    %78 = arith.addf %74, %77 : vector<2x16xf32>
    %c15 = arith.constant 15 : index
    %79 = memref.load %arg2[%c15] : memref<96xf32, #tpu.memory_space<smem>>
    %80 = vector.broadcast %79 : f32 to vector<2x16xf32>
    %81 = arith.mulf %80, %8 : vector<2x16xf32>
    %82 = arith.addf %78, %81 : vector<2x16xf32>
    %c16_5 = arith.constant 16 : index
    %83 = memref.load %arg2[%c16_5] : memref<96xf32, #tpu.memory_space<smem>>
    %84 = vector.broadcast %83 : f32 to vector<2x16xf32>
    %85 = arith.mulf %84, %9 : vector<2x16xf32>
    %86 = arith.addf %82, %85 : vector<2x16xf32>
    %c17 = arith.constant 17 : index
    %87 = memref.load %arg2[%c17] : memref<96xf32, #tpu.memory_space<smem>>
    %88 = vector.broadcast %87 : f32 to vector<2x16xf32>
    %89 = arith.mulf %88, %10 : vector<2x16xf32>
    %90 = arith.addf %86, %89 : vector<2x16xf32>
    %c18 = arith.constant 18 : index
    %91 = memref.load %arg2[%c18] : memref<96xf32, #tpu.memory_space<smem>>
    %92 = vector.broadcast %91 : f32 to vector<2x16xf32>
    %93 = arith.mulf %92, %13 : vector<2x16xf32>
    %94 = arith.addf %90, %93 : vector<2x16xf32>
    %c19 = arith.constant 19 : index
    %95 = memref.load %arg2[%c19] : memref<96xf32, #tpu.memory_space<smem>>
    %96 = vector.broadcast %95 : f32 to vector<2x16xf32>
    %97 = arith.mulf %96, %14 : vector<2x16xf32>
    %98 = arith.addf %94, %97 : vector<2x16xf32>
    %c20 = arith.constant 20 : index
    %99 = memref.load %arg2[%c20] : memref<96xf32, #tpu.memory_space<smem>>
    %100 = vector.broadcast %99 : f32 to vector<2x16xf32>
    %101 = arith.mulf %100, %15 : vector<2x16xf32>
    %102 = arith.addf %98, %101 : vector<2x16xf32>
    %c21 = arith.constant 21 : index
    %103 = memref.load %arg2[%c21] : memref<96xf32, #tpu.memory_space<smem>>
    %104 = vector.broadcast %103 : f32 to vector<2x16xf32>
    %105 = arith.mulf %104, %18 : vector<2x16xf32>
    %106 = arith.addf %102, %105 : vector<2x16xf32>
    %c22 = arith.constant 22 : index
    %107 = memref.load %arg2[%c22] : memref<96xf32, #tpu.memory_space<smem>>
    %108 = vector.broadcast %107 : f32 to vector<2x16xf32>
    %109 = arith.mulf %108, %19 : vector<2x16xf32>
    %110 = arith.addf %106, %109 : vector<2x16xf32>
    %c23 = arith.constant 23 : index
    %111 = memref.load %arg2[%c23] : memref<96xf32, #tpu.memory_space<smem>>
    %112 = vector.broadcast %111 : f32 to vector<2x16xf32>
    %113 = arith.mulf %112, %20 : vector<2x16xf32>
    %114 = arith.addf %110, %113 : vector<2x16xf32>
    %c24 = arith.constant 24 : index
    %115 = memref.load %arg2[%c24] : memref<96xf32, #tpu.memory_space<smem>>
    %116 = vector.broadcast %115 : f32 to vector<2x16xf32>
    %117 = arith.mulf %116, %3 : vector<2x16xf32>
    %c25 = arith.constant 25 : index
    %118 = memref.load %arg2[%c25] : memref<96xf32, #tpu.memory_space<smem>>
    %119 = vector.broadcast %118 : f32 to vector<2x16xf32>
    %120 = arith.mulf %119, %4 : vector<2x16xf32>
    %121 = arith.addf %117, %120 : vector<2x16xf32>
    %c26 = arith.constant 26 : index
    %122 = memref.load %arg2[%c26] : memref<96xf32, #tpu.memory_space<smem>>
    %123 = vector.broadcast %122 : f32 to vector<2x16xf32>
    %124 = arith.mulf %123, %5 : vector<2x16xf32>
    %125 = arith.addf %121, %124 : vector<2x16xf32>
    %c27 = arith.constant 27 : index
    %126 = memref.load %arg2[%c27] : memref<96xf32, #tpu.memory_space<smem>>
    %127 = vector.broadcast %126 : f32 to vector<2x16xf32>
    %128 = arith.mulf %127, %8 : vector<2x16xf32>
    %129 = arith.addf %125, %128 : vector<2x16xf32>
    %c28 = arith.constant 28 : index
    %130 = memref.load %arg2[%c28] : memref<96xf32, #tpu.memory_space<smem>>
    %131 = vector.broadcast %130 : f32 to vector<2x16xf32>
    %132 = arith.mulf %131, %9 : vector<2x16xf32>
    %133 = arith.addf %129, %132 : vector<2x16xf32>
    %c29 = arith.constant 29 : index
    %134 = memref.load %arg2[%c29] : memref<96xf32, #tpu.memory_space<smem>>
    %135 = vector.broadcast %134 : f32 to vector<2x16xf32>
    %136 = arith.mulf %135, %10 : vector<2x16xf32>
    %137 = arith.addf %133, %136 : vector<2x16xf32>
    %c30 = arith.constant 30 : index
    %138 = memref.load %arg2[%c30] : memref<96xf32, #tpu.memory_space<smem>>
    %139 = vector.broadcast %138 : f32 to vector<2x16xf32>
    %140 = arith.mulf %139, %13 : vector<2x16xf32>
    %141 = arith.addf %137, %140 : vector<2x16xf32>
    %c31 = arith.constant 31 : index
    %142 = memref.load %arg2[%c31] : memref<96xf32, #tpu.memory_space<smem>>
    %143 = vector.broadcast %142 : f32 to vector<2x16xf32>
    %144 = arith.mulf %143, %14 : vector<2x16xf32>
    %145 = arith.addf %141, %144 : vector<2x16xf32>
    %c32_6 = arith.constant 32 : index
    %146 = memref.load %arg2[%c32_6] : memref<96xf32, #tpu.memory_space<smem>>
    %147 = vector.broadcast %146 : f32 to vector<2x16xf32>
    %148 = arith.mulf %147, %15 : vector<2x16xf32>
    %149 = arith.addf %145, %148 : vector<2x16xf32>
    %c33 = arith.constant 33 : index
    %150 = memref.load %arg2[%c33] : memref<96xf32, #tpu.memory_space<smem>>
    %151 = vector.broadcast %150 : f32 to vector<2x16xf32>
    %152 = arith.mulf %151, %18 : vector<2x16xf32>
    %153 = arith.addf %149, %152 : vector<2x16xf32>
    %c34 = arith.constant 34 : index
    %154 = memref.load %arg2[%c34] : memref<96xf32, #tpu.memory_space<smem>>
    %155 = vector.broadcast %154 : f32 to vector<2x16xf32>
    %156 = arith.mulf %155, %19 : vector<2x16xf32>
    %157 = arith.addf %153, %156 : vector<2x16xf32>
    %c35 = arith.constant 35 : index
    %158 = memref.load %arg2[%c35] : memref<96xf32, #tpu.memory_space<smem>>
    %159 = vector.broadcast %158 : f32 to vector<2x16xf32>
    %160 = arith.mulf %159, %20 : vector<2x16xf32>
    %161 = arith.addf %157, %160 : vector<2x16xf32>
    %c36 = arith.constant 36 : index
    %162 = memref.load %arg2[%c36] : memref<96xf32, #tpu.memory_space<smem>>
    %163 = vector.broadcast %162 : f32 to vector<2x16xf32>
    %164 = arith.mulf %163, %3 : vector<2x16xf32>
    %c37 = arith.constant 37 : index
    %165 = memref.load %arg2[%c37] : memref<96xf32, #tpu.memory_space<smem>>
    %166 = vector.broadcast %165 : f32 to vector<2x16xf32>
    %167 = arith.mulf %166, %4 : vector<2x16xf32>
    %168 = arith.addf %164, %167 : vector<2x16xf32>
    %c38 = arith.constant 38 : index
    %169 = memref.load %arg2[%c38] : memref<96xf32, #tpu.memory_space<smem>>
    %170 = vector.broadcast %169 : f32 to vector<2x16xf32>
    %171 = arith.mulf %170, %5 : vector<2x16xf32>
    %172 = arith.addf %168, %171 : vector<2x16xf32>
    %c39 = arith.constant 39 : index
    %173 = memref.load %arg2[%c39] : memref<96xf32, #tpu.memory_space<smem>>
    %174 = vector.broadcast %173 : f32 to vector<2x16xf32>
    %175 = arith.mulf %174, %8 : vector<2x16xf32>
    %176 = arith.addf %172, %175 : vector<2x16xf32>
    %c40 = arith.constant 40 : index
    %177 = memref.load %arg2[%c40] : memref<96xf32, #tpu.memory_space<smem>>
    %178 = vector.broadcast %177 : f32 to vector<2x16xf32>
    %179 = arith.mulf %178, %9 : vector<2x16xf32>
    %180 = arith.addf %176, %179 : vector<2x16xf32>
    %c41 = arith.constant 41 : index
    %181 = memref.load %arg2[%c41] : memref<96xf32, #tpu.memory_space<smem>>
    %182 = vector.broadcast %181 : f32 to vector<2x16xf32>
    %183 = arith.mulf %182, %10 : vector<2x16xf32>
    %184 = arith.addf %180, %183 : vector<2x16xf32>
    %c42 = arith.constant 42 : index
    %185 = memref.load %arg2[%c42] : memref<96xf32, #tpu.memory_space<smem>>
    %186 = vector.broadcast %185 : f32 to vector<2x16xf32>
    %187 = arith.mulf %186, %13 : vector<2x16xf32>
    %188 = arith.addf %184, %187 : vector<2x16xf32>
    %c43 = arith.constant 43 : index
    %189 = memref.load %arg2[%c43] : memref<96xf32, #tpu.memory_space<smem>>
    %190 = vector.broadcast %189 : f32 to vector<2x16xf32>
    %191 = arith.mulf %190, %14 : vector<2x16xf32>
    %192 = arith.addf %188, %191 : vector<2x16xf32>
    %c44 = arith.constant 44 : index
    %193 = memref.load %arg2[%c44] : memref<96xf32, #tpu.memory_space<smem>>
    %194 = vector.broadcast %193 : f32 to vector<2x16xf32>
    %195 = arith.mulf %194, %15 : vector<2x16xf32>
    %196 = arith.addf %192, %195 : vector<2x16xf32>
    %c45 = arith.constant 45 : index
    %197 = memref.load %arg2[%c45] : memref<96xf32, #tpu.memory_space<smem>>
    %198 = vector.broadcast %197 : f32 to vector<2x16xf32>
    %199 = arith.mulf %198, %18 : vector<2x16xf32>
    %200 = arith.addf %196, %199 : vector<2x16xf32>
    %c46 = arith.constant 46 : index
    %201 = memref.load %arg2[%c46] : memref<96xf32, #tpu.memory_space<smem>>
    %202 = vector.broadcast %201 : f32 to vector<2x16xf32>
    %203 = arith.mulf %202, %19 : vector<2x16xf32>
    %204 = arith.addf %200, %203 : vector<2x16xf32>
    %c47 = arith.constant 47 : index
    %205 = memref.load %arg2[%c47] : memref<96xf32, #tpu.memory_space<smem>>
    %206 = vector.broadcast %205 : f32 to vector<2x16xf32>
    %207 = arith.mulf %206, %20 : vector<2x16xf32>
    %208 = arith.addf %204, %207 : vector<2x16xf32>
    %c48_7 = arith.constant 48 : index
    %209 = memref.load %arg2[%c48_7] : memref<96xf32, #tpu.memory_space<smem>>
    %210 = vector.broadcast %209 : f32 to vector<2x16xf32>
    %211 = arith.mulf %210, %3 : vector<2x16xf32>
    %c49 = arith.constant 49 : index
    %212 = memref.load %arg2[%c49] : memref<96xf32, #tpu.memory_space<smem>>
    %213 = vector.broadcast %212 : f32 to vector<2x16xf32>
    %214 = arith.mulf %213, %4 : vector<2x16xf32>
    %215 = arith.addf %211, %214 : vector<2x16xf32>
    %c50 = arith.constant 50 : index
    %216 = memref.load %arg2[%c50] : memref<96xf32, #tpu.memory_space<smem>>
    %217 = vector.broadcast %216 : f32 to vector<2x16xf32>
    %218 = arith.mulf %217, %5 : vector<2x16xf32>
    %219 = arith.addf %215, %218 : vector<2x16xf32>
    %c51 = arith.constant 51 : index
    %220 = memref.load %arg2[%c51] : memref<96xf32, #tpu.memory_space<smem>>
    %221 = vector.broadcast %220 : f32 to vector<2x16xf32>
    %222 = arith.mulf %221, %8 : vector<2x16xf32>
    %223 = arith.addf %219, %222 : vector<2x16xf32>
    %c52 = arith.constant 52 : index
    %224 = memref.load %arg2[%c52] : memref<96xf32, #tpu.memory_space<smem>>
    %225 = vector.broadcast %224 : f32 to vector<2x16xf32>
    %226 = arith.mulf %225, %9 : vector<2x16xf32>
    %227 = arith.addf %223, %226 : vector<2x16xf32>
    %c53 = arith.constant 53 : index
    %228 = memref.load %arg2[%c53] : memref<96xf32, #tpu.memory_space<smem>>
    %229 = vector.broadcast %228 : f32 to vector<2x16xf32>
    %230 = arith.mulf %229, %10 : vector<2x16xf32>
    %231 = arith.addf %227, %230 : vector<2x16xf32>
    %c54 = arith.constant 54 : index
    %232 = memref.load %arg2[%c54] : memref<96xf32, #tpu.memory_space<smem>>
    %233 = vector.broadcast %232 : f32 to vector<2x16xf32>
    %234 = arith.mulf %233, %13 : vector<2x16xf32>
    %235 = arith.addf %231, %234 : vector<2x16xf32>
    %c55 = arith.constant 55 : index
    %236 = memref.load %arg2[%c55] : memref<96xf32, #tpu.memory_space<smem>>
    %237 = vector.broadcast %236 : f32 to vector<2x16xf32>
    %238 = arith.mulf %237, %14 : vector<2x16xf32>
    %239 = arith.addf %235, %238 : vector<2x16xf32>
    %c56 = arith.constant 56 : index
    %240 = memref.load %arg2[%c56] : memref<96xf32, #tpu.memory_space<smem>>
    %241 = vector.broadcast %240 : f32 to vector<2x16xf32>
    %242 = arith.mulf %241, %15 : vector<2x16xf32>
    %243 = arith.addf %239, %242 : vector<2x16xf32>
    %c57 = arith.constant 57 : index
    %244 = memref.load %arg2[%c57] : memref<96xf32, #tpu.memory_space<smem>>
    %245 = vector.broadcast %244 : f32 to vector<2x16xf32>
    %246 = arith.mulf %245, %18 : vector<2x16xf32>
    %247 = arith.addf %243, %246 : vector<2x16xf32>
    %c58 = arith.constant 58 : index
    %248 = memref.load %arg2[%c58] : memref<96xf32, #tpu.memory_space<smem>>
    %249 = vector.broadcast %248 : f32 to vector<2x16xf32>
    %250 = arith.mulf %249, %19 : vector<2x16xf32>
    %251 = arith.addf %247, %250 : vector<2x16xf32>
    %c59 = arith.constant 59 : index
    %252 = memref.load %arg2[%c59] : memref<96xf32, #tpu.memory_space<smem>>
    %253 = vector.broadcast %252 : f32 to vector<2x16xf32>
    %254 = arith.mulf %253, %20 : vector<2x16xf32>
    %255 = arith.addf %251, %254 : vector<2x16xf32>
    %c60 = arith.constant 60 : index
    %256 = memref.load %arg2[%c60] : memref<96xf32, #tpu.memory_space<smem>>
    %257 = vector.broadcast %256 : f32 to vector<2x16xf32>
    %258 = arith.mulf %257, %3 : vector<2x16xf32>
    %c61 = arith.constant 61 : index
    %259 = memref.load %arg2[%c61] : memref<96xf32, #tpu.memory_space<smem>>
    %260 = vector.broadcast %259 : f32 to vector<2x16xf32>
    %261 = arith.mulf %260, %4 : vector<2x16xf32>
    %262 = arith.addf %258, %261 : vector<2x16xf32>
    %c62 = arith.constant 62 : index
    %263 = memref.load %arg2[%c62] : memref<96xf32, #tpu.memory_space<smem>>
    %264 = vector.broadcast %263 : f32 to vector<2x16xf32>
    %265 = arith.mulf %264, %5 : vector<2x16xf32>
    %266 = arith.addf %262, %265 : vector<2x16xf32>
    %c63 = arith.constant 63 : index
    %267 = memref.load %arg2[%c63] : memref<96xf32, #tpu.memory_space<smem>>
    %268 = vector.broadcast %267 : f32 to vector<2x16xf32>
    %269 = arith.mulf %268, %8 : vector<2x16xf32>
    %270 = arith.addf %266, %269 : vector<2x16xf32>
    %c64 = arith.constant 64 : index
    %271 = memref.load %arg2[%c64] : memref<96xf32, #tpu.memory_space<smem>>
    %272 = vector.broadcast %271 : f32 to vector<2x16xf32>
    %273 = arith.mulf %272, %9 : vector<2x16xf32>
    %274 = arith.addf %270, %273 : vector<2x16xf32>
    %c65 = arith.constant 65 : index
    %275 = memref.load %arg2[%c65] : memref<96xf32, #tpu.memory_space<smem>>
    %276 = vector.broadcast %275 : f32 to vector<2x16xf32>
    %277 = arith.mulf %276, %10 : vector<2x16xf32>
    %278 = arith.addf %274, %277 : vector<2x16xf32>
    %c66 = arith.constant 66 : index
    %279 = memref.load %arg2[%c66] : memref<96xf32, #tpu.memory_space<smem>>
    %280 = vector.broadcast %279 : f32 to vector<2x16xf32>
    %281 = arith.mulf %280, %13 : vector<2x16xf32>
    %282 = arith.addf %278, %281 : vector<2x16xf32>
    %c67 = arith.constant 67 : index
    %283 = memref.load %arg2[%c67] : memref<96xf32, #tpu.memory_space<smem>>
    %284 = vector.broadcast %283 : f32 to vector<2x16xf32>
    %285 = arith.mulf %284, %14 : vector<2x16xf32>
    %286 = arith.addf %282, %285 : vector<2x16xf32>
    %c68 = arith.constant 68 : index
    %287 = memref.load %arg2[%c68] : memref<96xf32, #tpu.memory_space<smem>>
    %288 = vector.broadcast %287 : f32 to vector<2x16xf32>
    %289 = arith.mulf %288, %15 : vector<2x16xf32>
    %290 = arith.addf %286, %289 : vector<2x16xf32>
    %c69 = arith.constant 69 : index
    %291 = memref.load %arg2[%c69] : memref<96xf32, #tpu.memory_space<smem>>
    %292 = vector.broadcast %291 : f32 to vector<2x16xf32>
    %293 = arith.mulf %292, %18 : vector<2x16xf32>
    %294 = arith.addf %290, %293 : vector<2x16xf32>
    %c70 = arith.constant 70 : index
    %295 = memref.load %arg2[%c70] : memref<96xf32, #tpu.memory_space<smem>>
    %296 = vector.broadcast %295 : f32 to vector<2x16xf32>
    %297 = arith.mulf %296, %19 : vector<2x16xf32>
    %298 = arith.addf %294, %297 : vector<2x16xf32>
    %c71 = arith.constant 71 : index
    %299 = memref.load %arg2[%c71] : memref<96xf32, #tpu.memory_space<smem>>
    %300 = vector.broadcast %299 : f32 to vector<2x16xf32>
    %301 = arith.mulf %300, %20 : vector<2x16xf32>
    %302 = arith.addf %298, %301 : vector<2x16xf32>
    %c72 = arith.constant 72 : index
    %303 = memref.load %arg2[%c72] : memref<96xf32, #tpu.memory_space<smem>>
    %304 = vector.broadcast %303 : f32 to vector<2x16xf32>
    %305 = arith.mulf %304, %3 : vector<2x16xf32>
    %c73 = arith.constant 73 : index
    %306 = memref.load %arg2[%c73] : memref<96xf32, #tpu.memory_space<smem>>
    %307 = vector.broadcast %306 : f32 to vector<2x16xf32>
    %308 = arith.mulf %307, %4 : vector<2x16xf32>
    %309 = arith.addf %305, %308 : vector<2x16xf32>
    %c74 = arith.constant 74 : index
    %310 = memref.load %arg2[%c74] : memref<96xf32, #tpu.memory_space<smem>>
    %311 = vector.broadcast %310 : f32 to vector<2x16xf32>
    %312 = arith.mulf %311, %5 : vector<2x16xf32>
    %313 = arith.addf %309, %312 : vector<2x16xf32>
    %c75 = arith.constant 75 : index
    %314 = memref.load %arg2[%c75] : memref<96xf32, #tpu.memory_space<smem>>
    %315 = vector.broadcast %314 : f32 to vector<2x16xf32>
    %316 = arith.mulf %315, %8 : vector<2x16xf32>
    %317 = arith.addf %313, %316 : vector<2x16xf32>
    %c76 = arith.constant 76 : index
    %318 = memref.load %arg2[%c76] : memref<96xf32, #tpu.memory_space<smem>>
    %319 = vector.broadcast %318 : f32 to vector<2x16xf32>
    %320 = arith.mulf %319, %9 : vector<2x16xf32>
    %321 = arith.addf %317, %320 : vector<2x16xf32>
    %c77 = arith.constant 77 : index
    %322 = memref.load %arg2[%c77] : memref<96xf32, #tpu.memory_space<smem>>
    %323 = vector.broadcast %322 : f32 to vector<2x16xf32>
    %324 = arith.mulf %323, %10 : vector<2x16xf32>
    %325 = arith.addf %321, %324 : vector<2x16xf32>
    %c78 = arith.constant 78 : index
    %326 = memref.load %arg2[%c78] : memref<96xf32, #tpu.memory_space<smem>>
    %327 = vector.broadcast %326 : f32 to vector<2x16xf32>
    %328 = arith.mulf %327, %13 : vector<2x16xf32>
    %329 = arith.addf %325, %328 : vector<2x16xf32>
    %c79 = arith.constant 79 : index
    %330 = memref.load %arg2[%c79] : memref<96xf32, #tpu.memory_space<smem>>
    %331 = vector.broadcast %330 : f32 to vector<2x16xf32>
    %332 = arith.mulf %331, %14 : vector<2x16xf32>
    %333 = arith.addf %329, %332 : vector<2x16xf32>
    %c80 = arith.constant 80 : index
    %334 = memref.load %arg2[%c80] : memref<96xf32, #tpu.memory_space<smem>>
    %335 = vector.broadcast %334 : f32 to vector<2x16xf32>
    %336 = arith.mulf %335, %15 : vector<2x16xf32>
    %337 = arith.addf %333, %336 : vector<2x16xf32>
    %c81 = arith.constant 81 : index
    %338 = memref.load %arg2[%c81] : memref<96xf32, #tpu.memory_space<smem>>
    %339 = vector.broadcast %338 : f32 to vector<2x16xf32>
    %340 = arith.mulf %339, %18 : vector<2x16xf32>
    %341 = arith.addf %337, %340 : vector<2x16xf32>
    %c82 = arith.constant 82 : index
    %342 = memref.load %arg2[%c82] : memref<96xf32, #tpu.memory_space<smem>>
    %343 = vector.broadcast %342 : f32 to vector<2x16xf32>
    %344 = arith.mulf %343, %19 : vector<2x16xf32>
    %345 = arith.addf %341, %344 : vector<2x16xf32>
    %c83 = arith.constant 83 : index
    %346 = memref.load %arg2[%c83] : memref<96xf32, #tpu.memory_space<smem>>
    %347 = vector.broadcast %346 : f32 to vector<2x16xf32>
    %348 = arith.mulf %347, %20 : vector<2x16xf32>
    %349 = arith.addf %345, %348 : vector<2x16xf32>
    %c84 = arith.constant 84 : index
    %350 = memref.load %arg2[%c84] : memref<96xf32, #tpu.memory_space<smem>>
    %351 = vector.broadcast %350 : f32 to vector<2x16xf32>
    %352 = arith.mulf %351, %3 : vector<2x16xf32>
    %c85 = arith.constant 85 : index
    %353 = memref.load %arg2[%c85] : memref<96xf32, #tpu.memory_space<smem>>
    %354 = vector.broadcast %353 : f32 to vector<2x16xf32>
    %355 = arith.mulf %354, %4 : vector<2x16xf32>
    %356 = arith.addf %352, %355 : vector<2x16xf32>
    %c86 = arith.constant 86 : index
    %357 = memref.load %arg2[%c86] : memref<96xf32, #tpu.memory_space<smem>>
    %358 = vector.broadcast %357 : f32 to vector<2x16xf32>
    %359 = arith.mulf %358, %5 : vector<2x16xf32>
    %360 = arith.addf %356, %359 : vector<2x16xf32>
    %c87 = arith.constant 87 : index
    %361 = memref.load %arg2[%c87] : memref<96xf32, #tpu.memory_space<smem>>
    %362 = vector.broadcast %361 : f32 to vector<2x16xf32>
    %363 = arith.mulf %362, %8 : vector<2x16xf32>
    %364 = arith.addf %360, %363 : vector<2x16xf32>
    %c88 = arith.constant 88 : index
    %365 = memref.load %arg2[%c88] : memref<96xf32, #tpu.memory_space<smem>>
    %366 = vector.broadcast %365 : f32 to vector<2x16xf32>
    %367 = arith.mulf %366, %9 : vector<2x16xf32>
    %368 = arith.addf %364, %367 : vector<2x16xf32>
    %c89 = arith.constant 89 : index
    %369 = memref.load %arg2[%c89] : memref<96xf32, #tpu.memory_space<smem>>
    %370 = vector.broadcast %369 : f32 to vector<2x16xf32>
    %371 = arith.mulf %370, %10 : vector<2x16xf32>
    %372 = arith.addf %368, %371 : vector<2x16xf32>
    %c90 = arith.constant 90 : index
    %373 = memref.load %arg2[%c90] : memref<96xf32, #tpu.memory_space<smem>>
    %374 = vector.broadcast %373 : f32 to vector<2x16xf32>
    %375 = arith.mulf %374, %13 : vector<2x16xf32>
    %376 = arith.addf %372, %375 : vector<2x16xf32>
    %c91 = arith.constant 91 : index
    %377 = memref.load %arg2[%c91] : memref<96xf32, #tpu.memory_space<smem>>
    %378 = vector.broadcast %377 : f32 to vector<2x16xf32>
    %379 = arith.mulf %378, %14 : vector<2x16xf32>
    %380 = arith.addf %376, %379 : vector<2x16xf32>
    %c92 = arith.constant 92 : index
    %381 = memref.load %arg2[%c92] : memref<96xf32, #tpu.memory_space<smem>>
    %382 = vector.broadcast %381 : f32 to vector<2x16xf32>
    %383 = arith.mulf %382, %15 : vector<2x16xf32>
    %384 = arith.addf %380, %383 : vector<2x16xf32>
    %c93 = arith.constant 93 : index
    %385 = memref.load %arg2[%c93] : memref<96xf32, #tpu.memory_space<smem>>
    %386 = vector.broadcast %385 : f32 to vector<2x16xf32>
    %387 = arith.mulf %386, %18 : vector<2x16xf32>
    %388 = arith.addf %384, %387 : vector<2x16xf32>
    %c94 = arith.constant 94 : index
    %389 = memref.load %arg2[%c94] : memref<96xf32, #tpu.memory_space<smem>>
    %390 = vector.broadcast %389 : f32 to vector<2x16xf32>
    %391 = arith.mulf %390, %19 : vector<2x16xf32>
    %392 = arith.addf %388, %391 : vector<2x16xf32>
    %c95 = arith.constant 95 : index
    %393 = memref.load %arg2[%c95] : memref<96xf32, #tpu.memory_space<smem>>
    %394 = vector.broadcast %393 : f32 to vector<2x16xf32>
    %395 = arith.mulf %394, %20 : vector<2x16xf32>
    %396 = arith.addf %392, %395 : vector<2x16xf32>
    %c0_8 = arith.constant 0 : index
    %397 = memref.load %arg3[%c0_8] : memref<8xf32, #tpu.memory_space<smem>>
    %398 = vector.broadcast %397 : f32 to vector<2x16xf32>
    %399 = arith.mulf %67, %398 : vector<2x16xf32>
    %c0_9 = arith.constant 0 : index
    %400 = memref.load %arg4[%c0_9] : memref<8xf32, #tpu.memory_space<smem>>
    %401 = vector.broadcast %400 : f32 to vector<2x16xf32>
    %402 = arith.addf %399, %401 : vector<2x16xf32>
    %c1_10 = arith.constant 1 : index
    %403 = memref.load %arg3[%c1_10] : memref<8xf32, #tpu.memory_space<smem>>
    %404 = vector.broadcast %403 : f32 to vector<2x16xf32>
    %405 = arith.mulf %114, %404 : vector<2x16xf32>
    %c1_11 = arith.constant 1 : index
    %406 = memref.load %arg4[%c1_11] : memref<8xf32, #tpu.memory_space<smem>>
    %407 = vector.broadcast %406 : f32 to vector<2x16xf32>
    %408 = arith.addf %405, %407 : vector<2x16xf32>
    %c2_12 = arith.constant 2 : index
    %409 = memref.load %arg3[%c2_12] : memref<8xf32, #tpu.memory_space<smem>>
    %410 = vector.broadcast %409 : f32 to vector<2x16xf32>
    %411 = arith.mulf %161, %410 : vector<2x16xf32>
    %c2_13 = arith.constant 2 : index
    %412 = memref.load %arg4[%c2_13] : memref<8xf32, #tpu.memory_space<smem>>
    %413 = vector.broadcast %412 : f32 to vector<2x16xf32>
    %414 = arith.addf %411, %413 : vector<2x16xf32>
    %c3_14 = arith.constant 3 : index
    %415 = memref.load %arg3[%c3_14] : memref<8xf32, #tpu.memory_space<smem>>
    %416 = vector.broadcast %415 : f32 to vector<2x16xf32>
    %417 = arith.mulf %208, %416 : vector<2x16xf32>
    %c3_15 = arith.constant 3 : index
    %418 = memref.load %arg4[%c3_15] : memref<8xf32, #tpu.memory_space<smem>>
    %419 = vector.broadcast %418 : f32 to vector<2x16xf32>
    %420 = arith.addf %417, %419 : vector<2x16xf32>
    %c4_16 = arith.constant 4 : index
    %421 = memref.load %arg3[%c4_16] : memref<8xf32, #tpu.memory_space<smem>>
    %422 = vector.broadcast %421 : f32 to vector<2x16xf32>
    %423 = arith.mulf %255, %422 : vector<2x16xf32>
    %c4_17 = arith.constant 4 : index
    %424 = memref.load %arg4[%c4_17] : memref<8xf32, #tpu.memory_space<smem>>
    %425 = vector.broadcast %424 : f32 to vector<2x16xf32>
    %426 = arith.addf %423, %425 : vector<2x16xf32>
    %c5_18 = arith.constant 5 : index
    %427 = memref.load %arg3[%c5_18] : memref<8xf32, #tpu.memory_space<smem>>
    %428 = vector.broadcast %427 : f32 to vector<2x16xf32>
    %429 = arith.mulf %302, %428 : vector<2x16xf32>
    %c5_19 = arith.constant 5 : index
    %430 = memref.load %arg4[%c5_19] : memref<8xf32, #tpu.memory_space<smem>>
    %431 = vector.broadcast %430 : f32 to vector<2x16xf32>
    %432 = arith.addf %429, %431 : vector<2x16xf32>
    %c6_20 = arith.constant 6 : index
    %433 = memref.load %arg3[%c6_20] : memref<8xf32, #tpu.memory_space<smem>>
    %434 = vector.broadcast %433 : f32 to vector<2x16xf32>
    %435 = arith.mulf %349, %434 : vector<2x16xf32>
    %c6_21 = arith.constant 6 : index
    %436 = memref.load %arg4[%c6_21] : memref<8xf32, #tpu.memory_space<smem>>
    %437 = vector.broadcast %436 : f32 to vector<2x16xf32>
    %438 = arith.addf %435, %437 : vector<2x16xf32>
    %c7_22 = arith.constant 7 : index
    %439 = memref.load %arg3[%c7_22] : memref<8xf32, #tpu.memory_space<smem>>
    %440 = vector.broadcast %439 : f32 to vector<2x16xf32>
    %441 = arith.mulf %396, %440 : vector<2x16xf32>
    %c7_23 = arith.constant 7 : index
    %442 = memref.load %arg4[%c7_23] : memref<8xf32, #tpu.memory_space<smem>>
    %443 = vector.broadcast %442 : f32 to vector<2x16xf32>
    %444 = arith.addf %441, %443 : vector<2x16xf32>
    %445 = tpu.concatenate %402, %408, %414, %420, %426, %432, %438, %444 in 1 : vector<2x16xf32>, vector<2x16xf32>, vector<2x16xf32>, vector<2x16xf32>, vector<2x16xf32>, vector<2x16xf32>, vector<2x16xf32>, vector<2x16xf32> -> vector<2x128xf32>
    %c0_24 = arith.constant 0 : index
    %c0_25 = arith.constant 0 : index
    %446 = vector.load %arg5[%c0_24, %c0_25] : memref<2x128xf32, #tpu.memory_space<vmem>>, vector<2x128xf32>
    %cst_26 = arith.constant 8.000000e-01 : f32
    %447 = vector.broadcast %cst_26 : f32 to vector<2x128xf32>
    %448 = arith.cmpf olt, %446, %447 : vector<2x128xf32>
    %cst_27 = arith.constant 1.250000e+00 : f32
    %449 = vector.broadcast %cst_27 : f32 to vector<2x128xf32>
    %450 = arith.mulf %445, %449 : vector<2x128xf32>
    %cst_28 = arith.constant 0.000000e+00 : f32
    %451 = vector.broadcast %cst_28 : f32 to vector<2x128xf32>
    %452 = arith.select %448, %450, %451 : vector<2x128xi1>, vector<2x128xf32>
    %cst_29 = arith.constant 0.000000e+00 : f32
    %453 = vector.broadcast %cst_29 : f32 to vector<2x128xf32>
    %454 = arith.cmpf ogt, %452, %453 : vector<2x128xf32>
    %455 = math.exp %452 : vector<2x128xf32>
    %cst_30 = arith.constant 1.000000e+00 : f32
    %456 = vector.broadcast %cst_30 : f32 to vector<2x128xf32>
    %457 = arith.subf %455, %456 : vector<2x128xf32>
    %cst_31 = arith.constant 1.67326319 : f32
    %458 = vector.broadcast %cst_31 : f32 to vector<2x128xf32>
    %459 = arith.mulf %458, %457 : vector<2x128xf32>
    %460 = arith.select %454, %452, %459 : vector<2x128xi1>, vector<2x128xf32>
    %cst_32 = arith.constant 1.05070102 : f32
    %461 = vector.broadcast %cst_32 : f32 to vector<2x128xf32>
    %462 = arith.mulf %461, %460 : vector<2x128xf32>
    %c0_33 = arith.constant 0 : index
    %c0_34 = arith.constant 0 : index
    %463 = vector.load %arg6[%c0_33, %c0_34] : memref<2x128xf32, #tpu.memory_space<vmem>>, vector<2x128xf32>
    tpu.vector_store %arg6[%c0_33, %c0_34], %462 {strides = array<i32>} : memref<2x128xf32, #tpu.memory_space<vmem>>, vector<2x128xf32>,
    return
  }
  func.func @transform_0(%arg0: i32) -> (i32, i32) {
    %c0_i32 = arith.constant 0 : i32
    %c0_i32_0 = arith.constant 0 : i32
    return %arg0, %c0_i32 : i32, i32
  }
  func.func @transform_1(%arg0: i32) -> i32 {
    %c0_i32 = arith.constant 0 : i32
    %c0_i32_0 = arith.constant 0 : i32
    return %c0_i32 : i32
  }
  func.func @transform_2(%arg0: i32) -> i32 {
    %c0_i32 = arith.constant 0 : i32
    %c0_i32_0 = arith.constant 0 : i32
    return %c0_i32 : i32
  }
  func.func @transform_3(%arg0: i32) -> i32 {
    %c0_i32 = arith.constant 0 : i32
    %c0_i32_0 = arith.constant 0 : i32
    return %c0_i32 : i32
  }
  func.func @transform_4(%arg0: i32) -> (i32, i32) {
    %c0_i32 = arith.constant 0 : i32
    %c0_i32_0 = arith.constant 0 : i32
    return %arg0, %c0_i32 : i32, i32
  }
  func.func @transform_5(%arg0: i32) -> (i32, i32) {
    %c0_i32 = arith.constant 0 : i32
    %c0_i32_0 = arith.constant 0 : i32
    return %arg0, %c0_i32 : i32, i32
  }
}

module attributes {stable_mosaic.version = 11 : i64} {
  func.func @_stats_kernel(%arg0: i32, %arg1: i32, %arg2: memref<2x64xf32, #tpu.memory_space<vmem>>, %arg3: memref<96xf32, #tpu.memory_space<smem>>, %arg4: memref<1x1x128xf32, #tpu.memory_space<vmem>>, %arg5: memref<1x1x128xf32, #tpu.memory_space<vmem>>) attributes {dimension_semantics = [#tpu.dimension_semantics<parallel>, #tpu.dimension_semantics<arbitrary>], iteration_bounds = array<i64: 1, 1>, scalar_prefetch = 0 : i64, scratch_operands = 0 : i64, tpu.core_type = #tpu.core_type<tc>, window_params = [{transform_indices = @transform_0, window_bounds = array<i64: 2, 64>}, {transform_indices = @transform_1, window_bounds = array<i64: 96>}, {transform_indices = @transform_2, window_bounds = array<i64: 1, 1, 128>}, {transform_indices = @transform_3, window_bounds = array<i64: 1, 1, 128>}]} {
    %c0_i32 = arith.constant 0 : i32
    %0 = arith.cmpi eq, %arg1, %c0_i32 : i32
    %1 = arith.extui %0 : i1 to i32
    %c0_i32_0 = arith.constant 0 : i32
    %2 = arith.cmpi ne, %1, %c0_i32_0 : i32
    scf.if %2 {
      %cst_23 = arith.constant 0.000000e+00 : f32
      %414 = vector.broadcast %cst_23 : f32 to vector<1x1x128xf32>
      %c0_24 = arith.constant 0 : index
      %c0_25 = arith.constant 0 : index
      %c0_26 = arith.constant 0 : index
      %415 = vector.load %arg4[%c0_24, %c0_25, %c0_26] : memref<1x1x128xf32, #tpu.memory_space<vmem>>, vector<1x1x128xf32>
      tpu.vector_store %arg4[%c0_24, %c0_25, %c0_26], %414 {strides = array<i32>} : memref<1x1x128xf32, #tpu.memory_space<vmem>>, vector<1x1x128xf32>,
      %cst_27 = arith.constant 0.000000e+00 : f32
      %416 = vector.broadcast %cst_27 : f32 to vector<1x1x128xf32>
      %c0_28 = arith.constant 0 : index
      %c0_29 = arith.constant 0 : index
      %c0_30 = arith.constant 0 : index
      %417 = vector.load %arg5[%c0_28, %c0_29, %c0_30] : memref<1x1x128xf32, #tpu.memory_space<vmem>>, vector<1x1x128xf32>
      tpu.vector_store %arg5[%c0_28, %c0_29, %c0_30], %416 {strides = array<i32>} : memref<1x1x128xf32, #tpu.memory_space<vmem>>, vector<1x1x128xf32>,
    } else {
    }
    %cst = arith.constant 0.000000e+00 : f32
    %3 = vector.broadcast %cst : f32 to vector<2x1xf32>
    %c0 = arith.constant 0 : index
    %c0_1 = arith.constant 0 : index
    %4 = vector.load %arg2[%c0, %c0_1] : memref<2x64xf32, #tpu.memory_space<vmem>>, vector<2x16xf32>
    %5 = tpu.concatenate %3, %4, %3 in 1 : vector<2x1xf32>, vector<2x16xf32>, vector<2x1xf32> -> vector<2x18xf32>
    %6 = vector.extract_strided_slice %5 {offsets = [0, 0], sizes = [2, 16], strides = [1, 1]} : vector<2x18xf32> to vector<2x16xf32>
    %7 = vector.extract_strided_slice %5 {offsets = [0, 1], sizes = [2, 16], strides = [1, 1]} : vector<2x18xf32> to vector<2x16xf32>
    %8 = vector.extract_strided_slice %5 {offsets = [0, 2], sizes = [2, 16], strides = [1, 1]} : vector<2x18xf32> to vector<2x16xf32>
    %c0_2 = arith.constant 0 : index
    %c16 = arith.constant 16 : index
    %9 = vector.load %arg2[%c0_2, %c16] : memref<2x64xf32, #tpu.memory_space<vmem>>, vector<2x16xf32>
    %10 = tpu.concatenate %3, %9, %3 in 1 : vector<2x1xf32>, vector<2x16xf32>, vector<2x1xf32> -> vector<2x18xf32>
    %11 = vector.extract_strided_slice %10 {offsets = [0, 0], sizes = [2, 16], strides = [1, 1]} : vector<2x18xf32> to vector<2x16xf32>
    %12 = vector.extract_strided_slice %10 {offsets = [0, 1], sizes = [2, 16], strides = [1, 1]} : vector<2x18xf32> to vector<2x16xf32>
    %13 = vector.extract_strided_slice %10 {offsets = [0, 2], sizes = [2, 16], strides = [1, 1]} : vector<2x18xf32> to vector<2x16xf32>
    %c0_3 = arith.constant 0 : index
    %c32 = arith.constant 32 : index
    %14 = vector.load %arg2[%c0_3, %c32] : memref<2x64xf32, #tpu.memory_space<vmem>>, vector<2x16xf32>
    %15 = tpu.concatenate %3, %14, %3 in 1 : vector<2x1xf32>, vector<2x16xf32>, vector<2x1xf32> -> vector<2x18xf32>
    %16 = vector.extract_strided_slice %15 {offsets = [0, 0], sizes = [2, 16], strides = [1, 1]} : vector<2x18xf32> to vector<2x16xf32>
    %17 = vector.extract_strided_slice %15 {offsets = [0, 1], sizes = [2, 16], strides = [1, 1]} : vector<2x18xf32> to vector<2x16xf32>
    %18 = vector.extract_strided_slice %15 {offsets = [0, 2], sizes = [2, 16], strides = [1, 1]} : vector<2x18xf32> to vector<2x16xf32>
    %c0_4 = arith.constant 0 : index
    %c48 = arith.constant 48 : index
    %19 = vector.load %arg2[%c0_4, %c48] : memref<2x64xf32, #tpu.memory_space<vmem>>, vector<2x16xf32>
    %20 = tpu.concatenate %3, %19, %3 in 1 : vector<2x1xf32>, vector<2x16xf32>, vector<2x1xf32> -> vector<2x18xf32>
    %21 = vector.extract_strided_slice %20 {offsets = [0, 0], sizes = [2, 16], strides = [1, 1]} : vector<2x18xf32> to vector<2x16xf32>
    %22 = vector.extract_strided_slice %20 {offsets = [0, 1], sizes = [2, 16], strides = [1, 1]} : vector<2x18xf32> to vector<2x16xf32>
    %23 = vector.extract_strided_slice %20 {offsets = [0, 2], sizes = [2, 16], strides = [1, 1]} : vector<2x18xf32> to vector<2x16xf32>
    %c0_5 = arith.constant 0 : index
    %24 = memref.load %arg3[%c0_5] : memref<96xf32, #tpu.memory_space<smem>>
    %25 = vector.broadcast %24 : f32 to vector<2x16xf32>
    %26 = arith.mulf %25, %6 : vector<2x16xf32>
    %c1 = arith.constant 1 : index
    %27 = memref.load %arg3[%c1] : memref<96xf32, #tpu.memory_space<smem>>
    %28 = vector.broadcast %27 : f32 to vector<2x16xf32>
    %29 = arith.mulf %28, %7 : vector<2x16xf32>
    %30 = arith.addf %26, %29 : vector<2x16xf32>
    %c2 = arith.constant 2 : index
    %31 = memref.load %arg3[%c2] : memref<96xf32, #tpu.memory_space<smem>>
    %32 = vector.broadcast %31 : f32 to vector<2x16xf32>
    %33 = arith.mulf %32, %8 : vector<2x16xf32>
    %34 = arith.addf %30, %33 : vector<2x16xf32>
    %c3 = arith.constant 3 : index
    %35 = memref.load %arg3[%c3] : memref<96xf32, #tpu.memory_space<smem>>
    %36 = vector.broadcast %35 : f32 to vector<2x16xf32>
    %37 = arith.mulf %36, %11 : vector<2x16xf32>
    %38 = arith.addf %34, %37 : vector<2x16xf32>
    %c4 = arith.constant 4 : index
    %39 = memref.load %arg3[%c4] : memref<96xf32, #tpu.memory_space<smem>>
    %40 = vector.broadcast %39 : f32 to vector<2x16xf32>
    %41 = arith.mulf %40, %12 : vector<2x16xf32>
    %42 = arith.addf %38, %41 : vector<2x16xf32>
    %c5 = arith.constant 5 : index
    %43 = memref.load %arg3[%c5] : memref<96xf32, #tpu.memory_space<smem>>
    %44 = vector.broadcast %43 : f32 to vector<2x16xf32>
    %45 = arith.mulf %44, %13 : vector<2x16xf32>
    %46 = arith.addf %42, %45 : vector<2x16xf32>
    %c6 = arith.constant 6 : index
    %47 = memref.load %arg3[%c6] : memref<96xf32, #tpu.memory_space<smem>>
    %48 = vector.broadcast %47 : f32 to vector<2x16xf32>
    %49 = arith.mulf %48, %16 : vector<2x16xf32>
    %50 = arith.addf %46, %49 : vector<2x16xf32>
    %c7 = arith.constant 7 : index
    %51 = memref.load %arg3[%c7] : memref<96xf32, #tpu.memory_space<smem>>
    %52 = vector.broadcast %51 : f32 to vector<2x16xf32>
    %53 = arith.mulf %52, %17 : vector<2x16xf32>
    %54 = arith.addf %50, %53 : vector<2x16xf32>
    %c8 = arith.constant 8 : index
    %55 = memref.load %arg3[%c8] : memref<96xf32, #tpu.memory_space<smem>>
    %56 = vector.broadcast %55 : f32 to vector<2x16xf32>
    %57 = arith.mulf %56, %18 : vector<2x16xf32>
    %58 = arith.addf %54, %57 : vector<2x16xf32>
    %c9 = arith.constant 9 : index
    %59 = memref.load %arg3[%c9] : memref<96xf32, #tpu.memory_space<smem>>
    %60 = vector.broadcast %59 : f32 to vector<2x16xf32>
    %61 = arith.mulf %60, %21 : vector<2x16xf32>
    %62 = arith.addf %58, %61 : vector<2x16xf32>
    %c10 = arith.constant 10 : index
    %63 = memref.load %arg3[%c10] : memref<96xf32, #tpu.memory_space<smem>>
    %64 = vector.broadcast %63 : f32 to vector<2x16xf32>
    %65 = arith.mulf %64, %22 : vector<2x16xf32>
    %66 = arith.addf %62, %65 : vector<2x16xf32>
    %c11 = arith.constant 11 : index
    %67 = memref.load %arg3[%c11] : memref<96xf32, #tpu.memory_space<smem>>
    %68 = vector.broadcast %67 : f32 to vector<2x16xf32>
    %69 = arith.mulf %68, %23 : vector<2x16xf32>
    %70 = arith.addf %66, %69 : vector<2x16xf32>
    %c12 = arith.constant 12 : index
    %71 = memref.load %arg3[%c12] : memref<96xf32, #tpu.memory_space<smem>>
    %72 = vector.broadcast %71 : f32 to vector<2x16xf32>
    %73 = arith.mulf %72, %6 : vector<2x16xf32>
    %c13 = arith.constant 13 : index
    %74 = memref.load %arg3[%c13] : memref<96xf32, #tpu.memory_space<smem>>
    %75 = vector.broadcast %74 : f32 to vector<2x16xf32>
    %76 = arith.mulf %75, %7 : vector<2x16xf32>
    %77 = arith.addf %73, %76 : vector<2x16xf32>
    %c14 = arith.constant 14 : index
    %78 = memref.load %arg3[%c14] : memref<96xf32, #tpu.memory_space<smem>>
    %79 = vector.broadcast %78 : f32 to vector<2x16xf32>
    %80 = arith.mulf %79, %8 : vector<2x16xf32>
    %81 = arith.addf %77, %80 : vector<2x16xf32>
    %c15 = arith.constant 15 : index
    %82 = memref.load %arg3[%c15] : memref<96xf32, #tpu.memory_space<smem>>
    %83 = vector.broadcast %82 : f32 to vector<2x16xf32>
    %84 = arith.mulf %83, %11 : vector<2x16xf32>
    %85 = arith.addf %81, %84 : vector<2x16xf32>
    %c16_6 = arith.constant 16 : index
    %86 = memref.load %arg3[%c16_6] : memref<96xf32, #tpu.memory_space<smem>>
    %87 = vector.broadcast %86 : f32 to vector<2x16xf32>
    %88 = arith.mulf %87, %12 : vector<2x16xf32>
    %89 = arith.addf %85, %88 : vector<2x16xf32>
    %c17 = arith.constant 17 : index
    %90 = memref.load %arg3[%c17] : memref<96xf32, #tpu.memory_space<smem>>
    %91 = vector.broadcast %90 : f32 to vector<2x16xf32>
    %92 = arith.mulf %91, %13 : vector<2x16xf32>
    %93 = arith.addf %89, %92 : vector<2x16xf32>
    %c18 = arith.constant 18 : index
    %94 = memref.load %arg3[%c18] : memref<96xf32, #tpu.memory_space<smem>>
    %95 = vector.broadcast %94 : f32 to vector<2x16xf32>
    %96 = arith.mulf %95, %16 : vector<2x16xf32>
    %97 = arith.addf %93, %96 : vector<2x16xf32>
    %c19 = arith.constant 19 : index
    %98 = memref.load %arg3[%c19] : memref<96xf32, #tpu.memory_space<smem>>
    %99 = vector.broadcast %98 : f32 to vector<2x16xf32>
    %100 = arith.mulf %99, %17 : vector<2x16xf32>
    %101 = arith.addf %97, %100 : vector<2x16xf32>
    %c20 = arith.constant 20 : index
    %102 = memref.load %arg3[%c20] : memref<96xf32, #tpu.memory_space<smem>>
    %103 = vector.broadcast %102 : f32 to vector<2x16xf32>
    %104 = arith.mulf %103, %18 : vector<2x16xf32>
    %105 = arith.addf %101, %104 : vector<2x16xf32>
    %c21 = arith.constant 21 : index
    %106 = memref.load %arg3[%c21] : memref<96xf32, #tpu.memory_space<smem>>
    %107 = vector.broadcast %106 : f32 to vector<2x16xf32>
    %108 = arith.mulf %107, %21 : vector<2x16xf32>
    %109 = arith.addf %105, %108 : vector<2x16xf32>
    %c22 = arith.constant 22 : index
    %110 = memref.load %arg3[%c22] : memref<96xf32, #tpu.memory_space<smem>>
    %111 = vector.broadcast %110 : f32 to vector<2x16xf32>
    %112 = arith.mulf %111, %22 : vector<2x16xf32>
    %113 = arith.addf %109, %112 : vector<2x16xf32>
    %c23 = arith.constant 23 : index
    %114 = memref.load %arg3[%c23] : memref<96xf32, #tpu.memory_space<smem>>
    %115 = vector.broadcast %114 : f32 to vector<2x16xf32>
    %116 = arith.mulf %115, %23 : vector<2x16xf32>
    %117 = arith.addf %113, %116 : vector<2x16xf32>
    %c24 = arith.constant 24 : index
    %118 = memref.load %arg3[%c24] : memref<96xf32, #tpu.memory_space<smem>>
    %119 = vector.broadcast %118 : f32 to vector<2x16xf32>
    %120 = arith.mulf %119, %6 : vector<2x16xf32>
    %c25 = arith.constant 25 : index
    %121 = memref.load %arg3[%c25] : memref<96xf32, #tpu.memory_space<smem>>
    %122 = vector.broadcast %121 : f32 to vector<2x16xf32>
    %123 = arith.mulf %122, %7 : vector<2x16xf32>
    %124 = arith.addf %120, %123 : vector<2x16xf32>
    %c26 = arith.constant 26 : index
    %125 = memref.load %arg3[%c26] : memref<96xf32, #tpu.memory_space<smem>>
    %126 = vector.broadcast %125 : f32 to vector<2x16xf32>
    %127 = arith.mulf %126, %8 : vector<2x16xf32>
    %128 = arith.addf %124, %127 : vector<2x16xf32>
    %c27 = arith.constant 27 : index
    %129 = memref.load %arg3[%c27] : memref<96xf32, #tpu.memory_space<smem>>
    %130 = vector.broadcast %129 : f32 to vector<2x16xf32>
    %131 = arith.mulf %130, %11 : vector<2x16xf32>
    %132 = arith.addf %128, %131 : vector<2x16xf32>
    %c28 = arith.constant 28 : index
    %133 = memref.load %arg3[%c28] : memref<96xf32, #tpu.memory_space<smem>>
    %134 = vector.broadcast %133 : f32 to vector<2x16xf32>
    %135 = arith.mulf %134, %12 : vector<2x16xf32>
    %136 = arith.addf %132, %135 : vector<2x16xf32>
    %c29 = arith.constant 29 : index
    %137 = memref.load %arg3[%c29] : memref<96xf32, #tpu.memory_space<smem>>
    %138 = vector.broadcast %137 : f32 to vector<2x16xf32>
    %139 = arith.mulf %138, %13 : vector<2x16xf32>
    %140 = arith.addf %136, %139 : vector<2x16xf32>
    %c30 = arith.constant 30 : index
    %141 = memref.load %arg3[%c30] : memref<96xf32, #tpu.memory_space<smem>>
    %142 = vector.broadcast %141 : f32 to vector<2x16xf32>
    %143 = arith.mulf %142, %16 : vector<2x16xf32>
    %144 = arith.addf %140, %143 : vector<2x16xf32>
    %c31 = arith.constant 31 : index
    %145 = memref.load %arg3[%c31] : memref<96xf32, #tpu.memory_space<smem>>
    %146 = vector.broadcast %145 : f32 to vector<2x16xf32>
    %147 = arith.mulf %146, %17 : vector<2x16xf32>
    %148 = arith.addf %144, %147 : vector<2x16xf32>
    %c32_7 = arith.constant 32 : index
    %149 = memref.load %arg3[%c32_7] : memref<96xf32, #tpu.memory_space<smem>>
    %150 = vector.broadcast %149 : f32 to vector<2x16xf32>
    %151 = arith.mulf %150, %18 : vector<2x16xf32>
    %152 = arith.addf %148, %151 : vector<2x16xf32>
    %c33 = arith.constant 33 : index
    %153 = memref.load %arg3[%c33] : memref<96xf32, #tpu.memory_space<smem>>
    %154 = vector.broadcast %153 : f32 to vector<2x16xf32>
    %155 = arith.mulf %154, %21 : vector<2x16xf32>
    %156 = arith.addf %152, %155 : vector<2x16xf32>
    %c34 = arith.constant 34 : index
    %157 = memref.load %arg3[%c34] : memref<96xf32, #tpu.memory_space<smem>>
    %158 = vector.broadcast %157 : f32 to vector<2x16xf32>
    %159 = arith.mulf %158, %22 : vector<2x16xf32>
    %160 = arith.addf %156, %159 : vector<2x16xf32>
    %c35 = arith.constant 35 : index
    %161 = memref.load %arg3[%c35] : memref<96xf32, #tpu.memory_space<smem>>
    %162 = vector.broadcast %161 : f32 to vector<2x16xf32>
    %163 = arith.mulf %162, %23 : vector<2x16xf32>
    %164 = arith.addf %160, %163 : vector<2x16xf32>
    %c36 = arith.constant 36 : index
    %165 = memref.load %arg3[%c36] : memref<96xf32, #tpu.memory_space<smem>>
    %166 = vector.broadcast %165 : f32 to vector<2x16xf32>
    %167 = arith.mulf %166, %6 : vector<2x16xf32>
    %c37 = arith.constant 37 : index
    %168 = memref.load %arg3[%c37] : memref<96xf32, #tpu.memory_space<smem>>
    %169 = vector.broadcast %168 : f32 to vector<2x16xf32>
    %170 = arith.mulf %169, %7 : vector<2x16xf32>
    %171 = arith.addf %167, %170 : vector<2x16xf32>
    %c38 = arith.constant 38 : index
    %172 = memref.load %arg3[%c38] : memref<96xf32, #tpu.memory_space<smem>>
    %173 = vector.broadcast %172 : f32 to vector<2x16xf32>
    %174 = arith.mulf %173, %8 : vector<2x16xf32>
    %175 = arith.addf %171, %174 : vector<2x16xf32>
    %c39 = arith.constant 39 : index
    %176 = memref.load %arg3[%c39] : memref<96xf32, #tpu.memory_space<smem>>
    %177 = vector.broadcast %176 : f32 to vector<2x16xf32>
    %178 = arith.mulf %177, %11 : vector<2x16xf32>
    %179 = arith.addf %175, %178 : vector<2x16xf32>
    %c40 = arith.constant 40 : index
    %180 = memref.load %arg3[%c40] : memref<96xf32, #tpu.memory_space<smem>>
    %181 = vector.broadcast %180 : f32 to vector<2x16xf32>
    %182 = arith.mulf %181, %12 : vector<2x16xf32>
    %183 = arith.addf %179, %182 : vector<2x16xf32>
    %c41 = arith.constant 41 : index
    %184 = memref.load %arg3[%c41] : memref<96xf32, #tpu.memory_space<smem>>
    %185 = vector.broadcast %184 : f32 to vector<2x16xf32>
    %186 = arith.mulf %185, %13 : vector<2x16xf32>
    %187 = arith.addf %183, %186 : vector<2x16xf32>
    %c42 = arith.constant 42 : index
    %188 = memref.load %arg3[%c42] : memref<96xf32, #tpu.memory_space<smem>>
    %189 = vector.broadcast %188 : f32 to vector<2x16xf32>
    %190 = arith.mulf %189, %16 : vector<2x16xf32>
    %191 = arith.addf %187, %190 : vector<2x16xf32>
    %c43 = arith.constant 43 : index
    %192 = memref.load %arg3[%c43] : memref<96xf32, #tpu.memory_space<smem>>
    %193 = vector.broadcast %192 : f32 to vector<2x16xf32>
    %194 = arith.mulf %193, %17 : vector<2x16xf32>
    %195 = arith.addf %191, %194 : vector<2x16xf32>
    %c44 = arith.constant 44 : index
    %196 = memref.load %arg3[%c44] : memref<96xf32, #tpu.memory_space<smem>>
    %197 = vector.broadcast %196 : f32 to vector<2x16xf32>
    %198 = arith.mulf %197, %18 : vector<2x16xf32>
    %199 = arith.addf %195, %198 : vector<2x16xf32>
    %c45 = arith.constant 45 : index
    %200 = memref.load %arg3[%c45] : memref<96xf32, #tpu.memory_space<smem>>
    %201 = vector.broadcast %200 : f32 to vector<2x16xf32>
    %202 = arith.mulf %201, %21 : vector<2x16xf32>
    %203 = arith.addf %199, %202 : vector<2x16xf32>
    %c46 = arith.constant 46 : index
    %204 = memref.load %arg3[%c46] : memref<96xf32, #tpu.memory_space<smem>>
    %205 = vector.broadcast %204 : f32 to vector<2x16xf32>
    %206 = arith.mulf %205, %22 : vector<2x16xf32>
    %207 = arith.addf %203, %206 : vector<2x16xf32>
    %c47 = arith.constant 47 : index
    %208 = memref.load %arg3[%c47] : memref<96xf32, #tpu.memory_space<smem>>
    %209 = vector.broadcast %208 : f32 to vector<2x16xf32>
    %210 = arith.mulf %209, %23 : vector<2x16xf32>
    %211 = arith.addf %207, %210 : vector<2x16xf32>
    %c48_8 = arith.constant 48 : index
    %212 = memref.load %arg3[%c48_8] : memref<96xf32, #tpu.memory_space<smem>>
    %213 = vector.broadcast %212 : f32 to vector<2x16xf32>
    %214 = arith.mulf %213, %6 : vector<2x16xf32>
    %c49 = arith.constant 49 : index
    %215 = memref.load %arg3[%c49] : memref<96xf32, #tpu.memory_space<smem>>
    %216 = vector.broadcast %215 : f32 to vector<2x16xf32>
    %217 = arith.mulf %216, %7 : vector<2x16xf32>
    %218 = arith.addf %214, %217 : vector<2x16xf32>
    %c50 = arith.constant 50 : index
    %219 = memref.load %arg3[%c50] : memref<96xf32, #tpu.memory_space<smem>>
    %220 = vector.broadcast %219 : f32 to vector<2x16xf32>
    %221 = arith.mulf %220, %8 : vector<2x16xf32>
    %222 = arith.addf %218, %221 : vector<2x16xf32>
    %c51 = arith.constant 51 : index
    %223 = memref.load %arg3[%c51] : memref<96xf32, #tpu.memory_space<smem>>
    %224 = vector.broadcast %223 : f32 to vector<2x16xf32>
    %225 = arith.mulf %224, %11 : vector<2x16xf32>
    %226 = arith.addf %222, %225 : vector<2x16xf32>
    %c52 = arith.constant 52 : index
    %227 = memref.load %arg3[%c52] : memref<96xf32, #tpu.memory_space<smem>>
    %228 = vector.broadcast %227 : f32 to vector<2x16xf32>
    %229 = arith.mulf %228, %12 : vector<2x16xf32>
    %230 = arith.addf %226, %229 : vector<2x16xf32>
    %c53 = arith.constant 53 : index
    %231 = memref.load %arg3[%c53] : memref<96xf32, #tpu.memory_space<smem>>
    %232 = vector.broadcast %231 : f32 to vector<2x16xf32>
    %233 = arith.mulf %232, %13 : vector<2x16xf32>
    %234 = arith.addf %230, %233 : vector<2x16xf32>
    %c54 = arith.constant 54 : index
    %235 = memref.load %arg3[%c54] : memref<96xf32, #tpu.memory_space<smem>>
    %236 = vector.broadcast %235 : f32 to vector<2x16xf32>
    %237 = arith.mulf %236, %16 : vector<2x16xf32>
    %238 = arith.addf %234, %237 : vector<2x16xf32>
    %c55 = arith.constant 55 : index
    %239 = memref.load %arg3[%c55] : memref<96xf32, #tpu.memory_space<smem>>
    %240 = vector.broadcast %239 : f32 to vector<2x16xf32>
    %241 = arith.mulf %240, %17 : vector<2x16xf32>
    %242 = arith.addf %238, %241 : vector<2x16xf32>
    %c56 = arith.constant 56 : index
    %243 = memref.load %arg3[%c56] : memref<96xf32, #tpu.memory_space<smem>>
    %244 = vector.broadcast %243 : f32 to vector<2x16xf32>
    %245 = arith.mulf %244, %18 : vector<2x16xf32>
    %246 = arith.addf %242, %245 : vector<2x16xf32>
    %c57 = arith.constant 57 : index
    %247 = memref.load %arg3[%c57] : memref<96xf32, #tpu.memory_space<smem>>
    %248 = vector.broadcast %247 : f32 to vector<2x16xf32>
    %249 = arith.mulf %248, %21 : vector<2x16xf32>
    %250 = arith.addf %246, %249 : vector<2x16xf32>
    %c58 = arith.constant 58 : index
    %251 = memref.load %arg3[%c58] : memref<96xf32, #tpu.memory_space<smem>>
    %252 = vector.broadcast %251 : f32 to vector<2x16xf32>
    %253 = arith.mulf %252, %22 : vector<2x16xf32>
    %254 = arith.addf %250, %253 : vector<2x16xf32>
    %c59 = arith.constant 59 : index
    %255 = memref.load %arg3[%c59] : memref<96xf32, #tpu.memory_space<smem>>
    %256 = vector.broadcast %255 : f32 to vector<2x16xf32>
    %257 = arith.mulf %256, %23 : vector<2x16xf32>
    %258 = arith.addf %254, %257 : vector<2x16xf32>
    %c60 = arith.constant 60 : index
    %259 = memref.load %arg3[%c60] : memref<96xf32, #tpu.memory_space<smem>>
    %260 = vector.broadcast %259 : f32 to vector<2x16xf32>
    %261 = arith.mulf %260, %6 : vector<2x16xf32>
    %c61 = arith.constant 61 : index
    %262 = memref.load %arg3[%c61] : memref<96xf32, #tpu.memory_space<smem>>
    %263 = vector.broadcast %262 : f32 to vector<2x16xf32>
    %264 = arith.mulf %263, %7 : vector<2x16xf32>
    %265 = arith.addf %261, %264 : vector<2x16xf32>
    %c62 = arith.constant 62 : index
    %266 = memref.load %arg3[%c62] : memref<96xf32, #tpu.memory_space<smem>>
    %267 = vector.broadcast %266 : f32 to vector<2x16xf32>
    %268 = arith.mulf %267, %8 : vector<2x16xf32>
    %269 = arith.addf %265, %268 : vector<2x16xf32>
    %c63 = arith.constant 63 : index
    %270 = memref.load %arg3[%c63] : memref<96xf32, #tpu.memory_space<smem>>
    %271 = vector.broadcast %270 : f32 to vector<2x16xf32>
    %272 = arith.mulf %271, %11 : vector<2x16xf32>
    %273 = arith.addf %269, %272 : vector<2x16xf32>
    %c64 = arith.constant 64 : index
    %274 = memref.load %arg3[%c64] : memref<96xf32, #tpu.memory_space<smem>>
    %275 = vector.broadcast %274 : f32 to vector<2x16xf32>
    %276 = arith.mulf %275, %12 : vector<2x16xf32>
    %277 = arith.addf %273, %276 : vector<2x16xf32>
    %c65 = arith.constant 65 : index
    %278 = memref.load %arg3[%c65] : memref<96xf32, #tpu.memory_space<smem>>
    %279 = vector.broadcast %278 : f32 to vector<2x16xf32>
    %280 = arith.mulf %279, %13 : vector<2x16xf32>
    %281 = arith.addf %277, %280 : vector<2x16xf32>
    %c66 = arith.constant 66 : index
    %282 = memref.load %arg3[%c66] : memref<96xf32, #tpu.memory_space<smem>>
    %283 = vector.broadcast %282 : f32 to vector<2x16xf32>
    %284 = arith.mulf %283, %16 : vector<2x16xf32>
    %285 = arith.addf %281, %284 : vector<2x16xf32>
    %c67 = arith.constant 67 : index
    %286 = memref.load %arg3[%c67] : memref<96xf32, #tpu.memory_space<smem>>
    %287 = vector.broadcast %286 : f32 to vector<2x16xf32>
    %288 = arith.mulf %287, %17 : vector<2x16xf32>
    %289 = arith.addf %285, %288 : vector<2x16xf32>
    %c68 = arith.constant 68 : index
    %290 = memref.load %arg3[%c68] : memref<96xf32, #tpu.memory_space<smem>>
    %291 = vector.broadcast %290 : f32 to vector<2x16xf32>
    %292 = arith.mulf %291, %18 : vector<2x16xf32>
    %293 = arith.addf %289, %292 : vector<2x16xf32>
    %c69 = arith.constant 69 : index
    %294 = memref.load %arg3[%c69] : memref<96xf32, #tpu.memory_space<smem>>
    %295 = vector.broadcast %294 : f32 to vector<2x16xf32>
    %296 = arith.mulf %295, %21 : vector<2x16xf32>
    %297 = arith.addf %293, %296 : vector<2x16xf32>
    %c70 = arith.constant 70 : index
    %298 = memref.load %arg3[%c70] : memref<96xf32, #tpu.memory_space<smem>>
    %299 = vector.broadcast %298 : f32 to vector<2x16xf32>
    %300 = arith.mulf %299, %22 : vector<2x16xf32>
    %301 = arith.addf %297, %300 : vector<2x16xf32>
    %c71 = arith.constant 71 : index
    %302 = memref.load %arg3[%c71] : memref<96xf32, #tpu.memory_space<smem>>
    %303 = vector.broadcast %302 : f32 to vector<2x16xf32>
    %304 = arith.mulf %303, %23 : vector<2x16xf32>
    %305 = arith.addf %301, %304 : vector<2x16xf32>
    %c72 = arith.constant 72 : index
    %306 = memref.load %arg3[%c72] : memref<96xf32, #tpu.memory_space<smem>>
    %307 = vector.broadcast %306 : f32 to vector<2x16xf32>
    %308 = arith.mulf %307, %6 : vector<2x16xf32>
    %c73 = arith.constant 73 : index
    %309 = memref.load %arg3[%c73] : memref<96xf32, #tpu.memory_space<smem>>
    %310 = vector.broadcast %309 : f32 to vector<2x16xf32>
    %311 = arith.mulf %310, %7 : vector<2x16xf32>
    %312 = arith.addf %308, %311 : vector<2x16xf32>
    %c74 = arith.constant 74 : index
    %313 = memref.load %arg3[%c74] : memref<96xf32, #tpu.memory_space<smem>>
    %314 = vector.broadcast %313 : f32 to vector<2x16xf32>
    %315 = arith.mulf %314, %8 : vector<2x16xf32>
    %316 = arith.addf %312, %315 : vector<2x16xf32>
    %c75 = arith.constant 75 : index
    %317 = memref.load %arg3[%c75] : memref<96xf32, #tpu.memory_space<smem>>
    %318 = vector.broadcast %317 : f32 to vector<2x16xf32>
    %319 = arith.mulf %318, %11 : vector<2x16xf32>
    %320 = arith.addf %316, %319 : vector<2x16xf32>
    %c76 = arith.constant 76 : index
    %321 = memref.load %arg3[%c76] : memref<96xf32, #tpu.memory_space<smem>>
    %322 = vector.broadcast %321 : f32 to vector<2x16xf32>
    %323 = arith.mulf %322, %12 : vector<2x16xf32>
    %324 = arith.addf %320, %323 : vector<2x16xf32>
    %c77 = arith.constant 77 : index
    %325 = memref.load %arg3[%c77] : memref<96xf32, #tpu.memory_space<smem>>
    %326 = vector.broadcast %325 : f32 to vector<2x16xf32>
    %327 = arith.mulf %326, %13 : vector<2x16xf32>
    %328 = arith.addf %324, %327 : vector<2x16xf32>
    %c78 = arith.constant 78 : index
    %329 = memref.load %arg3[%c78] : memref<96xf32, #tpu.memory_space<smem>>
    %330 = vector.broadcast %329 : f32 to vector<2x16xf32>
    %331 = arith.mulf %330, %16 : vector<2x16xf32>
    %332 = arith.addf %328, %331 : vector<2x16xf32>
    %c79 = arith.constant 79 : index
    %333 = memref.load %arg3[%c79] : memref<96xf32, #tpu.memory_space<smem>>
    %334 = vector.broadcast %333 : f32 to vector<2x16xf32>
    %335 = arith.mulf %334, %17 : vector<2x16xf32>
    %336 = arith.addf %332, %335 : vector<2x16xf32>
    %c80 = arith.constant 80 : index
    %337 = memref.load %arg3[%c80] : memref<96xf32, #tpu.memory_space<smem>>
    %338 = vector.broadcast %337 : f32 to vector<2x16xf32>
    %339 = arith.mulf %338, %18 : vector<2x16xf32>
    %340 = arith.addf %336, %339 : vector<2x16xf32>
    %c81 = arith.constant 81 : index
    %341 = memref.load %arg3[%c81] : memref<96xf32, #tpu.memory_space<smem>>
    %342 = vector.broadcast %341 : f32 to vector<2x16xf32>
    %343 = arith.mulf %342, %21 : vector<2x16xf32>
    %344 = arith.addf %340, %343 : vector<2x16xf32>
    %c82 = arith.constant 82 : index
    %345 = memref.load %arg3[%c82] : memref<96xf32, #tpu.memory_space<smem>>
    %346 = vector.broadcast %345 : f32 to vector<2x16xf32>
    %347 = arith.mulf %346, %22 : vector<2x16xf32>
    %348 = arith.addf %344, %347 : vector<2x16xf32>
    %c83 = arith.constant 83 : index
    %349 = memref.load %arg3[%c83] : memref<96xf32, #tpu.memory_space<smem>>
    %350 = vector.broadcast %349 : f32 to vector<2x16xf32>
    %351 = arith.mulf %350, %23 : vector<2x16xf32>
    %352 = arith.addf %348, %351 : vector<2x16xf32>
    %c84 = arith.constant 84 : index
    %353 = memref.load %arg3[%c84] : memref<96xf32, #tpu.memory_space<smem>>
    %354 = vector.broadcast %353 : f32 to vector<2x16xf32>
    %355 = arith.mulf %354, %6 : vector<2x16xf32>
    %c85 = arith.constant 85 : index
    %356 = memref.load %arg3[%c85] : memref<96xf32, #tpu.memory_space<smem>>
    %357 = vector.broadcast %356 : f32 to vector<2x16xf32>
    %358 = arith.mulf %357, %7 : vector<2x16xf32>
    %359 = arith.addf %355, %358 : vector<2x16xf32>
    %c86 = arith.constant 86 : index
    %360 = memref.load %arg3[%c86] : memref<96xf32, #tpu.memory_space<smem>>
    %361 = vector.broadcast %360 : f32 to vector<2x16xf32>
    %362 = arith.mulf %361, %8 : vector<2x16xf32>
    %363 = arith.addf %359, %362 : vector<2x16xf32>
    %c87 = arith.constant 87 : index
    %364 = memref.load %arg3[%c87] : memref<96xf32, #tpu.memory_space<smem>>
    %365 = vector.broadcast %364 : f32 to vector<2x16xf32>
    %366 = arith.mulf %365, %11 : vector<2x16xf32>
    %367 = arith.addf %363, %366 : vector<2x16xf32>
    %c88 = arith.constant 88 : index
    %368 = memref.load %arg3[%c88] : memref<96xf32, #tpu.memory_space<smem>>
    %369 = vector.broadcast %368 : f32 to vector<2x16xf32>
    %370 = arith.mulf %369, %12 : vector<2x16xf32>
    %371 = arith.addf %367, %370 : vector<2x16xf32>
    %c89 = arith.constant 89 : index
    %372 = memref.load %arg3[%c89] : memref<96xf32, #tpu.memory_space<smem>>
    %373 = vector.broadcast %372 : f32 to vector<2x16xf32>
    %374 = arith.mulf %373, %13 : vector<2x16xf32>
    %375 = arith.addf %371, %374 : vector<2x16xf32>
    %c90 = arith.constant 90 : index
    %376 = memref.load %arg3[%c90] : memref<96xf32, #tpu.memory_space<smem>>
    %377 = vector.broadcast %376 : f32 to vector<2x16xf32>
    %378 = arith.mulf %377, %16 : vector<2x16xf32>
    %379 = arith.addf %375, %378 : vector<2x16xf32>
    %c91 = arith.constant 91 : index
    %380 = memref.load %arg3[%c91] : memref<96xf32, #tpu.memory_space<smem>>
    %381 = vector.broadcast %380 : f32 to vector<2x16xf32>
    %382 = arith.mulf %381, %17 : vector<2x16xf32>
    %383 = arith.addf %379, %382 : vector<2x16xf32>
    %c92 = arith.constant 92 : index
    %384 = memref.load %arg3[%c92] : memref<96xf32, #tpu.memory_space<smem>>
    %385 = vector.broadcast %384 : f32 to vector<2x16xf32>
    %386 = arith.mulf %385, %18 : vector<2x16xf32>
    %387 = arith.addf %383, %386 : vector<2x16xf32>
    %c93 = arith.constant 93 : index
    %388 = memref.load %arg3[%c93] : memref<96xf32, #tpu.memory_space<smem>>
    %389 = vector.broadcast %388 : f32 to vector<2x16xf32>
    %390 = arith.mulf %389, %21 : vector<2x16xf32>
    %391 = arith.addf %387, %390 : vector<2x16xf32>
    %c94 = arith.constant 94 : index
    %392 = memref.load %arg3[%c94] : memref<96xf32, #tpu.memory_space<smem>>
    %393 = vector.broadcast %392 : f32 to vector<2x16xf32>
    %394 = arith.mulf %393, %22 : vector<2x16xf32>
    %395 = arith.addf %391, %394 : vector<2x16xf32>
    %c95 = arith.constant 95 : index
    %396 = memref.load %arg3[%c95] : memref<96xf32, #tpu.memory_space<smem>>
    %397 = vector.broadcast %396 : f32 to vector<2x16xf32>
    %398 = arith.mulf %397, %23 : vector<2x16xf32>
    %399 = arith.addf %395, %398 : vector<2x16xf32>
    %400 = tpu.concatenate %70, %117, %164, %211, %258, %305, %352, %399 in 1 : vector<2x16xf32>, vector<2x16xf32>, vector<2x16xf32>, vector<2x16xf32>, vector<2x16xf32>, vector<2x16xf32>, vector<2x16xf32>, vector<2x16xf32> -> vector<2x128xf32>
    %c0_9 = arith.constant 0 : index
    %c0_10 = arith.constant 0 : index
    %c0_11 = arith.constant 0 : index
    %401 = vector.load %arg4[%c0_9, %c0_10, %c0_11] : memref<1x1x128xf32, #tpu.memory_space<vmem>>, vector<1x1x128xf32>
    %cst_12 = arith.constant dense<0.000000e+00> : vector<128xf32>
    %402 = vector.multi_reduction <add>, %400, %cst_12 [0] : vector<2x128xf32> to vector<128xf32>
    %403 = vector.shape_cast %402 : vector<128xf32> to vector<1x128xf32>
    %404 = vector.shape_cast %403 : vector<1x128xf32> to vector<1x1x128xf32>
    %405 = arith.addf %401, %404 : vector<1x1x128xf32>
    %c0_13 = arith.constant 0 : index
    %c0_14 = arith.constant 0 : index
    %c0_15 = arith.constant 0 : index
    %406 = vector.load %arg4[%c0_13, %c0_14, %c0_15] : memref<1x1x128xf32, #tpu.memory_space<vmem>>, vector<1x1x128xf32>
    tpu.vector_store %arg4[%c0_13, %c0_14, %c0_15], %405 {strides = array<i32>} : memref<1x1x128xf32, #tpu.memory_space<vmem>>, vector<1x1x128xf32>,
    %c0_16 = arith.constant 0 : index
    %c0_17 = arith.constant 0 : index
    %c0_18 = arith.constant 0 : index
    %407 = vector.load %arg5[%c0_16, %c0_17, %c0_18] : memref<1x1x128xf32, #tpu.memory_space<vmem>>, vector<1x1x128xf32>
    %408 = arith.mulf %400, %400 : vector<2x128xf32>
    %cst_19 = arith.constant dense<0.000000e+00> : vector<128xf32>
    %409 = vector.multi_reduction <add>, %408, %cst_19 [0] : vector<2x128xf32> to vector<128xf32>
    %410 = vector.shape_cast %409 : vector<128xf32> to vector<1x128xf32>
    %411 = vector.shape_cast %410 : vector<1x128xf32> to vector<1x1x128xf32>
    %412 = arith.addf %407, %411 : vector<1x1x128xf32>
    %c0_20 = arith.constant 0 : index
    %c0_21 = arith.constant 0 : index
    %c0_22 = arith.constant 0 : index
    %413 = vector.load %arg5[%c0_20, %c0_21, %c0_22] : memref<1x1x128xf32, #tpu.memory_space<vmem>>, vector<1x1x128xf32>
    tpu.vector_store %arg5[%c0_20, %c0_21, %c0_22], %412 {strides = array<i32>} : memref<1x1x128xf32, #tpu.memory_space<vmem>>, vector<1x1x128xf32>,
    return
  }
  func.func @transform_0(%arg0: i32, %arg1: i32) -> (i32, i32) {
    %c1_i32 = arith.constant 1 : i32
    %0 = arith.muli %arg0, %c1_i32 : i32
    %1 = arith.addi %0, %arg1 : i32
    %c0_i32 = arith.constant 0 : i32
    %c0_i32_0 = arith.constant 0 : i32
    return %1, %c0_i32 : i32, i32
  }
  func.func @transform_1(%arg0: i32, %arg1: i32) -> i32 {
    %c0_i32 = arith.constant 0 : i32
    %c0_i32_0 = arith.constant 0 : i32
    return %c0_i32 : i32
  }
  func.func @transform_2(%arg0: i32, %arg1: i32) -> (i32, i32, i32) {
    %c0_i32 = arith.constant 0 : i32
    %c0_i32_0 = arith.constant 0 : i32
    %c0_i32_1 = arith.constant 0 : i32
    return %arg0, %c0_i32, %c0_i32_0 : i32, i32, i32
  }
  func.func @transform_3(%arg0: i32, %arg1: i32) -> (i32, i32, i32) {
    %c0_i32 = arith.constant 0 : i32
    %c0_i32_0 = arith.constant 0 : i32
    %c0_i32_1 = arith.constant 0 : i32
    return %arg0, %c0_i32, %c0_i32_0 : i32, i32, i32
  }
}

</mosaic_0001>

<bundles_post_ra>
// kernel: conv_dropout_selu.2
= control target key start
LH: loop header
LB: loop body
LE: loop exit
PB: predicated region body
PF: predicated region fallthrough
CT: control target
= control target key end

     0   :  { %9 = vsyncpa [#allocation3], 0  ;;  %s1194_s0 = inlined_call_operand.vmem [shape: f32[2,64], index: 0, kind: input, shape index: {}]   ;;  %s1195_s1 = inlined_call_operand.vmem [shape: f32[96], index: 1, kind: input, shape index: {}]   ;;  %s1196_s2 = inlined_call_operand.vmem [shape: f32[1,1,128], index: 2, kind: output, shape index: {0}]   ;;  %s1197_s3 = inlined_call_operand.vmem [shape: f32[1,1,128], index: 3, kind: output, shape index: {1}]  }
   0x1   :  { %s24_s14 = sshll.u32 %s1195_s1, 4  ;;  %s25_s14 = int_to_ptr.vmem [resolvable:$true] %s24_s14 }
   0x2   :  { %s894_s15 = scalar_lea.vmem %s25_s14, 16  ;;  %p899_p1 = scmp.lt.s32.totalorder %s25_s14, %s25_s14 }
   0x3   :  { %p895_p0 = scmp.ne.s32.totalorder %s25_s14, %s894_s15  ;;  %p900_p2 = scmp.lt.s32.totalorder %s894_s15, %s894_s15 }
   0x5   :  { %p901_p3 = por %p900_p2, %p899_p1 }
   0x7   :  { %p902_p4 = pnand %p901_p3, %p895_p0 }
   0x9   :  { %905 = shalt.err (!%p902_p4)
}
   0xa   :  { %s908_s16 = smov [#allocation2]  }
   0xb   :  { %27 = dma.vmem_to_smem %s25_s14, 16, %s908_s16, [#allocation3]  }
   0xc   :  { %906 = dma.done.wait [#allocation3], 16  }
   0xd   :  { %907 = vsyncadd [#allocation3], 4294967280 }
   0xe   :  { %31 = sfence }
   0xf   :  { %v49_v0 = vld [vmem:[%s1194_s0] sm:$0x3]  ;;  %s909_s19 = smov 1   ;;  %s910_s1 = smov 97   ;;  %vm54_vm0 = vcmask 7168   ;;  %vm56_vm1 = vcmask 138240  }
  0x10   :  { %51 = vrot.lane.b32.xlu0 %v49_v0, %s909_s19  ;;  %63 = vrot.lane.b32.xlu1 %v49_v0, %s910_s1  ;;  %s911_s20 = smov 113   ;;  %s912_s21 = smov 81   ;;  %vm733_vm2 = vcmask 130048   ;;  %vm735_vm3 = vcmask 261120   ;;  %vm737_vm4 = vcmask 392192   ;;  %vm739_vm5 = vcmask 523264  }
  0x11   :  { %s808_s22 = sld [smem:[#allocation2 + $0x19]]  ;;  %s913_s29 = smov 127   ;;  %vm741_vm6 = vcmask 654336   ;;  %vm743_vm7 = vcmask 785408   ;;  %vm745_vm8 = vcmask 916480   ;;  %vm748_vm9 = vcmask 1041408  }
  0x12   :  { %s796_s23 = sld [smem:[#allocation2 + $0xd]]  ;;  %s914_s5 = smov 126  }
  0x13   :  { %s820_s24 = sld [smem:[#allocation2 + $0x25]] }
  0x14   :  { %58 = vrot.lane.b32.xlu0 %v49_v0, %s911_s20  ;;  %68 = vrot.lane.b32.xlu1 %v49_v0, %s912_s21  ;;  %s797_s25 = sld [smem:[#allocation2 + $0xe]] }
  0x15   :  { %s832_s26 = sld [smem:[#allocation2 + $0x31]] }
  0x16   :  { %s809_s27 = sld [smem:[#allocation2 + $0x1a]] }
  0x17   :  { %v235_v2 = vstv %s808_s22  ;;  %s844_s0 = sld [smem:[#allocation2 + $0x3d]] }
  0x18   :  { %v156_v3 = vstv %s796_s23  ;;  %s821_s28 = sld [smem:[#allocation2 + $0x26]] }
  0x19   :  { %v314_v8 = vstv %s820_s24  ;;  %s961_s30 = sld [smem:[#allocation2 + $0x49]] }
  0x1a   :  { %v164_v9 = vstv %s797_s25  ;;  %s833_s4 = sld [smem:[#allocation2 + $0x32]] }
  0x1b   :  { %v393_v13 = vstv %s832_s26  ;;  %s799_s6 = sld [smem:[#allocation2 + $0x10]] }
  0x1c   :  { %v243_v14 = vstv %s809_s27  ;;  %s845_s7 = sld [smem:[#allocation2 + $0x3e]] }
  0x1d   :  { %v472_v18 = vstv %s844_s0  ;;  %s811_s8 = sld [smem:[#allocation2 + $0x1c]] }
  0x1e   :  { %v322_v19 = vstv %s821_s28  ;;  %s868_s9 = sld [smem:[#allocation2 + $0x55]] }
  0x1f   :  { %v551_v26 = vstv %s961_s30  ;;  %s800_s10 = sld [smem:[#allocation2 + $0x11]] }
  0x20   :  { %v401_v27 = vstv %s833_s4  ;;  %s857_s11 = sld [smem:[#allocation2 + $0x4a]] }
  0x21   :  { %v176_v29 = vstv %s799_s6  ;;  %s869_s12 = sld [smem:[#allocation2 + $0x56]] }
  0x22   :  { %v480_v32 = vstv %s845_s7  ;;  %s823_s13 = sld [smem:[#allocation2 + $0x28]] }
  0x23   :  { %v255_v35 = vstv %s811_s8  ;;  %s835_s14 = sld [smem:[#allocation2 + $0x34]] }
  0x24   :  { %v630_v36 = vstv %s868_s9  ;;  %s812_s15 = sld [smem:[#allocation2 + $0x1d]] }
  0x25   :  { %v184_v39 = vstv %s800_s10  ;;  %s847_s16 = sld [smem:[#allocation2 + $0x40]] }
  0x26   :  { %v559_v40 = vstv %s857_s11  ;;  %s824_s17 = sld [smem:[#allocation2 + $0x29]] }
  0x27   :  { %v638_v43 = vstv %s869_s12  ;;  %s859_s18 = sld [smem:[#allocation2 + $0x4c]] }
  0x28   :  { %v334_v44 = vstv %s823_s13  ;;  %s836_s19 = sld [smem:[#allocation2 + $0x35]] }
  0x29   :  { %v413_v47 = vstv %s835_s14  ;;  %s802_s1 = sld [smem:[#allocation2 + $0x13]] }
  0x2a   :  { %v263_v48 = vstv %s812_s15  ;;  %s848_s20 = sld [smem:[#allocation2 + $0x41]] }
  0x2b   :  { %v492_v51 = vstv %s847_s16  ;;  %s871_s21 = sld [smem:[#allocation2 + $0x58]] }
  0x2c   :  { %v342_v52 = vstv %s824_s17  ;;  %s814_s22 = sld [smem:[#allocation2 + $0x1f]] }
  0x2d   :  { %v571_v56 = vstv %s859_s18  ;;  %s860_s23 = sld [smem:[#allocation2 + $0x4d]] }
  0x2e   :  { %v421_v57 = vstv %s836_s19  ;;  %s803_s24 = sld [smem:[#allocation2 + $0x14]] }
  0x2f   :  { %v196_v59 = vstv %s802_s1  ;;  %s872_s25 = sld [smem:[#allocation2 + $0x59]] }
  0x30   :  { %v500_v62 = vstv %s848_s20  ;;  %s826_s26 = sld [smem:[#allocation2 + $0x2b]] }
  0x31   :  { %s838_s27 = sld [smem:[#allocation2 + $0x37]] }
  0x32   :  { %s815_s0 = sld [smem:[#allocation2 + $0x20]] }
  0x33   :  { %s850_s28 = sld [smem:[#allocation2 + $0x43]] }
  0x34   :  { %s827_s30 = sld [smem:[#allocation2 + $0x2c]] }
  0x35   :  { %s862_s4 = sld [smem:[#allocation2 + $0x4f]] }
  0x36   :  { %s839_s6 = sld [smem:[#allocation2 + $0x38]] }
  0x37   :  { %s805_s7 = sld [smem:[#allocation2 + $0x16]] }
  0x38   :  { %s851_s8 = sld [smem:[#allocation2 + $0x44]] }
  0x39   :  { %s874_s9 = sld [smem:[#allocation2 + $0x5b]] }
  0x3a   :  { %s817_s10 = sld [smem:[#allocation2 + $0x22]] }
  0x3b   :  { %s863_s11 = sld [smem:[#allocation2 + $0x50]] }
  0x3c   :  { %s806_s12 = sld [smem:[#allocation2 + $0x17]] }
  0x3d   :  { %s875_s13 = sld [smem:[#allocation2 + $0x5c]] }
  0x3e   :  { %s829_s14 = sld [smem:[#allocation2 + $0x2e]] }
  0x3f   :  { %s841_s15 = sld [smem:[#allocation2 + $0x3a]] }
  0x40   :  { %s818_s16 = sld [smem:[#allocation2 + $0x23]] }
  0x41   :  { %s853_s17 = sld [smem:[#allocation2 + $0x46]] }
  0x42   :  { %s830_s18 = sld [smem:[#allocation2 + $0x2f]] }
  0x43   :  { %s865_s19 = sld [smem:[#allocation2 + $0x52]] }
  0x44   :  { %s842_s1 = sld [smem:[#allocation2 + $0x3b]] }
  0x45   :  { %s877_s20 = sld [smem:[#allocation2 + $0x5e]] }
  0x82   :  { %v52_v1 = vpop.permute.xlu0 %51  ;;  %v957_v10 = vpop.permute.xlu1 %63 }
  0x83   :  { %v55_v4 = vsel %vm54_vm0, 0.0, %v52_v1  ;;  %v66_v55 = vsel %vm54_vm0, 0.0, %v957_v10  ;;  %v275_v1 = vstv %s814_s22  ;;  %v658_v10 = vstv %s872_s25  ;;  %s878_s22 = sld [smem:[#allocation2 + $0x5f]] }
  0x84   :  { %v951_v5 = vsel %vm56_vm1, %v55_v4, 0.0  ;;  %v1013_v58 = vsel %vm56_vm1, %v66_v55, 0.0  ;;  %s784_s25 = sld [smem:[#allocation2 + $0x1]] }
  0x85   :  { %v236_v6 = vmul.f32 %v235_v2, %v951_v5  ;;  %v157_v7 = vmul.f32 %v156_v3, %v951_v5  ;;  %v315_v11 = vmul.f32 %v314_v8, %v951_v5  ;;  %v165_v12 = vmul.f32 %v164_v9, %v951_v5 }
  0x86   :  { %v69_v15 = vpop.permute.xlu1 %68  ;;  %v394_v16 = vmul.f32 %v393_v13, %v951_v5  ;;  %v244_v17 = vmul.f32 %v243_v14, %v951_v5  ;;  %v59_v20 = vpop.permute.xlu0 %58  ;;  %v473_v23 = vmul.f32 %v472_v18, %v951_v5  ;;  %v323_v24 = vmul.f32 %v322_v19, %v951_v5 }
  0x87   :  { %238 = vrot.lane.b32.xlu1 %v236_v6, %s913_s29  ;;  %159 = vrot.lane.b32.xlu0 %v157_v7, %s913_s29  ;;  %v71_v21 = vsel %vm54_vm0, 0.0, %v69_v15  ;;  %v61_v25 = vsel %vm54_vm0, 0.0, %v59_v20  ;;  %v552_v30 = vmul.f32 %v551_v26, %v951_v5  ;;  %v402_v31 = vmul.f32 %v401_v27, %v951_v5 }
  0x88   :  { %v971_v22 = vsel %vm56_vm1, %v71_v21, 0.0  ;;  %v980_v28 = vsel %vm56_vm1, %v61_v25, 0.0  ;;  %v481_v34 = vmul.f32 %v480_v32, %v951_v5  ;;  %v631_v38 = vmul.f32 %v630_v36, %v951_v5 }
  0x89   :  { %v177_v33 = vmul.f32 %v176_v29, %v980_v28  ;;  %v256_v37 = vmul.f32 %v255_v35, %v980_v28  ;;  %v185_v41 = vmul.f32 %v184_v39, %v980_v28  ;;  %v560_v42 = vmul.f32 %v559_v40, %v951_v5 }
  0x8a   :  { %v639_v45 = vmul.f32 %v638_v43, %v951_v5  ;;  %v335_v46 = vmul.f32 %v334_v44, %v980_v28  ;;  %v414_v49 = vmul.f32 %v413_v47, %v980_v28  ;;  %v264_v50 = vmul.f32 %v263_v48, %v980_v28 }
  0x8b   :  { %317 = vrot.lane.b32.xlu1 %v315_v11, %s913_s29  ;;  %167 = vrot.lane.b32.xlu0 %v165_v12, %s914_s5  ;;  %v493_v53 = vmul.f32 %v492_v51, %v980_v28  ;;  %v343_v54 = vmul.f32 %v342_v52, %v980_v28  ;;  %v572_v60 = vmul.f32 %v571_v56, %v980_v28  ;;  %v650_v2 = vstv %s871_s21  ;;  %s854_s21 = sld [smem:[#allocation2 + $0x47]] }
  0x8c   :  { %v422_v61 = vmul.f32 %v421_v57, %v980_v28  ;;  %v197_v63 = vmul.f32 %v196_v59, %v1013_v58  ;;  %v501_v0 = vmul.f32 %v500_v62, %v980_v28  ;;  %v276_v3 = vmul.f32 %v275_v1, %v1013_v58 }
  0x8d   :  { %v651_v4 = vmul.f32 %v650_v2, %v980_v28  ;;  %v204_v6 = vstv %s803_s24  ;;  %v579_v7 = vstv %s860_s23  ;;  %v354_v11 = vstv %s826_s26  ;;  %s866_s23 = sld [smem:[#allocation2 + $0x53]] }
  0x8e   :  { %v205_v8 = vmul.f32 %v204_v6, %v1013_v58  ;;  %v580_v9 = vmul.f32 %v579_v7, %v980_v28  ;;  %v659_v12 = vmul.f32 %v658_v10, %v980_v28  ;;  %v355_v13 = vmul.f32 %v354_v11, %v1013_v58  ;;  %s785_s24 = sld [smem:[#allocation2 + $0x2]] }
  0x8f   :  { %396 = vrot.lane.b32.xlu1 %v394_v16, %s913_s29  ;;  %246 = vrot.lane.b32.xlu0 %v244_v17, %s914_s5  ;;  %v433_v14 = vstv %s838_s27  ;;  %v283_v15 = vstv %s815_s0  ;;  %s1075_s26 = sld [smem:[#allocation2 + $0x18]] }
  0x90   :  { %v434_v16 = vmul.f32 %v433_v14, %v1013_v58  ;;  %v284_v17 = vmul.f32 %v283_v15, %v1013_v58  ;;  %v512_v18 = vstv %s850_s28  ;;  %v362_v19 = vstv %s827_s30  ;;  %s1077_s27 = sld [smem:[#allocation2 + $0xc]] }
  0x91   :  { %v513_v20 = vmul.f32 %v512_v18, %v1013_v58  ;;  %v363_v21 = vmul.f32 %v362_v19, %v1013_v58  ;;  %v216_v25 = vstv %s805_s7  ;;  %v520_v29 = vstv %s851_s8  ;;  %s1081_s0 = sld [smem:[#allocation2 + $0x5]] }
  0x92   :  { %v295_v32 = vstv %s817_s10  ;;  %v224_v36 = vstv %s806_s12  ;;  %v678_v40 = vstv %s875_s13  ;;  %v453_v44 = vstv %s841_s15  ;;  %s787_s28 = sld [smem:[#allocation2 + $0x4]] }
  0x93   :  { %475 = vrot.lane.b32.xlu1 %v473_v23, %s913_s29  ;;  %325 = vrot.lane.b32.xlu0 %v323_v24, %s914_s5  ;;  %v591_v23 = vstv %s862_s4  ;;  %v441_v24 = vstv %s839_s6  ;;  %s1085_s30 = sld [smem:[#allocation2 + $0x24]] }
  0x94   :  { %v592_v26 = vmul.f32 %v591_v23, %v1013_v58  ;;  %v442_v27 = vmul.f32 %v441_v24, %v1013_v58  ;;  %v532_v48 = vstv %s853_s17  ;;  %v611_v52 = vstv %s865_s19  ;;  %s1089_s4 = sld [smem:[#allocation2 + $0x8]] }
  0x95   :  { %v690_v56 = vstv %s877_s20  ;;  %v540_v57 = vstv %s854_s21  ;;  %v619_v62 = vstv %s866_s23  ;;  %v85_v1 = vstv %s785_s24  ;;  %s1091_s6 = sld [smem:[#allocation2 + $0x7]] }
  0x96   :  { %v691_v59 = vmul.f32 %v690_v56, %v971_v22  ;;  %v77_v2 = vstv %s784_s25  ;;  %s1095_s7 = sld [smem:[#allocation2 + $0xf]]  ;;  %v232_v6 = vstv %s1075_s26  ;;  %v153_v7 = vstv %s1077_s27 }
  0x97   :  { %554 = vrot.lane.b32.xlu1 %v552_v30, %s913_s29  ;;  %404 = vrot.lane.b32.xlu0 %v402_v31, %s914_s5  ;;  %v217_v30 = vmul.f32 %v216_v25, %v971_v22  ;;  %v521_v31 = vmul.f32 %v520_v29, %v1013_v58  ;;  %s1097_s8 = sld [smem:[#allocation2 + $0x30]]  ;;  %v233_v10 = vmul.f32 %v232_v6, %v951_v5 }
  0x98   :  { %s1106_s10 = sld [smem:[#allocation2 + $0xa]]  ;;  %v154_v11 = vmul.f32 %v153_v7, %v951_v5 }
  0x99   :  { %s1117_s12 = sld [smem:[#allocation2 + $0x3c]] }
  0x9a   :  { %v125_v19 = vstv %s1089_s4  ;;  %s1124_s13 = sld [smem:[#allocation2 + $0x27]]  ;;  %s915_s4 = smov 16  }
  0x9b   :  { %483 = vrot.lane.b32.xlu1 %v481_v34, %s914_s5  ;;  %179 = vrot.lane.b32.xlu0 %v177_v33, %s913_s29  ;;  %v670_v33 = vstv %s874_s9  ;;  %v296_v34 = vmul.f32 %v295_v32, %v971_v22  ;;  %s1103_s9 = sld [smem:[#allocation2 + $0xb]] }
  0x9c   :  { %v671_v35 = vmul.f32 %v670_v33, %v1013_v58  ;;  %s1138_s15 = sld [smem:[#allocation2 + $0x33]] }
  0x9d   :  { %v390_v29 = vstv %s1097_s8  ;;  %s867_s17 = sld [smem:[#allocation2 + $0x54]] }
  0x9e   :  { %v137_v33 = vstv %s1106_s10  ;;  %s813_s19 = sld [smem:[#allocation2 + $0x1e]] }
  0x9f   :  { %258 = vrot.lane.b32.xlu1 %v256_v37, %s913_s29  ;;  %633 = vrot.lane.b32.xlu0 %v631_v38, %s913_s29  ;;  %v599_v37 = vstv %s863_s11  ;;  %v225_v38 = vmul.f32 %v224_v36, %v971_v22  ;;  %s1110_s11 = sld [smem:[#allocation2 + $0x1b]]  ;;  %v391_v36 = vmul.f32 %v390_v29, %v951_v5 }
  0xa0   :  { %v600_v39 = vmul.f32 %v599_v37, %v1013_v58  ;;  %s837_s20 = sld [smem:[#allocation2 + $0x36]] }
  0xa1   :  { %s849_s21 = sld [smem:[#allocation2 + $0x42]] }
  0xa2   :  { %s804_s23 = sld [smem:[#allocation2 + $0x15]] }
  0xa3   :  { %187 = vrot.lane.b32.xlu1 %v185_v41, %s914_s5  ;;  %562 = vrot.lane.b32.xlu0 %v560_v42, %s914_s5  ;;  %v374_v41 = vstv %s829_s14  ;;  %v679_v42 = vmul.f32 %v678_v40, %v1013_v58  ;;  %s1131_s14 = sld [smem:[#allocation2 + $0x48]] }
  0xa4   :  { %v375_v43 = vmul.f32 %v374_v41, %v971_v22  ;;  %v138_v41 = vmul.f32 %v137_v33, %v971_v22  ;;  %s873_s24 = sld [smem:[#allocation2 + $0x5a]] }
  0xa5   :  { %s816_s25 = sld [smem:[#allocation2 + $0x21]] }
  0xa6   :  { %s828_s26 = sld [smem:[#allocation2 + $0x2d]] }
  0xa7   :  { %641 = vrot.lane.b32.xlu1 %v639_v45, %s914_s5  ;;  %337 = vrot.lane.b32.xlu0 %v335_v46, %s913_s29  ;;  %v303_v45 = vstv %s818_s16  ;;  %v454_v46 = vmul.f32 %v453_v44, %v971_v22  ;;  %s846_s16 = sld [smem:[#allocation2 + $0x3f]] }
  0xa8   :  { %v304_v47 = vmul.f32 %v303_v45, %v971_v22  ;;  %s840_s27 = sld [smem:[#allocation2 + $0x39]] }
  0xab   :  { %416 = vrot.lane.b32.xlu1 %v414_v49, %s913_s29  ;;  %266 = vrot.lane.b32.xlu0 %v264_v50, %s914_s5  ;;  %v382_v49 = vstv %s830_s18  ;;  %v533_v50 = vmul.f32 %v532_v48, %v971_v22  ;;  %s870_s18 = sld [smem:[#allocation2 + $0x57]] }
  0xac   :  { %v383_v51 = vmul.f32 %v382_v49, %v971_v22 }
  0xaf   :  { %495 = vrot.lane.b32.xlu1 %v493_v53, %s913_s29  ;;  %345 = vrot.lane.b32.xlu0 %v343_v54, %s914_s5  ;;  %v461_v53 = vstv %s842_s1  ;;  %v612_v54 = vmul.f32 %v611_v52, %v971_v22  ;;  %s825_s1 = sld [smem:[#allocation2 + $0x2a]] }
  0xb0   :  { %v462_v55 = vmul.f32 %v461_v53, %v971_v22 }
  0xb3   :  { %574 = vrot.lane.b32.xlu1 %v572_v60, %s913_s29  ;;  %424 = vrot.lane.b32.xlu0 %v422_v61, %s914_s5  ;;  %v541_v60 = vmul.f32 %v540_v57, %v971_v22  ;;  %v698_v61 = vstv %s878_s22  ;;  %s861_s22 = sld [smem:[#allocation2 + $0x4e]] }
  0xb7   :  { %503 = vrot.lane.b32.xlu1 %v501_v0, %s914_s5  ;;  %199 = vrot.lane.b32.xlu0 %v197_v63, %s913_s29  ;;  %v699_v63 = vmul.f32 %v698_v61, %v971_v22  ;;  %v620_v0 = vmul.f32 %v619_v62, %v971_v22 }
  0xbb   :  { %278 = vrot.lane.b32.xlu1 %v276_v3, %s913_s29  ;;  %653 = vrot.lane.b32.xlu0 %v651_v4, %s913_s29  ;;  %v86_v3 = vmul.f32 %v85_v1, %v951_v5  ;;  %v78_v4 = vmul.f32 %v77_v2, %v951_v5 }
  0xbf   :  { %207 = vrot.lane.b32.xlu1 %v205_v8, %s914_s5  ;;  %582 = vrot.lane.b32.xlu0 %v580_v9, %s914_s5  ;;  %v105_v8 = vstv %s1081_s0  ;;  %v97_v9 = vstv %s787_s28  ;;  %s852_s0 = sld [smem:[#allocation2 + $0x45]] }
  0xc0   :  { %v106_v14 = vmul.f32 %v105_v8, %v980_v28  ;;  %v98_v15 = vmul.f32 %v97_v9, %v980_v28  ;;  %s864_s28 = sld [smem:[#allocation2 + $0x51]] }
  0xc3   :  { %661 = vrot.lane.b32.xlu1 %v659_v12, %s914_s5  ;;  %357 = vrot.lane.b32.xlu0 %v355_v13, %s913_s29 }
  0xc7   :  { %436 = vrot.lane.b32.xlu1 %v434_v16, %s913_s29  ;;  %286 = vrot.lane.b32.xlu0 %v284_v17, %s914_s5  ;;  %v311_v16 = vstv %s1085_s30  ;;  %s876_s30 = sld [smem:[#allocation2 + $0x5d]] }
  0xc8   :  { %v312_v23 = vmul.f32 %v311_v16, %v951_v5 }
  0xcb   :  { %515 = vrot.lane.b32.xlu1 %v513_v20, %s913_s29  ;;  %365 = vrot.lane.b32.xlu0 %v363_v21, %s914_s5  ;;  %v117_v20 = vstv %s1091_s6  ;;  %v172_v21 = vstv %s1095_s7  ;;  %s916_s6 = smov 32   ;;  %s917_s7 = smov 48  }
  0xcf   :  { %594 = vrot.lane.b32.xlu1 %v592_v26, %s913_s29  ;;  %444 = vrot.lane.b32.xlu0 %v442_v27, %s914_s5  ;;  %v126_v26 = vmul.f32 %v125_v19, %v1013_v58  ;;  %v118_v27 = vmul.f32 %v117_v20, %v1013_v58 }
  0xd3   :  { %523 = vrot.lane.b32.xlu1 %v521_v31, %s914_s5  ;;  %219 = vrot.lane.b32.xlu0 %v217_v30, %s913_s29  ;;  %v145_v30 = vstv %s1103_s9 }
  0xd4   :  { %v146_v40 = vmul.f32 %v145_v30, %v971_v22 }
  0xd7   :  { %298 = vrot.lane.b32.xlu1 %v296_v34, %s913_s29  ;;  %673 = vrot.lane.b32.xlu0 %v671_v35, %s913_s29  ;;  %v173_v34 = vmul.f32 %v172_v21, %v980_v28  ;;  %v251_v35 = vstv %s1110_s11 }
  0xd8   :  { %v252_v45 = vmul.f32 %v251_v35, %v980_v28 }
  0xdb   :  { %227 = vrot.lane.b32.xlu1 %v225_v38, %s914_s5  ;;  %602 = vrot.lane.b32.xlu0 %v600_v39, %s914_s5 }
  0xdf   :  { %681 = vrot.lane.b32.xlu1 %v679_v42, %s914_s5  ;;  %377 = vrot.lane.b32.xlu0 %v375_v43, %s913_s29  ;;  %v469_v42 = vstv %s1117_s12  ;;  %s73_s12 = sld [smem:[#allocation2]] }
  0xe3   :  { %456 = vrot.lane.b32.xlu1 %v454_v46, %s913_s29  ;;  %306 = vrot.lane.b32.xlu0 %v304_v47, %s914_s5  ;;  %v330_v46 = vstv %s1124_s13  ;;  %v470_v47 = vmul.f32 %v469_v42, %v951_v5  ;;  %s919_s13 = smov 64  }
  0xe7   :  { %535 = vrot.lane.b32.xlu1 %v533_v50, %s913_s29  ;;  %385 = vrot.lane.b32.xlu0 %v383_v51, %s914_s5  ;;  %v548_v51 = vstv %s1131_s14  ;;  %s786_s14 = sld [smem:[#allocation2 + $0x3]] }
  0xe8   :  { %v549_v56 = vmul.f32 %v548_v51, %v951_v5 }
  0xeb   :  { %614 = vrot.lane.b32.xlu1 %v612_v54, %s913_s29  ;;  %464 = vrot.lane.b32.xlu0 %v462_v55, %s914_s5  ;;  %v331_v54 = vmul.f32 %v330_v46, %v980_v28  ;;  %v409_v55 = vstv %s1138_s15  ;;  %s920_s15 = smov 80  }
  0xef   :  { %693 = vrot.lane.b32.xlu1 %v691_v59, %s913_s29  ;;  %543 = vrot.lane.b32.xlu0 %v541_v60, %s914_s5 }
  0xf3   :  { %701 = vrot.lane.b32.xlu1 %v699_v63, %s914_s5  ;;  %622 = vrot.lane.b32.xlu0 %v620_v0, %s914_s5  ;;  %v410_v63 = vmul.f32 %v409_v55, %v980_v28  ;;  %v488_v0 = vstv %s846_s16  ;;  %s789_s16 = sld [smem:[#allocation2 + $0x6]] }
  0xf4   :  { %v489_v7 = vmul.f32 %v488_v0, %v980_v28  ;;  %v212_v0 = vstv %s804_s23 }
  0xf7   :  { %88 = vrot.lane.b32.xlu1 %v86_v3, %s914_s5  ;;  %80 = vrot.lane.b32.xlu0 %v78_v4, %s913_s29  ;;  %v627_v4 = vstv %s867_s17  ;;  %s921_s17 = smov 112  }
  0xf8   :  { %v628_v8 = vmul.f32 %v627_v4, %v951_v5 }
  0xf9   :  { %v239_v12 = vpop.permute.xlu1 %238  ;;  %v160_v13 = vpop.permute.xlu0 %159 }
  0xfa   :  { %v241_v17 = vadd.f32 %v239_v12, %v233_v10  ;;  %v162_v18 = vadd.f32 %v160_v13, %v154_v11 }
  0xfb   :  { %108 = vrot.lane.b32.xlu1 %v106_v14, %s914_s5  ;;  %100 = vrot.lane.b32.xlu0 %v98_v15, %s913_s29 }
  0xfd   :  { %v318_v24 = vpop.permute.xlu1 %317  ;;  %v168_v25 = vpop.permute.xlu0 %167 }
  0xfe   :  { %v320_v31 = vadd.f32 %v318_v24, %v312_v23  ;;  %v170_v32 = vadd.f32 %v168_v25, %v162_v18  ;;  %v646_v23 = vstv %s870_s18 }
  0xff   :  { %128 = vrot.lane.b32.xlu1 %v126_v26, %s914_s5  ;;  %120 = vrot.lane.b32.xlu0 %v118_v27, %s913_s29  ;;  %v647_v30 = vmul.f32 %v646_v23, %v980_v28 }
 0x100   :  { %v174_v37 = vadd.f32 %v173_v34, %v170_v32 }
 0x101   :  { %v397_v38 = vpop.permute.xlu1 %396  ;;  %v247_v39 = vpop.permute.xlu0 %246 }
 0x102   :  { %v399_v43 = vadd.f32 %v397_v38, %v391_v36  ;;  %v249_v44 = vadd.f32 %v247_v39, %v241_v17  ;;  %v350_v38 = vstv %s825_s1 }
 0x103   :  { %148 = vrot.lane.b32.xlu1 %v146_v40, %s914_s5  ;;  %140 = vrot.lane.b32.xlu0 %v138_v41, %s913_s29  ;;  %s858_s29 = sld [smem:[#allocation2 + $0x4b]] }
 0x104   :  { %v253_v48 = vadd.f32 %v252_v45, %v249_v44  ;;  %s801_s5 = sld [smem:[#allocation2 + $0x12]]  ;;  %v351_v44 = vmul.f32 %v350_v38, %v1013_v58  ;;  %v429_v45 = vstv %s837_s20 }
 0x105   :  { %v476_v49 = vpop.permute.xlu1 %475  ;;  %v326_v50 = vpop.permute.xlu0 %325  ;;  %v430_v51 = vmul.f32 %v429_v45, %v1013_v58 }
 0x106   :  { %v478_v52 = vadd.f32 %v476_v49, %v470_v47  ;;  %v328_v53 = vadd.f32 %v326_v50, %v320_v31  ;;  %v271_v31 = vstv %s813_s19 }
 0x108   :  { %v332_v57 = vadd.f32 %v331_v54, %v328_v53 }
 0x109   :  { %v555_v59 = vpop.permute.xlu1 %554  ;;  %v405_v60 = vpop.permute.xlu0 %404  ;;  %v567_v13 = vstv %s858_s29  ;;  %s922_s29 = smov 96  }
 0x10a   :  { %v557_v61 = vadd.f32 %v555_v59, %v549_v56  ;;  %v407_v62 = vadd.f32 %v405_v60, %v399_v43  ;;  %v192_v14 = vstv %s801_s5  ;;  %v568_v20 = vmul.f32 %v567_v13, %v980_v28  ;;  %s792_s5 = sld [smem:[#allocation2 + $0x9]] }
 0x10b   :  { %v193_v21 = vmul.f32 %v192_v14, %v1013_v58 }
 0x10c   :  { %v411_v1 = vadd.f32 %v410_v63, %v407_v62  ;;  %v587_v63 = vstv %s861_s22 }
 0x10d   :  { %v484_v2 = vpop.permute.xlu1 %483  ;;  %v180_v3 = vpop.permute.xlu0 %179 }
 0x10e   :  { %v486_v6 = vadd.f32 %v484_v2, %v478_v52  ;;  %v182_v15 = vadd.f32 %v180_v3, %v174_v37  ;;  %v272_v37 = vmul.f32 %v271_v31, %v1013_v58  ;;  %v508_v52 = vstv %s849_s21 }
 0x10f   :  { %v509_v59 = vmul.f32 %v508_v52, %v1013_v58 }
 0x110   :  { %v490_v9 = vadd.f32 %v489_v7, %v486_v6 }
 0x111   :  { %v259_v10 = vpop.permute.xlu1 %258  ;;  %v634_v11 = vpop.permute.xlu0 %633 }
 0x112   :  { %v636_v12 = vadd.f32 %v634_v11, %v628_v8  ;;  %v261_v32 = vadd.f32 %v259_v10, %v253_v48  ;;  %v588_v8 = vmul.f32 %v587_v63, %v1013_v58  ;;  %v666_v10 = vstv %s873_s24 }
 0x115   :  { %v188_v16 = vpop.permute.xlu1 %187  ;;  %v563_v17 = vpop.permute.xlu0 %562 }
 0x116   :  { %v190_v18 = vadd.f32 %v188_v16, %v182_v15  ;;  %v565_v19 = vadd.f32 %v563_v17, %v557_v61  ;;  %v667_v17 = vmul.f32 %v666_v10, %v1013_v58 }
 0x118   :  { %v569_v24 = vadd.f32 %v568_v20, %v565_v19  ;;  %v194_v25 = vadd.f32 %v193_v21, %v190_v18  ;;  %v291_v18 = vstv %s816_s25 }
 0x119   :  { %v642_v26 = vpop.permute.xlu1 %641  ;;  %v338_v27 = vpop.permute.xlu0 %337 }
 0x11a   :  { %v644_v29 = vadd.f32 %v642_v26, %v636_v12  ;;  %v340_v39 = vadd.f32 %v338_v27, %v332_v57  ;;  %v370_v26 = vstv %s828_s26 }
 0x11c   :  { %v648_v33 = vadd.f32 %v647_v30, %v644_v29 }
 0x11d   :  { %v417_v34 = vpop.permute.xlu1 %416  ;;  %v267_v35 = vpop.permute.xlu0 %266 }
 0x11e   :  { %v269_v36 = vadd.f32 %v267_v35, %v261_v32  ;;  %v419_v46 = vadd.f32 %v417_v34, %v411_v1  ;;  %v449_v34 = vstv %s840_s27 }
 0x120   :  { %v273_v40 = vadd.f32 %v272_v37, %v269_v36 }
 0x121   :  { %v496_v41 = vpop.permute.xlu1 %495  ;;  %v346_v42 = vpop.permute.xlu0 %345 }
 0x122   :  { %v348_v43 = vadd.f32 %v346_v42, %v340_v39  ;;  %v498_v53 = vadd.f32 %v496_v41, %v490_v9  ;;  %v213_v9 = vmul.f32 %v212_v0, %v971_v22  ;;  %v528_v41 = vstv %s852_s0 }
 0x124   :  { %v352_v47 = vadd.f32 %v351_v44, %v348_v43 }
 0x125   :  { %v575_v49 = vpop.permute.xlu1 %574  ;;  %v425_v48 = vpop.permute.xlu0 %424 }
 0x126   :  { %v427_v50 = vadd.f32 %v425_v48, %v419_v46  ;;  %v577_v1 = vadd.f32 %v575_v49, %v569_v24 }
 0x128   :  { %v431_v54 = vadd.f32 %v430_v51, %v427_v50  ;;  %v607_v51 = vstv %s864_s28 }
 0x129   :  { %v504_v55 = vpop.permute.xlu1 %503  ;;  %v200_v56 = vpop.permute.xlu0 %199 }
 0x12a   :  { %v506_v57 = vadd.f32 %v504_v55, %v498_v53  ;;  %v202_v2 = vadd.f32 %v200_v56, %v194_v25  ;;  %v292_v25 = vmul.f32 %v291_v18, %v971_v22 }
 0x12c   :  { %v510_v60 = vadd.f32 %v509_v59, %v506_v57  ;;  %v608_v59 = vmul.f32 %v607_v51, %v971_v22 }
 0x12d   :  { %v279_v61 = vpop.permute.xlu1 %278  ;;  %v654_v62 = vpop.permute.xlu0 %653 }
 0x12e   :  { %v656_v11 = vadd.f32 %v654_v62, %v648_v33  ;;  %v281_v19 = vadd.f32 %v279_v61, %v273_v40  ;;  %v371_v33 = vmul.f32 %v370_v26, %v971_v22  ;;  %v450_v40 = vmul.f32 %v449_v34, %v971_v22 }
 0x131   :  { %v208_v3 = vpop.permute.xlu1 %207  ;;  %v583_v4 = vpop.permute.xlu0 %582 }
 0x132   :  { %v210_v6 = vadd.f32 %v208_v3, %v202_v2  ;;  %v585_v7 = vadd.f32 %v583_v4, %v577_v1 }
 0x134   :  { %v589_v12 = vadd.f32 %v588_v8, %v585_v7  ;;  %v214_v13 = vadd.f32 %v213_v9, %v210_v6 }
 0x135   :  { %v662_v14 = vpop.permute.xlu1 %661  ;;  %v358_v15 = vpop.permute.xlu0 %357 }
 0x136   :  { %v664_v16 = vadd.f32 %v662_v14, %v656_v11  ;;  %v360_v27 = vadd.f32 %v358_v15, %v352_v47  ;;  %v529_v47 = vmul.f32 %v528_v41, %v971_v22  ;;  %v918_v14 = vmov 0.0  }
 0x137   :  { %47 = vst [vmem:[%s1196_s2] sm:$0x1] %v918_v14  ;;  %48 = vst [vmem:[%s1197_s3] sm:$0x1] %v918_v14 }
 0x138   :  { %v668_v20 = vadd.f32 %v667_v17, %v664_v16 }
 0x139   :  { %v437_v21 = vpop.permute.xlu1 %436  ;;  %v287_v23 = vpop.permute.xlu0 %286 }
 0x13a   :  { %v289_v24 = vadd.f32 %v287_v23, %v281_v19  ;;  %v439_v35 = vadd.f32 %v437_v21, %v431_v54 }
 0x13c   :  { %v293_v29 = vadd.f32 %v292_v25, %v289_v24 }
 0x13d   :  { %v516_v30 = vpop.permute.xlu1 %515  ;;  %v366_v31 = vpop.permute.xlu0 %365 }
 0x13e   :  { %v368_v32 = vadd.f32 %v366_v31, %v360_v27  ;;  %v518_v42 = vadd.f32 %v516_v30, %v510_v60  ;;  %v686_v60 = vstv %s876_s30  ;;  %v74_v27 = vstv %s73_s12 }
 0x13f   :  { %v687_v2 = vmul.f32 %v686_v60, %v971_v22  ;;  %v75_v31 = vmul.f32 %v74_v27, %v951_v5 }
 0x140   :  { %v372_v36 = vadd.f32 %v371_v33, %v368_v32  ;;  %v93_v33 = vstv %s786_s14 }
 0x141   :  { %v595_v37 = vpop.permute.xlu1 %594  ;;  %v445_v38 = vpop.permute.xlu0 %444 }
 0x142   :  { %v447_v39 = vadd.f32 %v445_v38, %v439_v35  ;;  %v597_v52 = vadd.f32 %v595_v37, %v589_v12  ;;  %v94_v37 = vmul.f32 %v93_v33, %v980_v28 }
 0x144   :  { %v451_v43 = vadd.f32 %v450_v40, %v447_v39  ;;  %v113_v40 = vstv %s789_s16 }
 0x145   :  { %v524_v44 = vpop.permute.xlu1 %523  ;;  %v220_v45 = vpop.permute.xlu0 %219 }
 0x146   :  { %v526_v46 = vadd.f32 %v524_v44, %v518_v42  ;;  %v222_v53 = vadd.f32 %v220_v45, %v214_v13  ;;  %v114_v44 = vmul.f32 %v113_v40, %v1013_v58 }
 0x148   :  { %v530_v49 = vadd.f32 %v529_v47, %v526_v46  ;;  %v133_v47 = vstv %s792_s5 }
 0x149   :  { %v299_v48 = vpop.permute.xlu1 %298  ;;  %v674_v50 = vpop.permute.xlu0 %673 }
 0x14a   :  { %v676_v61 = vadd.f32 %v674_v50, %v668_v20  ;;  %v301_v3 = vadd.f32 %v299_v48, %v293_v29  ;;  %v134_v50 = vmul.f32 %v133_v47, %v971_v22 }
 0x14d   :  { %v228_v54 = vpop.permute.xlu1 %227  ;;  %v603_v55 = vpop.permute.xlu0 %602 }
 0x14e   :  { %v230_v56 = vadd.f32 %v228_v54, %v222_v53  ;;  %v605_v57 = vadd.f32 %v603_v55, %v597_v52 }
 0x150   :  { %706 = vrot.lane.b32.xlu0 %v230_v56, %s915_s4  ;;  %v609_v62 = vadd.f32 %v608_v59, %v605_v57 }
 0x151   :  { %v682_v63 = vpop.permute.xlu1 %681  ;;  %v378_v0 = vpop.permute.xlu0 %377 }
 0x152   :  { %v684_v1 = vadd.f32 %v682_v63, %v676_v61  ;;  %v380_v9 = vadd.f32 %v378_v0, %v372_v36 }
 0x154   :  { %v688_v4 = vadd.f32 %v687_v2, %v684_v1 }
 0x155   :  { %v457_v6 = vpop.permute.xlu1 %456  ;;  %v307_v7 = vpop.permute.xlu0 %306 }
 0x156   :  { %v309_v8 = vadd.f32 %v307_v7, %v301_v3  ;;  %v459_v13 = vadd.f32 %v457_v6, %v451_v43 }
 0x158   :  { %710 = vrot.lane.b32.xlu1 %v309_v8, %s916_s6 }
 0x159   :  { %v536_v10 = vpop.permute.xlu1 %535  ;;  %v386_v11 = vpop.permute.xlu0 %385 }
 0x15a   :  { %v388_v12 = vadd.f32 %v386_v11, %v380_v9  ;;  %v538_v18 = vadd.f32 %v536_v10, %v530_v49 }
 0x15c   :  { %714 = vrot.lane.b32.xlu0 %v388_v12, %s917_s7 }
 0x15d   :  { %v615_v15 = vpop.permute.xlu1 %614  ;;  %v465_v16 = vpop.permute.xlu0 %464 }
 0x15e   :  { %v467_v17 = vadd.f32 %v465_v16, %v459_v13  ;;  %v617_v23 = vadd.f32 %v615_v15, %v609_v62 }
 0x160   :  { %718 = vrot.lane.b32.xlu1 %v467_v17, %s919_s13  ;;  %v747_v17 = vld [vmem:[%s1196_s2] sm:$0x1] }
 0x161   :  { %v694_v19 = vpop.permute.xlu1 %693  ;;  %v544_v20 = vpop.permute.xlu0 %543 }
 0x162   :  { %v546_v21 = vadd.f32 %v544_v20, %v538_v18  ;;  %v696_v24 = vadd.f32 %v694_v19, %v688_v4  ;;  %v758_v20 = vld [vmem:[%s1197_s3] sm:$0x1] }
 0x164   :  { %722 = vrot.lane.b32.xlu0 %v546_v21, %s920_s15 }
 0x165   :  { %v702_v25 = vpop.permute.xlu1 %701  ;;  %v623_v26 = vpop.permute.xlu0 %622 }
 0x166   :  { %v704_v29 = vadd.f32 %v702_v25, %v696_v24  ;;  %v625_v30 = vadd.f32 %v623_v26, %v617_v23 }
 0x168   :  { %730 = vrot.lane.b32.xlu0 %v704_v29, %s921_s17  ;;  %726 = vrot.lane.b32.xlu1 %v625_v30, %s922_s29 }
 0x169   :  { %v81_v32 = vpop.permute.xlu0 %80  ;;  %v89_v35 = vpop.permute.xlu1 %88 }
 0x16a   :  { %v83_v34 = vadd.f32 %v81_v32, %v75_v31 }
 0x16c   :  { %v91_v36 = vadd.f32 %v89_v35, %v83_v34 }
 0x16d   :  { %v101_v39 = vpop.permute.xlu0 %100  ;;  %v109_v42 = vpop.permute.xlu1 %108 }
 0x16e   :  { %v95_v38 = vadd.f32 %v94_v37, %v91_v36 }
 0x170   :  { %v103_v41 = vadd.f32 %v101_v39, %v95_v38 }
 0x171   :  { %v121_v46 = vpop.permute.xlu0 %120  ;;  %v129_v49 = vpop.permute.xlu1 %128 }
 0x172   :  { %v111_v43 = vadd.f32 %v109_v42, %v103_v41 }
 0x174   :  { %v115_v45 = vadd.f32 %v114_v44, %v111_v43 }
 0x175   :  { %v141_v52 = vpop.permute.xlu0 %140  ;;  %v149_v28 = vpop.permute.xlu1 %148 }
 0x176   :  { %v123_v5 = vadd.f32 %v121_v46, %v115_v45 }
 0x178   :  { %v131_v48 = vadd.f32 %v129_v49, %v123_v5 }
 0x17a   :  { %v135_v51 = vadd.f32 %v134_v50, %v131_v48 }
 0x17c   :  { %v143_v54 = vadd.f32 %v141_v52, %v135_v51 }
 0x17e   :  { %v151_v57 = vadd.f32 %v149_v28, %v143_v54 }
 0x1c2   :  { %v707_v53 = vpop.permute.xlu0 %706 }
 0x1c3   :  { %v734_v58 = vsel %vm733_vm2, %v151_v57, %v707_v53 }
 0x1ca   :  { %v711_v55 = vpop.permute.xlu1 %710 }
 0x1cb   :  { %v736_v61 = vsel %vm735_vm3, %v734_v58, %v711_v55 }
 0x1ce   :  { %v715_v56 = vpop.permute.xlu0 %714 }
 0x1cf   :  { %v738_v62 = vsel %vm737_vm4, %v736_v61, %v715_v56 }
 0x1d2   :  { %v719_v59 = vpop.permute.xlu1 %718 }
 0x1d3   :  { %v740_v22 = vsel %vm739_vm5, %v738_v62, %v719_v59 }
 0x1d6   :  { %v723_v60 = vpop.permute.xlu0 %722 }
 0x1d7   :  { %v742_v63 = vsel %vm741_vm6, %v740_v22, %v723_v60 }
 0x1da   :  { %v727_v0 = vpop.permute.xlu1 %726  ;;  %v731_v1 = vpop.permute.xlu0 %730 }
 0x1db   :  { %v744_v2 = vsel %vm743_vm7, %v742_v63, %v727_v0 }
 0x1dc   :  { %v746_v3 = vsel %vm745_vm8, %v744_v2, %v731_v1 }
 0x1dd   :  { %v749_v4 = vsel %vm748_vm9, %v746_v3, 0.0  ;;  %v759_v6 = vmul.f32 %v746_v3, %v746_v3 }
 0x1de   :  { %v750_v7 = vrot.slane %v749_v4, 4 }
 0x1df   :  { %v760_v8 = vsel %vm748_vm9, %v759_v6, 0.0 }
 0x1e0   :  { %v751_v9 = vadd.f32 %v750_v7, %v749_v4  ;;  %v761_v10 = vrot.slane %v760_v8, 4 }
 0x1e2   :  { %v752_v11 = vrot.slane %v751_v9, 2  ;;  %v762_v12 = vadd.f32 %v761_v10, %v760_v8 }
 0x1e4   :  { %v753_v13 = vadd.f32 %v752_v11, %v751_v9  ;;  %v763_v14 = vrot.slane %v762_v12, 2 }
 0x1e6   :  { %v754_v15 = vrot.slane %v753_v13, 1  ;;  %v764_v16 = vadd.f32 %v763_v14, %v762_v12 }
 0x1e8   :  { %v755_v18 = vadd.f32 %v754_v15, %v753_v13  ;;  %v765_v19 = vrot.slane %v764_v16, 1 }
 0x1ea   :  { %v756_v21 = vadd.f32 %v755_v18, %v747_v17  ;;  %v766_v23 = vadd.f32 %v765_v19, %v764_v16 }
 0x1ec   :  { %757 = vst [vmem:[%s1196_s2] sm:$0x1] %v756_v21  ;;  %v767_v24 = vadd.f32 %v766_v23, %v758_v20 }
 0x1ee   :  { %768 = vst [vmem:[%s1197_s3] sm:$0x1] %v767_v24 }
 0x1ef   :  { %777 = vsyncpa [#allocation3], 1 }

// kernel: conv_dropout_selu.3
= control target key start
LH: loop header
LB: loop body
LE: loop exit
PB: predicated region body
PF: predicated region fallthrough
CT: control target
= control target key end

     0   :  { %10 = vsyncpa [#allocation3], 0  ;;  %s1309_s0 = inlined_call_operand.vmem [shape: f32[2,64], index: 0, kind: input, shape index: {}]   ;;  %s1310_s1 = inlined_call_operand.vmem [shape: f32[96], index: 1, kind: input, shape index: {}]   ;;  %s1311_s2 = inlined_call_operand.vmem [shape: f32[8], index: 2, kind: input, shape index: {}]   ;;  %s1312_s3 = inlined_call_operand.vmem [shape: f32[8], index: 3, kind: input, shape index: {}]   ;;  %s1313_s4 = inlined_call_operand.vmem [shape: f32[2,128], index: 4, kind: input, shape index: {}]   ;;  %s1314_s5 = inlined_call_operand.vmem [shape: f32[2,128], index: 5, kind: output, shape index: {}]  }
   0x1   :  { %11 = vsyncpa [#allocation5], 0  ;;  %s30_s20 = sshll.u32 %s1311_s2, 4  ;;  %s20_s23 = sshll.u32 %s1310_s1, 4  ;;  %s31_s20 = int_to_ptr.vmem [resolvable:$true] %s30_s20  ;;  %s21_s23 = int_to_ptr.vmem [resolvable:$true] %s20_s23 }
   0x2   :  { %s948_s24 = scalar_lea.vmem %s31_s20, 16  ;;  %p953_p1 = scmp.lt.s32.totalorder %s31_s20, %s31_s20 }
   0x3   :  { %p949_p0 = scmp.ne.s32.totalorder %s31_s20, %s948_s24  ;;  %p954_p2 = scmp.lt.s32.totalorder %s948_s24, %s948_s24 }
   0x5   :  { %p955_p3 = por %p954_p2, %p953_p1 }
   0x7   :  { %p956_p4 = pnand %p955_p3, %p949_p0 }
   0x9   :  { %959 = shalt.err (!%p956_p4)
}
   0xa   :  { %s988_s25 = smov [#allocation4]   ;;  %s960_s26 = scalar_lea.vmem %s21_s23, 16 }
   0xb   :  { %33 = dma.vmem_to_smem %s31_s20, 16, %s988_s25, [#allocation5]  }
   0xc   :  { %p961_p5 = scmp.ne.s32.totalorder %s21_s23, %s960_s26  ;;  %p965_p6 = scmp.lt.s32.totalorder %s21_s23, %s21_s23 }
   0xd   :  { %p966_p7 = scmp.lt.s32.totalorder %s960_s26, %s960_s26 }
   0xf   :  { %p967_p8 = por %p966_p7, %p965_p6 }
  0x11   :  { %p968_p9 = pnand %p967_p8, %p961_p5 }
  0x13   :  { %971 = shalt.err (!%p968_p9)
}
  0x14   :  { %s989_s2 = smov [#allocation2]   ;;  %s40_s28 = sshll.u32 %s1312_s3, 4  ;;  %s41_s28 = int_to_ptr.vmem [resolvable:$true] %s40_s28 }
  0x15   :  { %23 = dma.vmem_to_smem %s21_s23, 16, %s989_s2, [#allocation3]  }
  0x16   :  { %s972_s29 = scalar_lea.vmem %s41_s28, 16  ;;  %p977_p11 = scmp.lt.s32.totalorder %s41_s28, %s41_s28 }
  0x17   :  { %p973_p10 = scmp.ne.s32.totalorder %s41_s28, %s972_s29  ;;  %p978_p12 = scmp.lt.s32.totalorder %s972_s29, %s972_s29 }
  0x19   :  { %p979_p13 = por %p978_p12, %p977_p11 }
  0x1b   :  { %p980_p0 = pnand %p979_p13, %p973_p10 }
  0x1d   :  { %983 = shalt.err (!%p980_p0)
}
  0x1e   :  { %s990_s30 = smov [#allocation6]  }
  0x1f   :  { %43 = dma.vmem_to_smem %s41_s28, 16, %s990_s30, [#allocation5]  }
  0x20   :  { %984 = dma.done.wait [#allocation3], 16  }
  0x21   :  { %985 = vsyncadd [#allocation3], 4294967280 }
  0x22   :  { %986 = dma.done.wait [#allocation5], 32  }
  0x23   :  { %987 = vsyncadd [#allocation5], 4294967264 }
  0x24   :  { %55 = sfence }
  0x25   :  { %v56_v0 = vld [vmem:[%s1309_s0] sm:$0x3]  ;;  %s991_s3 = smov 1   ;;  %s992_s8 = smov 97   ;;  %vm61_vm0 = vcmask 7168   ;;  %vm63_vm1 = vcmask 138240  }
  0x26   :  { %58 = vrot.lane.b32.xlu0 %v56_v0, %s991_s3  ;;  %70 = vrot.lane.b32.xlu1 %v56_v0, %s992_s8  ;;  %s993_s9 = smov 113   ;;  %s994_s10 = smov 81   ;;  %vm788_vm2 = vcmask 130048   ;;  %vm790_vm3 = vcmask 261120   ;;  %vm792_vm4 = vcmask 392192   ;;  %vm794_vm5 = vcmask 523264  }
  0x27   :  { %s844_s11 = sld [smem:[#allocation2 + $0x19]]  ;;  %s995_s18 = smov 127   ;;  %vm796_vm6 = vcmask 654336   ;;  %vm798_vm7 = vcmask 785408   ;;  %vm800_vm8 = vcmask 916480  }
  0x28   :  { %s832_s12 = sld [smem:[#allocation2 + $0xd]]  ;;  %s996_s21 = smov 126  }
  0x29   :  { %s856_s13 = sld [smem:[#allocation2 + $0x25]] }
  0x2a   :  { %65 = vrot.lane.b32.xlu0 %v56_v0, %s993_s9  ;;  %75 = vrot.lane.b32.xlu1 %v56_v0, %s994_s10  ;;  %s833_s14 = sld [smem:[#allocation2 + $0xe]] }
  0x2b   :  { %s868_s15 = sld [smem:[#allocation2 + $0x31]] }
  0x2c   :  { %s845_s16 = sld [smem:[#allocation2 + $0x1a]] }
  0x2d   :  { %v242_v2 = vstv %s844_s11  ;;  %s880_s0 = sld [smem:[#allocation2 + $0x3d]] }
  0x2e   :  { %v163_v3 = vstv %s832_s12  ;;  %s857_s17 = sld [smem:[#allocation2 + $0x26]] }
  0x2f   :  { %v321_v8 = vstv %s856_s13  ;;  %s1058_s19 = sld [smem:[#allocation2 + $0x49]] }
  0x30   :  { %v171_v9 = vstv %s833_s14  ;;  %s869_s20 = sld [smem:[#allocation2 + $0x32]] }
  0x31   :  { %v400_v13 = vstv %s868_s15  ;;  %s835_s22 = sld [smem:[#allocation2 + $0x10]] }
  0x32   :  { %v250_v14 = vstv %s845_s16  ;;  %s881_s23 = sld [smem:[#allocation2 + $0x3e]] }
  0x33   :  { %v479_v18 = vstv %s880_s0  ;;  %s847_s24 = sld [smem:[#allocation2 + $0x1c]] }
  0x34   :  { %v329_v19 = vstv %s857_s17  ;;  %s904_s25 = sld [smem:[#allocation2 + $0x55]] }
  0x35   :  { %v558_v26 = vstv %s1058_s19  ;;  %s836_s26 = sld [smem:[#allocation2 + $0x11]] }
  0x36   :  { %v408_v27 = vstv %s869_s20  ;;  %s893_s2 = sld [smem:[#allocation2 + $0x4a]] }
  0x37   :  { %v183_v29 = vstv %s835_s22  ;;  %s905_s1 = sld [smem:[#allocation2 + $0x56]] }
  0x38   :  { %v487_v32 = vstv %s881_s23  ;;  %s859_s27 = sld [smem:[#allocation2 + $0x28]] }
  0x39   :  { %v262_v35 = vstv %s847_s24  ;;  %s871_s28 = sld [smem:[#allocation2 + $0x34]] }
  0x3a   :  { %v637_v36 = vstv %s904_s25  ;;  %s848_s29 = sld [smem:[#allocation2 + $0x1d]] }
  0x3b   :  { %v191_v39 = vstv %s836_s26  ;;  %s883_s30 = sld [smem:[#allocation2 + $0x40]] }
  0x3c   :  { %v566_v40 = vstv %s893_s2  ;;  %s860_s6 = sld [smem:[#allocation2 + $0x29]] }
  0x3d   :  { %v645_v43 = vstv %s905_s1  ;;  %s895_s7 = sld [smem:[#allocation2 + $0x4c]] }
  0x3e   :  { %v341_v44 = vstv %s859_s27  ;;  %s872_s3 = sld [smem:[#allocation2 + $0x35]] }
  0x3f   :  { %v420_v47 = vstv %s871_s28  ;;  %s838_s8 = sld [smem:[#allocation2 + $0x13]] }
  0x40   :  { %v270_v48 = vstv %s848_s29  ;;  %s884_s9 = sld [smem:[#allocation2 + $0x41]] }
  0x41   :  { %v499_v51 = vstv %s883_s30  ;;  %s907_s10 = sld [smem:[#allocation2 + $0x58]] }
  0x42   :  { %v349_v52 = vstv %s860_s6  ;;  %s850_s11 = sld [smem:[#allocation2 + $0x1f]] }
  0x43   :  { %v578_v56 = vstv %s895_s7  ;;  %s896_s12 = sld [smem:[#allocation2 + $0x4d]] }
  0x44   :  { %v428_v57 = vstv %s872_s3  ;;  %s839_s13 = sld [smem:[#allocation2 + $0x14]] }
  0x45   :  { %v203_v59 = vstv %s838_s8  ;;  %s908_s14 = sld [smem:[#allocation2 + $0x59]] }
  0x46   :  { %v507_v62 = vstv %s884_s9  ;;  %s862_s15 = sld [smem:[#allocation2 + $0x2b]] }
  0x47   :  { %s874_s16 = sld [smem:[#allocation2 + $0x37]] }
  0x48   :  { %s851_s0 = sld [smem:[#allocation2 + $0x20]] }
  0x49   :  { %s886_s17 = sld [smem:[#allocation2 + $0x43]] }
  0x4a   :  { %s863_s19 = sld [smem:[#allocation2 + $0x2c]] }
  0x4b   :  { %s898_s20 = sld [smem:[#allocation2 + $0x4f]] }
  0x4c   :  { %s875_s22 = sld [smem:[#allocation2 + $0x38]] }
  0x4d   :  { %s841_s23 = sld [smem:[#allocation2 + $0x16]] }
  0x4e   :  { %s887_s24 = sld [smem:[#allocation2 + $0x44]] }
  0x4f   :  { %s910_s25 = sld [smem:[#allocation2 + $0x5b]] }
  0x50   :  { %s853_s26 = sld [smem:[#allocation2 + $0x22]] }
  0x51   :  { %s899_s2 = sld [smem:[#allocation2 + $0x50]] }
  0x52   :  { %s842_s1 = sld [smem:[#allocation2 + $0x17]] }
  0x53   :  { %s911_s27 = sld [smem:[#allocation2 + $0x5c]] }
  0x54   :  { %s865_s28 = sld [smem:[#allocation2 + $0x2e]] }
  0x55   :  { %s877_s29 = sld [smem:[#allocation2 + $0x3a]] }
  0x56   :  { %s854_s30 = sld [smem:[#allocation2 + $0x23]] }
  0x57   :  { %s889_s6 = sld [smem:[#allocation2 + $0x46]] }
  0x58   :  { %s866_s7 = sld [smem:[#allocation2 + $0x2f]] }
  0x59   :  { %s901_s3 = sld [smem:[#allocation2 + $0x52]] }
  0x5a   :  { %s878_s8 = sld [smem:[#allocation2 + $0x3b]] }
  0x5b   :  { %s913_s9 = sld [smem:[#allocation2 + $0x5e]] }
  0x98   :  { %v59_v1 = vpop.permute.xlu0 %58  ;;  %v1054_v10 = vpop.permute.xlu1 %70 }
  0x99   :  { %v62_v4 = vsel %vm61_vm0, 0.0, %v59_v1  ;;  %v73_v55 = vsel %vm61_vm0, 0.0, %v1054_v10  ;;  %v282_v1 = vstv %s850_s11  ;;  %v665_v10 = vstv %s908_s14  ;;  %s914_s11 = sld [smem:[#allocation2 + $0x5f]] }
  0x9a   :  { %v1048_v5 = vsel %vm63_vm1, %v62_v4, 0.0  ;;  %v1110_v58 = vsel %vm63_vm1, %v73_v55, 0.0  ;;  %s820_s14 = sld [smem:[#allocation2 + $0x1]] }
  0x9b   :  { %v243_v6 = vmul.f32 %v242_v2, %v1048_v5  ;;  %v164_v7 = vmul.f32 %v163_v3, %v1048_v5  ;;  %v322_v11 = vmul.f32 %v321_v8, %v1048_v5  ;;  %v172_v12 = vmul.f32 %v171_v9, %v1048_v5 }
  0x9c   :  { %v76_v15 = vpop.permute.xlu1 %75  ;;  %v401_v16 = vmul.f32 %v400_v13, %v1048_v5  ;;  %v251_v17 = vmul.f32 %v250_v14, %v1048_v5  ;;  %v66_v20 = vpop.permute.xlu0 %65  ;;  %v480_v23 = vmul.f32 %v479_v18, %v1048_v5  ;;  %v330_v24 = vmul.f32 %v329_v19, %v1048_v5 }
  0x9d   :  { %245 = vrot.lane.b32.xlu1 %v243_v6, %s995_s18  ;;  %166 = vrot.lane.b32.xlu0 %v164_v7, %s995_s18  ;;  %v78_v21 = vsel %vm61_vm0, 0.0, %v76_v15  ;;  %v68_v25 = vsel %vm61_vm0, 0.0, %v66_v20  ;;  %v559_v30 = vmul.f32 %v558_v26, %v1048_v5  ;;  %v409_v31 = vmul.f32 %v408_v27, %v1048_v5 }
  0x9e   :  { %v1068_v22 = vsel %vm63_vm1, %v78_v21, 0.0  ;;  %v1077_v28 = vsel %vm63_vm1, %v68_v25, 0.0  ;;  %v488_v34 = vmul.f32 %v487_v32, %v1048_v5  ;;  %v638_v38 = vmul.f32 %v637_v36, %v1048_v5 }
  0x9f   :  { %v184_v33 = vmul.f32 %v183_v29, %v1077_v28  ;;  %v263_v37 = vmul.f32 %v262_v35, %v1077_v28  ;;  %v192_v41 = vmul.f32 %v191_v39, %v1077_v28  ;;  %v567_v42 = vmul.f32 %v566_v40, %v1048_v5 }
  0xa0   :  { %v646_v45 = vmul.f32 %v645_v43, %v1048_v5  ;;  %v342_v46 = vmul.f32 %v341_v44, %v1077_v28  ;;  %v421_v49 = vmul.f32 %v420_v47, %v1077_v28  ;;  %v271_v50 = vmul.f32 %v270_v48, %v1077_v28 }
  0xa1   :  { %324 = vrot.lane.b32.xlu1 %v322_v11, %s995_s18  ;;  %174 = vrot.lane.b32.xlu0 %v172_v12, %s996_s21  ;;  %v500_v53 = vmul.f32 %v499_v51, %v1077_v28  ;;  %v350_v54 = vmul.f32 %v349_v52, %v1077_v28  ;;  %v579_v60 = vmul.f32 %v578_v56, %v1077_v28  ;;  %v657_v2 = vstv %s907_s10  ;;  %s890_s10 = sld [smem:[#allocation2 + $0x47]] }
  0xa2   :  { %v429_v61 = vmul.f32 %v428_v57, %v1077_v28  ;;  %v204_v63 = vmul.f32 %v203_v59, %v1110_v58  ;;  %v508_v0 = vmul.f32 %v507_v62, %v1077_v28  ;;  %v283_v3 = vmul.f32 %v282_v1, %v1110_v58 }
  0xa3   :  { %v658_v4 = vmul.f32 %v657_v2, %v1077_v28  ;;  %v211_v6 = vstv %s839_s13  ;;  %v586_v7 = vstv %s896_s12  ;;  %v361_v11 = vstv %s862_s15  ;;  %s902_s12 = sld [smem:[#allocation2 + $0x53]] }
  0xa4   :  { %v212_v8 = vmul.f32 %v211_v6, %v1110_v58  ;;  %v587_v9 = vmul.f32 %v586_v7, %v1077_v28  ;;  %v666_v12 = vmul.f32 %v665_v10, %v1077_v28  ;;  %v362_v13 = vmul.f32 %v361_v11, %v1110_v58  ;;  %s821_s13 = sld [smem:[#allocation2 + $0x2]] }
  0xa5   :  { %403 = vrot.lane.b32.xlu1 %v401_v16, %s995_s18  ;;  %253 = vrot.lane.b32.xlu0 %v251_v17, %s996_s21  ;;  %v440_v14 = vstv %s874_s16  ;;  %v290_v15 = vstv %s851_s0  ;;  %s1172_s15 = sld [smem:[#allocation2 + $0x18]] }
  0xa6   :  { %v441_v16 = vmul.f32 %v440_v14, %v1110_v58  ;;  %v291_v17 = vmul.f32 %v290_v15, %v1110_v58  ;;  %v519_v18 = vstv %s886_s17  ;;  %v369_v19 = vstv %s863_s19  ;;  %s1174_s16 = sld [smem:[#allocation2 + $0xc]] }
  0xa7   :  { %v520_v20 = vmul.f32 %v519_v18, %v1110_v58  ;;  %v370_v21 = vmul.f32 %v369_v19, %v1110_v58  ;;  %v223_v25 = vstv %s841_s23  ;;  %v527_v29 = vstv %s887_s24  ;;  %s1178_s0 = sld [smem:[#allocation2 + $0x5]] }
  0xa8   :  { %v302_v32 = vstv %s853_s26  ;;  %v231_v36 = vstv %s842_s1  ;;  %v685_v40 = vstv %s911_s27  ;;  %v460_v44 = vstv %s877_s29  ;;  %s823_s17 = sld [smem:[#allocation2 + $0x4]] }
  0xa9   :  { %482 = vrot.lane.b32.xlu1 %v480_v23, %s995_s18  ;;  %332 = vrot.lane.b32.xlu0 %v330_v24, %s996_s21  ;;  %v598_v23 = vstv %s898_s20  ;;  %v448_v24 = vstv %s875_s22  ;;  %s1182_s19 = sld [smem:[#allocation2 + $0x24]] }
  0xaa   :  { %v599_v26 = vmul.f32 %v598_v23, %v1110_v58  ;;  %v449_v27 = vmul.f32 %v448_v24, %v1110_v58  ;;  %v539_v48 = vstv %s889_s6  ;;  %v618_v52 = vstv %s901_s3  ;;  %s1186_s20 = sld [smem:[#allocation2 + $0x8]] }
  0xab   :  { %v697_v56 = vstv %s913_s9  ;;  %v547_v57 = vstv %s890_s10  ;;  %v626_v62 = vstv %s902_s12  ;;  %v92_v1 = vstv %s821_s13  ;;  %s1188_s22 = sld [smem:[#allocation2 + $0x7]] }
  0xac   :  { %v698_v59 = vmul.f32 %v697_v56, %v1068_v22  ;;  %v84_v2 = vstv %s820_s14  ;;  %s1192_s23 = sld [smem:[#allocation2 + $0xf]]  ;;  %v239_v6 = vstv %s1172_s15  ;;  %v160_v7 = vstv %s1174_s16 }
  0xad   :  { %561 = vrot.lane.b32.xlu1 %v559_v30, %s995_s18  ;;  %411 = vrot.lane.b32.xlu0 %v409_v31, %s996_s21  ;;  %v224_v30 = vmul.f32 %v223_v25, %v1068_v22  ;;  %v528_v31 = vmul.f32 %v527_v29, %v1110_v58  ;;  %s1194_s24 = sld [smem:[#allocation2 + $0x30]]  ;;  %v240_v10 = vmul.f32 %v239_v6, %v1048_v5 }
  0xae   :  { %s1203_s26 = sld [smem:[#allocation2 + $0xa]]  ;;  %v161_v11 = vmul.f32 %v160_v7, %v1048_v5 }
  0xaf   :  { %s1214_s1 = sld [smem:[#allocation2 + $0x3c]] }
  0xb0   :  { %v132_v19 = vstv %s1186_s20  ;;  %s1221_s27 = sld [smem:[#allocation2 + $0x27]] }
  0xb1   :  { %490 = vrot.lane.b32.xlu1 %v488_v34, %s996_s21  ;;  %186 = vrot.lane.b32.xlu0 %v184_v33, %s995_s18  ;;  %v677_v33 = vstv %s910_s25  ;;  %v303_v34 = vmul.f32 %v302_v32, %v1068_v22  ;;  %s1200_s25 = sld [smem:[#allocation2 + $0xb]] }
  0xb2   :  { %v678_v35 = vmul.f32 %v677_v33, %v1110_v58  ;;  %s1235_s29 = sld [smem:[#allocation2 + $0x33]] }
  0xb3   :  { %v397_v29 = vstv %s1194_s24  ;;  %s903_s6 = sld [smem:[#allocation2 + $0x54]] }
  0xb4   :  { %v144_v33 = vstv %s1203_s26  ;;  %s849_s3 = sld [smem:[#allocation2 + $0x1e]] }
  0xb5   :  { %265 = vrot.lane.b32.xlu1 %v263_v37, %s995_s18  ;;  %640 = vrot.lane.b32.xlu0 %v638_v38, %s995_s18  ;;  %v606_v37 = vstv %s899_s2  ;;  %v232_v38 = vmul.f32 %v231_v36, %v1068_v22  ;;  %s1207_s2 = sld [smem:[#allocation2 + $0x1b]]  ;;  %v398_v36 = vmul.f32 %v397_v29, %v1048_v5 }
  0xb6   :  { %v607_v39 = vmul.f32 %v606_v37, %v1110_v58  ;;  %s873_s9 = sld [smem:[#allocation2 + $0x36]] }
  0xb7   :  { %s885_s10 = sld [smem:[#allocation2 + $0x42]] }
  0xb8   :  { %s840_s12 = sld [smem:[#allocation2 + $0x15]] }
  0xb9   :  { %194 = vrot.lane.b32.xlu1 %v192_v41, %s996_s21  ;;  %569 = vrot.lane.b32.xlu0 %v567_v42, %s996_s21  ;;  %v381_v41 = vstv %s865_s28  ;;  %v686_v42 = vmul.f32 %v685_v40, %v1110_v58  ;;  %s1228_s28 = sld [smem:[#allocation2 + $0x48]] }
  0xba   :  { %v382_v43 = vmul.f32 %v381_v41, %v1068_v22  ;;  %v145_v41 = vmul.f32 %v144_v33, %v1068_v22  ;;  %s909_s13 = sld [smem:[#allocation2 + $0x5a]] }
  0xbb   :  { %s852_s14 = sld [smem:[#allocation2 + $0x21]] }
  0xbc   :  { %s864_s15 = sld [smem:[#allocation2 + $0x2d]] }
  0xbd   :  { %648 = vrot.lane.b32.xlu1 %v646_v45, %s996_s21  ;;  %344 = vrot.lane.b32.xlu0 %v342_v46, %s995_s18  ;;  %v310_v45 = vstv %s854_s30  ;;  %v461_v46 = vmul.f32 %v460_v44, %v1068_v22  ;;  %s882_s30 = sld [smem:[#allocation2 + $0x3f]] }
  0xbe   :  { %v311_v47 = vmul.f32 %v310_v45, %v1068_v22  ;;  %s876_s16 = sld [smem:[#allocation2 + $0x39]] }
  0xbf   :  { %s912_s20 = sld [smem:[#allocation2 + $0x5d]] }
  0xc0   :  { %s918_s24 = sld [smem:[#allocation6 + $0x2]] }
  0xc1   :  { %423 = vrot.lane.b32.xlu1 %v421_v49, %s995_s18  ;;  %273 = vrot.lane.b32.xlu0 %v271_v50, %s996_s21  ;;  %v389_v49 = vstv %s866_s7  ;;  %v540_v50 = vmul.f32 %v539_v48, %v1068_v22  ;;  %s906_s7 = sld [smem:[#allocation2 + $0x57]] }
  0xc2   :  { %v390_v51 = vmul.f32 %v389_v49, %v1068_v22  ;;  %s1269_s26 = sld [smem:[#allocation6 + $0x3]] }
  0xc5   :  { %502 = vrot.lane.b32.xlu1 %v500_v53, %s995_s18  ;;  %352 = vrot.lane.b32.xlu0 %v350_v54, %s996_s21  ;;  %v468_v53 = vstv %s878_s8  ;;  %v619_v54 = vmul.f32 %v618_v52, %v1068_v22  ;;  %s861_s8 = sld [smem:[#allocation2 + $0x2a]] }
  0xc6   :  { %v469_v55 = vmul.f32 %v468_v53, %v1068_v22 }
  0xc9   :  { %581 = vrot.lane.b32.xlu1 %v579_v60, %s995_s18  ;;  %431 = vrot.lane.b32.xlu0 %v429_v61, %s996_s21  ;;  %v548_v60 = vmul.f32 %v547_v57, %v1068_v22  ;;  %v705_v61 = vstv %s914_s11  ;;  %s897_s11 = sld [smem:[#allocation2 + $0x4e]] }
  0xcd   :  { %510 = vrot.lane.b32.xlu1 %v508_v0, %s996_s21  ;;  %206 = vrot.lane.b32.xlu0 %v204_v63, %s995_s18  ;;  %v706_v63 = vmul.f32 %v705_v61, %v1068_v22  ;;  %v627_v0 = vmul.f32 %v626_v62, %v1068_v22 }
  0xd1   :  { %285 = vrot.lane.b32.xlu1 %v283_v3, %s995_s18  ;;  %660 = vrot.lane.b32.xlu0 %v658_v4, %s995_s18  ;;  %v93_v3 = vmul.f32 %v92_v1, %v1048_v5  ;;  %v85_v4 = vmul.f32 %v84_v2, %v1048_v5 }
  0xd5   :  { %214 = vrot.lane.b32.xlu1 %v212_v8, %s996_s21  ;;  %589 = vrot.lane.b32.xlu0 %v587_v9, %s996_s21  ;;  %v112_v8 = vstv %s1178_s0  ;;  %v104_v9 = vstv %s823_s17  ;;  %s888_s0 = sld [smem:[#allocation2 + $0x45]] }
  0xd6   :  { %v113_v14 = vmul.f32 %v112_v8, %v1077_v28  ;;  %v105_v15 = vmul.f32 %v104_v9, %v1077_v28  ;;  %s900_s17 = sld [smem:[#allocation2 + $0x51]] }
  0xd9   :  { %668 = vrot.lane.b32.xlu1 %v666_v12, %s996_s21  ;;  %364 = vrot.lane.b32.xlu0 %v362_v13, %s995_s18 }
  0xdd   :  { %443 = vrot.lane.b32.xlu1 %v441_v16, %s995_s18  ;;  %293 = vrot.lane.b32.xlu0 %v291_v17, %s996_s21  ;;  %v318_v16 = vstv %s1182_s19  ;;  %s915_s19 = sld [smem:[#allocation4 + $0x1]] }
  0xde   :  { %v319_v23 = vmul.f32 %v318_v16, %v1048_v5 }
  0xe1   :  { %522 = vrot.lane.b32.xlu1 %v520_v20, %s995_s18  ;;  %372 = vrot.lane.b32.xlu0 %v370_v21, %s996_s21  ;;  %v124_v20 = vstv %s1188_s22  ;;  %v179_v21 = vstv %s1192_s23  ;;  %s916_s22 = sld [smem:[#allocation6 + $0x1]] }
  0xe2   :  { %s917_s23 = sld [smem:[#allocation4 + $0x2]] }
  0xe5   :  { %601 = vrot.lane.b32.xlu1 %v599_v26, %s995_s18  ;;  %451 = vrot.lane.b32.xlu0 %v449_v27, %s996_s21  ;;  %v133_v26 = vmul.f32 %v132_v19, %v1110_v58  ;;  %v125_v27 = vmul.f32 %v124_v20, %v1110_v58 }
  0xe9   :  { %530 = vrot.lane.b32.xlu1 %v528_v31, %s996_s21  ;;  %226 = vrot.lane.b32.xlu0 %v224_v30, %s995_s18  ;;  %v152_v30 = vstv %s1200_s25  ;;  %s919_s25 = sld [smem:[#allocation4 + $0x3]] }
  0xea   :  { %v153_v40 = vmul.f32 %v152_v30, %v1068_v22 }
  0xed   :  { %305 = vrot.lane.b32.xlu1 %v303_v34, %s995_s18  ;;  %680 = vrot.lane.b32.xlu0 %v678_v35, %s995_s18  ;;  %v180_v34 = vmul.f32 %v179_v21, %v1077_v28  ;;  %v258_v35 = vstv %s1207_s2  ;;  %s997_s2 = smov 16  }
  0xee   :  { %v259_v45 = vmul.f32 %v258_v35, %v1077_v28 }
  0xf1   :  { %234 = vrot.lane.b32.xlu1 %v232_v38, %s996_s21  ;;  %609 = vrot.lane.b32.xlu0 %v607_v39, %s996_s21 }
  0xf5   :  { %688 = vrot.lane.b32.xlu1 %v686_v42, %s996_s21  ;;  %384 = vrot.lane.b32.xlu0 %v382_v43, %s995_s18  ;;  %v476_v42 = vstv %s1214_s1  ;;  %s921_s1 = sld [smem:[#allocation4 + $0x4]] }
  0xf9   :  { %463 = vrot.lane.b32.xlu1 %v461_v46, %s995_s18  ;;  %313 = vrot.lane.b32.xlu0 %v311_v47, %s996_s21  ;;  %v337_v46 = vstv %s1221_s27  ;;  %v477_v47 = vmul.f32 %v476_v42, %v1048_v5  ;;  %s1271_s27 = sld [smem:[#allocation6 + $0x4]] }
  0xfd   :  { %542 = vrot.lane.b32.xlu1 %v540_v50, %s995_s18  ;;  %392 = vrot.lane.b32.xlu0 %v390_v51, %s996_s21  ;;  %v555_v51 = vstv %s1228_s28  ;;  %s1273_s28 = sld [smem:[#allocation4 + $0x5]] }
  0xfe   :  { %v556_v56 = vmul.f32 %v555_v51, %v1048_v5 }
 0x101   :  { %621 = vrot.lane.b32.xlu1 %v619_v54, %s995_s18  ;;  %471 = vrot.lane.b32.xlu0 %v469_v55, %s996_s21  ;;  %v338_v54 = vmul.f32 %v337_v46, %v1077_v28  ;;  %v416_v55 = vstv %s1235_s29  ;;  %s1275_s29 = sld [smem:[#allocation2]] }
 0x105   :  { %700 = vrot.lane.b32.xlu1 %v698_v59, %s995_s18  ;;  %550 = vrot.lane.b32.xlu0 %v548_v60, %s996_s21 }
 0x109   :  { %708 = vrot.lane.b32.xlu1 %v706_v63, %s996_s21  ;;  %629 = vrot.lane.b32.xlu0 %v627_v0, %s996_s21  ;;  %v417_v63 = vmul.f32 %v416_v55, %v1077_v28  ;;  %v495_v0 = vstv %s882_s30  ;;  %s1278_s30 = sld [smem:[#allocation6 + $0x5]] }
 0x10a   :  { %v496_v7 = vmul.f32 %v495_v0, %v1077_v28  ;;  %v219_v0 = vstv %s840_s12  ;;  %s1001_s12 = smov 80  }
 0x10d   :  { %95 = vrot.lane.b32.xlu1 %v93_v3, %s996_s21  ;;  %87 = vrot.lane.b32.xlu0 %v85_v4, %s995_s18  ;;  %v634_v4 = vstv %s903_s6  ;;  %s998_s6 = smov 32  }
 0x10e   :  { %v635_v8 = vmul.f32 %v634_v4, %v1048_v5 }
 0x10f   :  { %v246_v12 = vpop.permute.xlu1 %245  ;;  %v167_v13 = vpop.permute.xlu0 %166 }
 0x110   :  { %v248_v17 = vadd.f32 %v246_v12, %v240_v10  ;;  %v169_v18 = vadd.f32 %v167_v13, %v161_v11 }
 0x111   :  { %115 = vrot.lane.b32.xlu1 %v113_v14, %s996_s21  ;;  %107 = vrot.lane.b32.xlu0 %v105_v15, %s995_s18 }
 0x113   :  { %v325_v24 = vpop.permute.xlu1 %324  ;;  %v175_v25 = vpop.permute.xlu0 %174 }
 0x114   :  { %v327_v31 = vadd.f32 %v325_v24, %v319_v23  ;;  %v177_v32 = vadd.f32 %v175_v25, %v169_v18  ;;  %v653_v23 = vstv %s906_s7  ;;  %s1284_s7 = sld [smem:[#allocation6 + $0x7]] }
 0x115   :  { %135 = vrot.lane.b32.xlu1 %v133_v26, %s996_s21  ;;  %127 = vrot.lane.b32.xlu0 %v125_v27, %s995_s18  ;;  %v654_v30 = vmul.f32 %v653_v23, %v1077_v28 }
 0x116   :  { %v181_v37 = vadd.f32 %v180_v34, %v177_v32 }
 0x117   :  { %v404_v38 = vpop.permute.xlu1 %403  ;;  %v254_v39 = vpop.permute.xlu0 %253 }
 0x118   :  { %v406_v43 = vadd.f32 %v404_v38, %v398_v36  ;;  %v256_v44 = vadd.f32 %v254_v39, %v248_v17  ;;  %v357_v38 = vstv %s861_s8  ;;  %s999_s8 = smov 48  }
 0x119   :  { %155 = vrot.lane.b32.xlu1 %v153_v40, %s996_s21  ;;  %147 = vrot.lane.b32.xlu0 %v145_v41, %s995_s18  ;;  %s894_s18 = sld [smem:[#allocation2 + $0x4b]] }
 0x11a   :  { %v260_v48 = vadd.f32 %v259_v45, %v256_v44  ;;  %s837_s21 = sld [smem:[#allocation2 + $0x12]]  ;;  %v358_v44 = vmul.f32 %v357_v38, %v1110_v58  ;;  %v436_v45 = vstv %s873_s9 }
 0x11b   :  { %v483_v49 = vpop.permute.xlu1 %482  ;;  %v333_v50 = vpop.permute.xlu0 %332  ;;  %v437_v51 = vmul.f32 %v436_v45, %v1110_v58  ;;  %s1290_s9 = sld [smem:[#allocation2 + $0x3]] }
 0x11c   :  { %v485_v52 = vadd.f32 %v483_v49, %v477_v47  ;;  %v335_v53 = vadd.f32 %v333_v50, %v327_v31  ;;  %v278_v31 = vstv %s849_s3  ;;  %s1287_s3 = sld [smem:[#allocation6 + $0x6]] }
 0x11e   :  { %v339_v57 = vadd.f32 %v338_v54, %v335_v53 }
 0x11f   :  { %v562_v59 = vpop.permute.xlu1 %561  ;;  %v412_v60 = vpop.permute.xlu0 %411  ;;  %v574_v13 = vstv %s894_s18  ;;  %s1280_s18 = sld [smem:[#allocation4 + $0x7]] }
 0x120   :  { %v564_v61 = vadd.f32 %v562_v59, %v556_v56  ;;  %v414_v62 = vadd.f32 %v412_v60, %v406_v43  ;;  %v199_v14 = vstv %s837_s21  ;;  %v575_v20 = vmul.f32 %v574_v13, %v1077_v28  ;;  %s1282_s21 = sld [smem:[#allocation4 + $0x6]] }
 0x121   :  { %v200_v21 = vmul.f32 %v199_v14, %v1110_v58 }
 0x122   :  { %v418_v1 = vadd.f32 %v417_v63, %v414_v62  ;;  %v594_v63 = vstv %s897_s11  ;;  %s825_s11 = sld [smem:[#allocation2 + $0x6]] }
 0x123   :  { %v491_v2 = vpop.permute.xlu1 %490  ;;  %v187_v3 = vpop.permute.xlu0 %186 }
 0x124   :  { %v493_v6 = vadd.f32 %v491_v2, %v485_v52  ;;  %v189_v15 = vadd.f32 %v187_v3, %v181_v37  ;;  %v279_v37 = vmul.f32 %v278_v31, %v1110_v58  ;;  %v515_v52 = vstv %s885_s10  ;;  %s1000_s10 = smov 64  }
 0x125   :  { %v516_v59 = vmul.f32 %v515_v52, %v1110_v58 }
 0x126   :  { %v497_v9 = vadd.f32 %v496_v7, %v493_v6 }
 0x127   :  { %v266_v10 = vpop.permute.xlu1 %265  ;;  %v641_v11 = vpop.permute.xlu0 %640 }
 0x128   :  { %v643_v12 = vadd.f32 %v641_v11, %v635_v8  ;;  %v268_v32 = vadd.f32 %v266_v10, %v260_v48  ;;  %v595_v8 = vmul.f32 %v594_v63, %v1110_v58  ;;  %v673_v10 = vstv %s909_s13  ;;  %s1002_s13 = smov 112  }
 0x12b   :  { %v195_v16 = vpop.permute.xlu1 %194  ;;  %v570_v17 = vpop.permute.xlu0 %569 }
 0x12c   :  { %v197_v18 = vadd.f32 %v195_v16, %v189_v15  ;;  %v572_v19 = vadd.f32 %v570_v17, %v564_v61  ;;  %v674_v17 = vmul.f32 %v673_v10, %v1110_v58 }
 0x12e   :  { %v576_v24 = vadd.f32 %v575_v20, %v572_v19  ;;  %v201_v25 = vadd.f32 %v200_v21, %v197_v18  ;;  %v298_v18 = vstv %s852_s14  ;;  %s1003_s14 = smov 96  }
 0x12f   :  { %v649_v26 = vpop.permute.xlu1 %648  ;;  %v345_v27 = vpop.permute.xlu0 %344 }
 0x130   :  { %v651_v29 = vadd.f32 %v649_v26, %v643_v12  ;;  %v347_v39 = vadd.f32 %v345_v27, %v339_v57  ;;  %v377_v26 = vstv %s864_s15  ;;  %s828_s15 = sld [smem:[#allocation2 + $0x9]] }
 0x132   :  { %v655_v33 = vadd.f32 %v654_v30, %v651_v29 }
 0x133   :  { %v424_v34 = vpop.permute.xlu1 %423  ;;  %v274_v35 = vpop.permute.xlu0 %273 }
 0x134   :  { %v276_v36 = vadd.f32 %v274_v35, %v268_v32  ;;  %v426_v46 = vadd.f32 %v424_v34, %v418_v1  ;;  %v456_v34 = vstv %s876_s16  ;;  %s712_s16 = sld [smem:[#allocation4]] }
 0x136   :  { %v280_v40 = vadd.f32 %v279_v37, %v276_v36 }
 0x137   :  { %v503_v41 = vpop.permute.xlu1 %502  ;;  %v353_v42 = vpop.permute.xlu0 %352 }
 0x138   :  { %v355_v43 = vadd.f32 %v353_v42, %v347_v39  ;;  %v505_v53 = vadd.f32 %v503_v41, %v497_v9  ;;  %v220_v9 = vmul.f32 %v219_v0, %v1068_v22  ;;  %v535_v41 = vstv %s888_s0  ;;  %s715_s0 = sld [smem:[#allocation6]] }
 0x13a   :  { %v359_v47 = vadd.f32 %v358_v44, %v355_v43 }
 0x13b   :  { %v582_v49 = vpop.permute.xlu1 %581  ;;  %v432_v48 = vpop.permute.xlu0 %431 }
 0x13c   :  { %v434_v50 = vadd.f32 %v432_v48, %v426_v46  ;;  %v584_v1 = vadd.f32 %v582_v49, %v576_v24 }
 0x13e   :  { %v438_v54 = vadd.f32 %v437_v51, %v434_v50  ;;  %v614_v51 = vstv %s900_s17 }
 0x13f   :  { %v511_v55 = vpop.permute.xlu1 %510  ;;  %v207_v56 = vpop.permute.xlu0 %206 }
 0x140   :  { %v513_v57 = vadd.f32 %v511_v55, %v505_v53  ;;  %v209_v2 = vadd.f32 %v207_v56, %v201_v25  ;;  %v299_v25 = vmul.f32 %v298_v18, %v1068_v22  ;;  %v731_v18 = vstv %s919_s25 }
 0x142   :  { %v517_v60 = vadd.f32 %v516_v59, %v513_v57 }
 0x143   :  { %v286_v61 = vpop.permute.xlu1 %285  ;;  %v661_v62 = vpop.permute.xlu0 %660 }
 0x144   :  { %v663_v11 = vadd.f32 %v661_v62, %v655_v33  ;;  %v288_v19 = vadd.f32 %v286_v61, %v280_v40  ;;  %v378_v33 = vmul.f32 %v377_v26, %v1068_v22  ;;  %v457_v40 = vmul.f32 %v456_v34, %v1068_v22 }
 0x145   :  { %v722_v61 = vstv %s916_s22  ;;  %v693_v62 = vstv %s912_s20 }
 0x147   :  { %v215_v3 = vpop.permute.xlu1 %214  ;;  %v590_v4 = vpop.permute.xlu0 %589 }
 0x148   :  { %v217_v6 = vadd.f32 %v215_v3, %v209_v2  ;;  %v592_v7 = vadd.f32 %v590_v4, %v584_v1 }
 0x14a   :  { %v596_v12 = vadd.f32 %v595_v8, %v592_v7  ;;  %v221_v13 = vadd.f32 %v220_v9, %v217_v6  ;;  %v694_v7 = vmul.f32 %v693_v62, %v1068_v22 }
 0x14b   :  { %v669_v14 = vpop.permute.xlu1 %668  ;;  %v365_v15 = vpop.permute.xlu0 %364 }
 0x14c   :  { %v671_v16 = vadd.f32 %v669_v14, %v663_v11  ;;  %v367_v27 = vadd.f32 %v365_v15, %v359_v47  ;;  %v536_v47 = vmul.f32 %v535_v41, %v1068_v22  ;;  %v725_v11 = vstv %s917_s23 }
 0x14d   :  { %v728_v14 = vstv %s918_s24 }
 0x14e   :  { %v675_v20 = vadd.f32 %v674_v17, %v671_v16 }
 0x14f   :  { %v444_v21 = vpop.permute.xlu1 %443  ;;  %v294_v23 = vpop.permute.xlu0 %293 }
 0x150   :  { %v296_v24 = vadd.f32 %v294_v23, %v288_v19  ;;  %v446_v35 = vadd.f32 %v444_v21, %v438_v54  ;;  %v719_v54 = vstv %s915_s19  ;;  %v734_v23 = vstv %s1269_s26 }
 0x152   :  { %v300_v29 = vadd.f32 %v299_v25, %v296_v24 }
 0x153   :  { %v523_v30 = vpop.permute.xlu1 %522  ;;  %v373_v31 = vpop.permute.xlu0 %372 }
 0x154   :  { %v375_v32 = vadd.f32 %v373_v31, %v367_v27  ;;  %v525_v42 = vadd.f32 %v523_v30, %v517_v60  ;;  %v615_v60 = vmul.f32 %v614_v51, %v1068_v22  ;;  %v737_v27 = vstv %s921_s1 }
 0x156   :  { %v379_v36 = vadd.f32 %v378_v33, %v375_v32  ;;  %v740_v32 = vstv %s1271_s27 }
 0x157   :  { %v602_v37 = vpop.permute.xlu1 %601  ;;  %v452_v38 = vpop.permute.xlu0 %451 }
 0x158   :  { %v454_v39 = vadd.f32 %v452_v38, %v446_v35  ;;  %v604_v52 = vadd.f32 %v602_v37, %v596_v12 }
 0x15a   :  { %v458_v43 = vadd.f32 %v457_v40, %v454_v39  ;;  %v746_v40 = vstv %s1278_s30 }
 0x15b   :  { %v531_v44 = vpop.permute.xlu1 %530  ;;  %v227_v45 = vpop.permute.xlu0 %226 }
 0x15c   :  { %v533_v46 = vadd.f32 %v531_v44, %v525_v42  ;;  %v229_v53 = vadd.f32 %v227_v45, %v221_v13  ;;  %v755_v44 = vstv %s1280_s18 }
 0x15e   :  { %v537_v49 = vadd.f32 %v536_v47, %v533_v46  ;;  %v749_v46 = vstv %s1282_s21 }
 0x15f   :  { %v306_v48 = vpop.permute.xlu1 %305  ;;  %v681_v50 = vpop.permute.xlu0 %680 }
 0x160   :  { %v683_v63 = vadd.f32 %v681_v50, %v675_v20  ;;  %v308_v8 = vadd.f32 %v306_v48, %v300_v29 }
 0x163   :  { %v235_v55 = vpop.permute.xlu1 %234  ;;  %v610_v56 = vpop.permute.xlu0 %609 }
 0x164   :  { %v237_v57 = vadd.f32 %v235_v55, %v229_v53  ;;  %v612_v59 = vadd.f32 %v610_v56, %v604_v52  ;;  %v758_v52 = vstv %s1284_s7  ;;  %v752_v53 = vstv %s1287_s3 }
 0x166   :  { %v720_v0 = vmul.f32 %v719_v54, %v237_v57  ;;  %v616_v1 = vadd.f32 %v615_v60, %v612_v59  ;;  %v100_v59 = vstv %s1290_s9 }
 0x167   :  { %v689_v2 = vpop.permute.xlu1 %688  ;;  %v385_v3 = vpop.permute.xlu0 %384 }
 0x168   :  { %v691_v4 = vadd.f32 %v689_v2, %v683_v63  ;;  %v723_v6 = vadd.f32 %v722_v61, %v720_v0  ;;  %v387_v15 = vadd.f32 %v385_v3, %v379_v36  ;;  %v743_v36 = vstv %s1273_s28 }
 0x16a   :  { %761 = vrot.lane.b32.xlu0 %v723_v6, %s997_s2  ;;  %v695_v9 = vadd.f32 %v694_v7, %v691_v4  ;;  %v120_v4 = vstv %s825_s11 }
 0x16b   :  { %v464_v10 = vpop.permute.xlu1 %463  ;;  %v314_v12 = vpop.permute.xlu0 %313 }
 0x16c   :  { %v316_v13 = vadd.f32 %v314_v12, %v308_v8  ;;  %v466_v24 = vadd.f32 %v464_v10, %v458_v43  ;;  %v121_v8 = vmul.f32 %v120_v4, %v1110_v58 }
 0x16e   :  { %v726_v16 = vmul.f32 %v725_v11, %v316_v13  ;;  %v140_v11 = vstv %s828_s15 }
 0x16f   :  { %v543_v17 = vpop.permute.xlu1 %542  ;;  %v393_v19 = vpop.permute.xlu0 %392 }
 0x170   :  { %v395_v20 = vadd.f32 %v393_v19, %v387_v15  ;;  %v729_v21 = vadd.f32 %v728_v14, %v726_v16  ;;  %v545_v33 = vadd.f32 %v543_v17, %v537_v49  ;;  %v81_v49 = vstv %s1275_s29 }
 0x171   :  { %v82_v56 = vmul.f32 %v81_v49, %v1048_v5  ;;  %v141_v15 = vmul.f32 %v140_v11, %v1068_v22 }
 0x172   :  { %v732_v25 = vmul.f32 %v731_v18, %v395_v20  ;;  %765 = vrot.lane.b32.xlu1 %v729_v21, %s998_s6  ;;  %v713_v20 = vstv %s712_s16 }
 0x173   :  { %v622_v26 = vpop.permute.xlu1 %621  ;;  %v472_v29 = vpop.permute.xlu0 %471 }
 0x174   :  { %v474_v30 = vadd.f32 %v472_v29, %v466_v24  ;;  %v735_v31 = vadd.f32 %v734_v23, %v732_v25  ;;  %v624_v41 = vadd.f32 %v622_v26, %v616_v1  ;;  %v101_v1 = vmul.f32 %v100_v59, %v1077_v28 }
 0x175   :  { %v716_v24 = vstv %s715_s0 }
 0x176   :  { %v738_v34 = vmul.f32 %v737_v27, %v474_v30  ;;  %769 = vrot.lane.b32.xlu0 %v735_v31, %s999_s8 }
 0x177   :  { %v701_v35 = vpop.permute.xlu1 %700  ;;  %v551_v37 = vpop.permute.xlu0 %550 }
 0x178   :  { %v553_v38 = vadd.f32 %v551_v37, %v545_v33  ;;  %v741_v39 = vadd.f32 %v740_v32, %v738_v34  ;;  %v703_v42 = vadd.f32 %v701_v35, %v695_v9  ;;  %v802_v33 = vld [vmem:[%s1313_s4] sm:$0x3] }
 0x179   :  { %vm803_vm9 = vcmp.lt.f32.partialorder %v802_v33, 0.8 }
 0x17a   :  { %v744_v43 = vmul.f32 %v743_v36, %v553_v38  ;;  %773 = vrot.lane.b32.xlu1 %v741_v39, %s1000_s10 }
 0x17b   :  { %v709_v45 = vpop.permute.xlu1 %708  ;;  %v630_v47 = vpop.permute.xlu0 %629 }
 0x17c   :  { %v711_v48 = vadd.f32 %v709_v45, %v703_v42  ;;  %v632_v50 = vadd.f32 %v630_v47, %v624_v41  ;;  %v747_v51 = vadd.f32 %v746_v40, %v744_v43 }
 0x17e   :  { %v756_v54 = vmul.f32 %v755_v44, %v711_v48  ;;  %v750_v55 = vmul.f32 %v749_v46, %v632_v50  ;;  %777 = vrot.lane.b32.xlu0 %v747_v51, %s1001_s12 }
 0x17f   :  { %v88_v57 = vpop.permute.xlu0 %87  ;;  %v96_v63 = vpop.permute.xlu1 %95 }
 0x180   :  { %v90_v60 = vadd.f32 %v88_v57, %v82_v56  ;;  %v759_v61 = vadd.f32 %v758_v52, %v756_v54  ;;  %v753_v62 = vadd.f32 %v752_v53, %v750_v55 }
 0x182   :  { %v98_v0 = vadd.f32 %v96_v63, %v90_v60  ;;  %785 = vrot.lane.b32.xlu0 %v759_v61, %s1002_s13  ;;  %781 = vrot.lane.b32.xlu1 %v753_v62, %s1003_s14 }
 0x183   :  { %v108_v3 = vpop.permute.xlu0 %107  ;;  %v116_v7 = vpop.permute.xlu1 %115 }
 0x184   :  { %v102_v2 = vadd.f32 %v101_v1, %v98_v0 }
 0x186   :  { %v110_v6 = vadd.f32 %v108_v3, %v102_v2 }
 0x187   :  { %v128_v10 = vpop.permute.xlu0 %127  ;;  %v136_v13 = vpop.permute.xlu1 %135 }
 0x188   :  { %v118_v5 = vadd.f32 %v116_v7, %v110_v6 }
 0x18a   :  { %v122_v9 = vadd.f32 %v121_v8, %v118_v5 }
 0x18b   :  { %v148_v28 = vpop.permute.xlu0 %147  ;;  %v156_v18 = vpop.permute.xlu1 %155 }
 0x18c   :  { %v130_v12 = vadd.f32 %v128_v10, %v122_v9 }
 0x18e   :  { %v138_v14 = vadd.f32 %v136_v13, %v130_v12 }
 0x190   :  { %v142_v16 = vadd.f32 %v141_v15, %v138_v14 }
 0x192   :  { %v150_v17 = vadd.f32 %v148_v28, %v142_v16 }
 0x194   :  { %v158_v19 = vadd.f32 %v156_v18, %v150_v17 }
 0x196   :  { %v714_v23 = vmul.f32 %v713_v20, %v158_v19 }
 0x198   :  { %v717_v26 = vadd.f32 %v716_v24, %v714_v23 }
 0x1dc   :  { %v762_v21 = vpop.permute.xlu0 %761 }
 0x1dd   :  { %v789_v27 = vsel %vm788_vm2, %v717_v26, %v762_v21 }
 0x1e4   :  { %v766_v58 = vpop.permute.xlu1 %765 }
 0x1e5   :  { %v791_v30 = vsel %vm790_vm3, %v789_v27, %v766_v58 }
 0x1e8   :  { %v770_v25 = vpop.permute.xlu0 %769 }
 0x1e9   :  { %v793_v31 = vsel %vm792_vm4, %v791_v30, %v770_v25 }
 0x1ec   :  { %v774_v22 = vpop.permute.xlu1 %773 }
 0x1ed   :  { %v795_v32 = vsel %vm794_vm5, %v793_v31, %v774_v22 }
 0x1f0   :  { %v778_v29 = vpop.permute.xlu0 %777 }
 0x1f1   :  { %v797_v34 = vsel %vm796_vm6, %v795_v32, %v778_v29 }
 0x1f4   :  { %v782_v35 = vpop.permute.xlu1 %781  ;;  %v786_v36 = vpop.permute.xlu0 %785 }
 0x1f5   :  { %v799_v37 = vsel %vm798_vm7, %v797_v34, %v782_v35 }
 0x1f6   :  { %v801_v38 = vsel %vm800_vm8, %v799_v37, %v786_v36 }
 0x1f7   :  { %v804_v39 = vmul.f32 1.25, %v801_v38 }
 0x1f9   :  { %v805_v40 = vsel %vm803_vm9, %v804_v39, 0.0 }
 0x1fa   :  { %v807_v41 = vmul.f32 1.442695, %v805_v40  ;;  %vm806_vm10 = vcmp.gt.f32.partialorder %v805_v40, 0.0 }
 0x1fc   :  { %946 = vpow2.f32 %v807_v41 }
 0x209   :  { %v947_v42 = vpop.eup %946 }
 0x20a   :  { %v929_v43 = vadd.f32 -1.0, %v947_v42 }
 0x20c   :  { %v810_v44 = vmul.f32 1.6732632, %v929_v43 }
 0x20e   :  { %v811_v45 = vsel %vm806_vm10, %v805_v40, %v810_v44 }
 0x20f   :  { %v812_v46 = vmul.f32 1.050701, %v811_v45 }
 0x211   :  { %813 = vst [vmem:[%s1314_s5] sm:$0x3] %v812_v46 }
 0x212   :  { %818 = vsyncpa [#allocation3], 1 }
 0x213   :  { %819 = vsyncpa [#allocation5], 1 }

</bundles_post_ra>
